<compile_context>
chip_gen: v6e
topology: v6e:2x2x1
jax: 0.10.0
libtpu: 0.0.40
codegen_flags: <defaults>
</compile_context>

<pallas_src>
import jax
import jax.numpy as jnp
import numpy as np
from jax.experimental import pallas as pl
from jax.experimental.pallas import tpu as pltpu

# ---- model hyper-parameters (small, consistent with the module) -------------
INPUT_SIZE = 32
HIDDEN_SIZE = 32
NUM_LAYERS = 2
NUM_WORDS = 16
NUM_NT = 4
NUM_ACTIONS = NUM_NT + 2          # NT actions + REDUCE + SHIFT
REDUCE_ID = 0
SHIFT_ID = 1
MAX_OPEN_NT = 100

D = INPUT_SIZE
H = HIDDEN_SIZE
L = NUM_LAYERS
A_PAD = 128                       # lane-dense padded action dimension
B = 8                             # sentences batched along sublanes (f32 -> 8)

assert D == H, "packed composer / fused-push layout assumes input_size == hidden_size"
assert 2 * L * H == 128, "per-depth packed state [h0|c0|h1|c1] must fill one 128-lane tile"

# ---- static capacities of the fused kernel ----------------------------------
MAX_DEPTH = 8                     # max pushes per StackLSTM encoder
MAX_STACK = 8                     # max structural stack elements
MAX_COMP_LEN = 5                  # open NT + up to MAX_COMP_LEN-1 children

STACK_BASE = 0 * (MAX_DEPTH + 1)
BUF_BASE = 1 * (MAX_DEPTH + 1)
HIST_BASE = 2 * (MAX_DEPTH + 1)
N_STATE_ROWS = 3 * (MAX_DEPTH + 1)
STATE_W = 2 * L * H               # packed [h0|c0|h1|c1] per (encoder, depth)

# ---- opcodes & schedule field layout (one int32 row per field) --------------
OP_NOP, OP_PUSH_BUF, OP_ACT = 0, 1, 2
(F_OP, F_FLAG, F_COMPOSE, F_SEMBW, F_SPTR, F_SD_SRC, F_HD_SRC, F_BD_SRC,
 F_RBASE, F_NCHILD, F_BUFTOP) = range(11)
NUM_FIELDS = 11


# =============================== kernel ======================================
def _lstm_cell(gates, c_prev):
    """PyTorch nn.LSTM cell given pre-activation gates [i, f, g, o]."""
    i = jax.nn.sigmoid(gates[:, 0:H])
    f = jax.nn.sigmoid(gates[:, H:2 * H])
    g = jnp.tanh(gates[:, 2 * H:3 * H])
    o = jax.nn.sigmoid(gates[:, 3 * H:4 * H])
    c_new = f * c_prev + i * g
    h_new = o * jnp.tanh(c_new)
    return h_new, c_new


def rnng_kernel(sched_ref,                                    # SMEM (NUM_FIELDS, T)
                mask_ref, xpush_ref, xhist_ref,
                w_sh_ref, b_sh_ref, w_buf_ref, b_buf_ref,
                w_comp_ref, b_comp_ref, wcomp_ref, bcomp_ref,
                w1_ref, b1_ref, w2_ref, b2_ref,
                out_ref,
                enc_state, stack_emb, cat_tops, xs_buf):
    T = out_ref.shape[0]

    # persistent scratch init (single grid step -> no pl.when needed)
    enc_state[...] = jnp.zeros_like(enc_state)
    stack_emb[...] = jnp.zeros_like(stack_emb)
    cat_tops[...] = jnp.zeros_like(cat_tops)
    xs_buf[...] = jnp.zeros_like(xs_buf)
    out_ref[...] = jnp.zeros_like(out_ref)

    def hsl(state, l):
        return state[:, 2 * l * H:2 * l * H + H]

    def csl(state, l):
        return state[:, 2 * l * H + H:2 * (l + 1) * H]

    def single_push(x, state, w_ref, b_ref):
        """Multi-layer LSTM step for one encoder -> (packed new state, top h)."""
        parts = []
        inp = x
        for l in range(L):
            xh = jnp.concatenate([inp, hsl(state, l)], axis=-1)          # (B, D+H)
            gates = (jnp.dot(xh, w_ref[l], preferred_element_type=jnp.float32)
                     + b_ref[l:l + 1, :])
            h_new, c_new = _lstm_cell(gates, csl(state, l))
            parts += [h_new, c_new]
            inp = h_new                                                  # dropout = 0
        return jnp.concatenate(parts, axis=-1), inp

    def fused_push(x_s, x_h, st_s, st_h):
        """Stack & history encoders advanced in lockstep (block-diag weights)."""
        ps, ph = [], []
        inp_s, inp_h = x_s, x_h
        for l in range(L):
            row = jnp.concatenate([inp_s, hsl(st_s, l), inp_h, hsl(st_h, l)],
                                  axis=-1)                               # (B, 2(D+H))
            gates = (jnp.dot(row, w_sh_ref[l], preferred_element_type=jnp.float32)
                     + b_sh_ref[l:l + 1, :])                             # (B, 8H)
            hs_n, cs_n = _lstm_cell(gates[:, 0:4 * H], csl(st_s, l))
            hh_n, ch_n = _lstm_cell(gates[:, 4 * H:8 * H], csl(st_h, l))
            ps += [hs_n, cs_n]
            ph += [hh_n, ch_n]
            inp_s, inp_h = hs_n, hh_n
        return (jnp.concatenate(ps, axis=-1), jnp.concatenate(ph, axis=-1),
                inp_s, inp_h)

    def compose(rbase, nchild):
        """Bidirectional composer over stack_emb[rbase..rbase+nchild], Linear+ReLU."""
        hs = [jnp.zeros((B, H), jnp.float32) for _ in range(2 * L)]      # fwd L, bwd L
        cs = [jnp.zeros((B, H), jnp.float32) for _ in range(2 * L)]
        for k in range(MAX_COMP_LEN):                                    # fixed, masked
            fidx = jnp.minimum(rbase + k, MAX_STACK - 1)
            bidx = rbase if k == 0 else jnp.clip(rbase + 1 + nchild - k,
                                                 0, MAX_STACK - 1)
            inp_f = stack_emb[fidx]
            inp_b = stack_emb[bidx]
            vm = ((nchild + 1) > k).astype(jnp.float32)                  # validity mask
            for l in range(L):
                row = jnp.concatenate([inp_f, hs[l], inp_b, hs[L + l]], axis=-1)
                gates = (jnp.dot(row, w_comp_ref[l],
                                 preferred_element_type=jnp.float32)
                         + b_comp_ref[l:l + 1, :])
                hf, cf = _lstm_cell(gates[:, 0:4 * H], cs[l])
                hb, cb = _lstm_cell(gates[:, 4 * H:8 * H], cs[L + l])
                hs[l] = vm * hf + (1.0 - vm) * hs[l]
                cs[l] = vm * cf + (1.0 - vm) * cs[l]
                hs[L + l] = vm * hb + (1.0 - vm) * hs[L + l]
                cs[L + l] = vm * cb + (1.0 - vm) * cs[L + l]
                inp_f, inp_b = hs[l], hs[L + l]       # masked values feed next layer
        fwdbwd = jnp.concatenate([hs[L - 1], hs[2 * L - 1]], axis=-1)    # (B, 2D)
        return jnp.maximum(
            jnp.dot(fwdbwd, wcomp_ref[...], preferred_element_type=jnp.float32)
            + bcomp_ref[...], 0.0)

    @pl.loop(0, T)
    def _step(t):
        op = sched_ref[F_OP, t]

        # ---- 1. action log-prob head over PRE-transition tops ---------------
        @pl.when(sched_ref[F_FLAG, t] == 1)
        def _score():
            summary = jnp.maximum(
                jnp.dot(cat_tops[...], w1_ref[...],
                        preferred_element_type=jnp.float32) + b1_ref[...], 0.0)
            logits = (jnp.dot(summary, w2_ref[...],
                              preferred_element_type=jnp.float32)
                      + b2_ref[...] + mask_ref[pl.ds(t, 1), :])          # 0 / -inf addend
            m = jnp.max(logits, axis=-1, keepdims=True)
            lse = jnp.log(jnp.sum(jnp.exp(logits - m), axis=-1, keepdims=True)) + m
            out_ref[t] = logits - lse                                    # log_softmax rows

        # ---- 2a. buffer-encoder push (guard / reversed word loads) ----------
        @pl.when(op == OP_PUSH_BUF)
        def _push_buf():
            row = BUF_BASE + sched_ref[F_BD_SRC, t]
            new_state, top = single_push(xpush_ref[t], enc_state[row],
                                         w_buf_ref, b_buf_ref)
            enc_state[row + 1] = new_state
            cat_tops[:, H:2 * H] = top

        # ---- 2b. action step: (composer) + fused stack & history pushes -----
        @pl.when(op == OP_ACT)
        def _act():
            @pl.when(sched_ref[F_COMPOSE, t] == 1)
            def _reduce():                                               # REDUCE
                xs_buf[...] = compose(sched_ref[F_RBASE, t],
                                      sched_ref[F_NCHILD, t])

            @pl.when(sched_ref[F_COMPOSE, t] == 0)
            def _plain():                                                # NT / SHIFT / guard
                xs_buf[...] = xpush_ref[t]

            x_s = xs_buf[...]

            @pl.when(sched_ref[F_SEMBW, t] == 1)                         # mirror self._stack
            def _semb():
                stack_emb[sched_ref[F_SPTR, t]] = x_s

            srow = STACK_BASE + sched_ref[F_SD_SRC, t]
            hrow = HIST_BASE + sched_ref[F_HD_SRC, t]
            ns, nh, top_s, top_h = fused_push(x_s, xhist_ref[t],
                                              enc_state[srow], enc_state[hrow])
            enc_state[srow + 1] = ns
            enc_state[hrow + 1] = nh
            cat_tops[:, 0:H] = top_s
            cat_tops[:, 2 * H:3 * H] = top_h

        # ---- 3. buffer top refresh after a pop (SHIFT) -----------------------
        @pl.when(sched_ref[F_BUFTOP, t] >= 0)
        def _buftop():
            st = enc_state[sched_ref[F_BUFTOP, t]]
            cat_tops[:, H:2 * H] = st[:, 2 * (L - 1) * H:(2 * L - 1) * H]


# ============================ pallas_call wrapper =============================
def _resident(shape):
    nd = len(shape)
    return pl.BlockSpec(shape, lambda i, s, _nd=nd: (0,) * _nd)


def rnng_forward(sched, mask, x_push, x_hist, params):
    (w_sh, b_sh, w_buf, b_buf, w_comp, b_comp,
     wcomp, bcomp, w1, b1, w2, b2) = params
    T = mask.shape[0]
    inputs = (mask, x_push, x_hist, w_sh, b_sh, w_buf, b_buf,
              w_comp, b_comp, wcomp, bcomp, w1, b1, w2, b2)
    grid_spec = pltpu.PrefetchScalarGridSpec(
        num_scalar_prefetch=1,
        grid=(1,),                      # single launch; T loop lives inside kernel
        in_specs=[_resident(x.shape) for x in inputs],
        out_specs=pl.BlockSpec((T, B, A_PAD), lambda i, s: (0, 0, 0)),
        scratch_shapes=[
            pltpu.VMEM((N_STATE_ROWS, B, STATE_W), jnp.float32),  # packed h|c states
            pltpu.VMEM((MAX_STACK, B, D), jnp.float32),           # structural stack embs
            pltpu.VMEM((B, 3 * H), jnp.float32),                  # [stack|buf|hist] tops
            pltpu.VMEM((B, D), jnp.float32),                      # staged stack-push input
        ],
    )
    return pl.pallas_call(
        rnng_kernel,
        out_shape=jax.ShapeDtypeStruct((T, B, A_PAD), jnp.float32),
        grid_spec=grid_spec,
        compiler_params=pltpu.CompilerParams(dimension_semantics=("arbitrary",)),
    )(sched, *inputs)


# ======================= host-side schedule construction =====================
def build_schedule(n_words):
    """Structural simulation of the transition system -> fixed int32 schedule."""
    events, masks = [], []
    sd = bd = hd = 0                   # encoder depths (pushes so far)
    stack = []                         # parse-stack mirror ('open'/'child'/'closed')
    buf_len = 0
    num_open = 0

    def ev(**kw):
        base = dict(op=OP_NOP, flag=0, compose=0, sembw=0, sptr=0, sd_src=0,
                    hd_src=0, bd_src=0, rbase=0, nchild=0, buftop=-1,
                    src=("zero",), hist=None)
        base.update(kw)
        return base

    def mask_row(illegal):
        row = [0.0] * A_PAD
        for a in range(NUM_ACTIONS, A_PAD):
            row[a] = -float("inf")     # padded lanes
        for a in illegal:
            row[a] = -float("inf")
        return row

    def illegal_now(tos_open):
        ill = []
        can_reduce = (num_open > 0 and not tos_open
                      and not (num_open < 2 and buf_len > 0))
        if not can_reduce:
            ill.append(REDUCE_ID)
        # TODO(synk): _check_shift is abstract; discriminative rule used here.
        if not (buf_len > 0 and num_open > 0):
            ill.append(SHIFT_ID)
        if not (buf_len > 0 and num_open < MAX_OPEN_NT):
            ill.extend(range(2, NUM_ACTIONS))
        return ill

    # _start: stack & history guards (lockstep), buffer guard, reversed words
    events.append(ev(op=OP_ACT, sd_src=sd, hd_src=hd)); masks.append(mask_row([]))
    sd += 1; hd += 1
    events.append(ev(op=OP_PUSH_BUF, bd_src=bd)); masks.append(mask_row([]))
    bd += 1
    for i in range(n_words - 1, -1, -1):
        events.append(ev(op=OP_PUSH_BUF, bd_src=bd, src=("word", i)))
        masks.append(mask_row([]))
        bd += 1; buf_len += 1

    # action 1: NT
    events.append(ev(op=OP_ACT, flag=1, sembw=1, sptr=len(stack),
                     sd_src=sd, hd_src=hd, src=("nt",), hist="nt"))
    masks.append(mask_row(illegal_now(tos_open=False)))
    stack.append("open"); num_open += 1; sd += 1; hd += 1

    # SHIFT every word (pop buffer, push word onto stack, push action history)
    for i in range(n_words):
        events.append(ev(op=OP_ACT, flag=1, sembw=1, sptr=len(stack),
                         sd_src=sd, hd_src=hd, src=("word", i), hist="shift",
                         buftop=BUF_BASE + (bd - 1)))
        masks.append(mask_row(illegal_now(tos_open=(stack[-1] == "open"))))
        stack.append("child"); sd += 1; hd += 1; bd -= 1; buf_len -= 1

    # REDUCE (only legal action: buffer empty)
    pre_mask = mask_row(illegal_now(tos_open=(stack[-1] == "open")))
    n_children = 0
    while stack and stack[-1] != "open":
        stack.pop(); n_children += 1
    base = len(stack) - 1
    assert base >= 0 and n_children >= 1 and n_children + 1 <= MAX_COMP_LEN
    stack.pop()
    events.append(ev(op=OP_ACT, flag=1, compose=1, sembw=1, sptr=base,
                     rbase=base, nchild=n_children,
                     sd_src=sd - (n_children + 1), hd_src=hd,
                     src=("composed",), hist="reduce"))
    masks.append(pre_mask)
    stack.append("closed"); num_open -= 1
    sd = sd - (n_children + 1) + 1; hd += 1

    # capacity checks for the fixed-size kernel scratch
    assert all(e["sd_src"] >= 0 and e["hd_src"] >= 0 and e["bd_src"] >= 0
               for e in events)
    assert max(max(e["sd_src"], e["hd_src"], e["bd_src"]) for e in events) + 1 <= MAX_DEPTH
    assert all(0 <= e["sptr"] < MAX_STACK for e in events)
    assert all(e["buftop"] < N_STATE_ROWS for e in events)
    assert all(e["nchild"] + 1 <= MAX_COMP_LEN for e in events)

    names = ["op", "flag", "compose", "sembw", "sptr", "sd_src", "hd_src",
             "bd_src", "rbase", "nchild", "buftop"]
    sched = jnp.array([[e[n] for e in events] for n in names], dtype=jnp.int32)
    assert sched.shape[0] == NUM_FIELDS
    mask = jnp.array(masks, dtype=jnp.float32)
    flag_rows = [i for i, e in enumerate(events) if e["flag"] == 1]
    return events, sched, mask, flag_rows


def build_inputs(events, word_ids, nt_ids, word_emb, nt_emb, act_emb):
    """Pre-gather per-step, per-batch-item push / history embeddings host-side."""
    T = len(events)
    x_push = np.zeros((T, B, D), np.float32)
    x_hist = np.zeros((T, B, D), np.float32)
    we, ne, ae = np.asarray(word_emb), np.asarray(nt_emb), np.asarray(act_emb)
    wi, ni = np.asarray(word_ids), np.asarray(nt_ids)
    for t, e in enumerate(events):
        kind = e["src"]
        if kind[0] == "word":
            x_push[t] = we[wi[:, kind[1]]]
        elif kind[0] == "nt":
            x_push[t] = ne[ni]
        # 'zero' (guards) and 'composed' (computed in-kernel) rows stay zero
        if e["hist"] == "nt":
            x_hist[t] = ae[ni + 2]
        elif e["hist"] == "shift":
            x_hist[t] = ae[SHIFT_ID]
        elif e["hist"] == "reduce":
            x_hist[t] = ae[REDUCE_ID]
    return jnp.asarray(x_push), jnp.asarray(x_hist)


# ====================== deterministic parameter init =========================
def orthogonal(key, shape):
    m, n = shape
    a = jax.random.normal(key, (max(m, n), min(m, n)), jnp.float32)
    q, r = jnp.linalg.qr(a)
    d = jnp.diag(r)
    q = q * jnp.where(d == 0.0, 1.0, jnp.sign(d))
    if m < n:
        q = q.T
    return q[:m, :n].astype(jnp.float32)


def kaiming(key, shape):
    fan_in = shape[1]
    return jax.random.normal(key, shape, jnp.float32) * (2.0 / fan_in) ** 0.5


def lstm_layer(key, in_dim, hidden):
    k1, k2 = jax.random.split(key)
    wih = orthogonal(k1, (4 * hidden, in_dim))
    whh = orthogonal(k2, (4 * hidden, hidden))
    return wih, whh


def pack_stack_history(key):
    """(L, 2(D+H), 8H) block-diag [stack | history] fused encoder weights."""
    mats = []
    for l in range(L):
        key, ks, kh = jax.random.split(key, 3)
        swih, swhh = lstm_layer(ks, D if l == 0 else H, H)
        hwih, hwhh = lstm_layer(kh, D if l == 0 else H, H)
        m = jnp.zeros((2 * (D + H), 8 * H), jnp.float32)
        m = m.at[0:D, 0:4 * H].set(swih.T)
        m = m.at[D:D + H, 0:4 * H].set(swhh.T)
        m = m.at[D + H:2 * D + H, 4 * H:8 * H].set(hwih.T)
        m = m.at[2 * D + H:2 * (D + H), 4 * H:8 * H].set(hwhh.T)
        mats.append(m)
    return jnp.stack(mats), jnp.zeros((L, 8 * H), jnp.float32)


def pack_buffer(key):
    """(L, D+H, 4H) fused [Wih; Whh] for the buffer encoder."""
    ws = []
    for l in range(L):
        key, sub = jax.random.split(key)
        wih, whh = lstm_layer(sub, D if l == 0 else H, H)
        ws.append(jnp.concatenate([wih.T, whh.T], axis=0))
    return jnp.stack(ws), jnp.zeros((L, 4 * H), jnp.float32)


def pack_composers(key):
    """(L, 2(D+H), 8H) block-diagonal fwd|bwd composer weights."""
    mats = []
    for l in range(L):
        key, kf, kb = jax.random.split(key, 3)
        fwih, fwhh = lstm_layer(kf, D if l == 0 else H, H)
        bwih, bwhh = lstm_layer(kb, D if l == 0 else H, H)
        m = jnp.zeros((2 * (D + H), 8 * H), jnp.float32)
        m = m.at[0:D, 0:4 * H].set(fwih.T)
        m = m.at[D:D + H, 0:4 * H].set(fwhh.T)
        m = m.at[D + H:2 * D + H, 4 * H:8 * H].set(bwih.T)
        m = m.at[2 * D + H:2 * (D + H), 4 * H:8 * H].set(bwhh.T)
        mats.append(m)
    return jnp.stack(mats), jnp.zeros((L, 8 * H), jnp.float32)


# ==================================== main ====================================
if __name__ == "__main__":
    key = jax.random.PRNGKey(0)
    keys = jax.random.split(key, 11)

    # embeddings (nn.Embedding default init N(0,1)); guard params are zeros
    word_embedding = jax.random.normal(keys[0], (NUM_WORDS, D), jnp.float32)
    nt_embedding = jax.random.normal(keys[1], (NUM_NT, D), jnp.float32)
    action_embedding = jax.random.normal(keys[2], (NUM_ACTIONS, D), jnp.float32)

    w_sh, b_sh = pack_stack_history(keys[3])      # (2,128,256) / (2,256)
    w_buf, b_buf = pack_buffer(keys[4])           # (2, 64,128) / (2,128)
    w_comp, b_comp = pack_composers(keys[5])      # (2,128,256) / (2,256)

    wcomp = kaiming(keys[6], (D, 2 * D)).T        # fwdbwd2composed
    bcomp = jnp.zeros((1, D), jnp.float32)
    w1 = kaiming(keys[7], (H, 3 * H)).T           # encoders2summary
    b1 = jnp.zeros((1, H), jnp.float32)
    w2 = jnp.zeros((H, A_PAD), jnp.float32).at[:, :NUM_ACTIONS].set(
        kaiming(keys[8], (NUM_ACTIONS, H)).T)     # action head (lane-padded)
    b2 = jnp.zeros((1, A_PAD), jnp.float32)

    # B sentences sharing the transition structure NT -> SHIFT*3 -> REDUCE,
    # with per-item words / NT label (embeddings pre-gathered host-side).
    n_words = 3
    word_ids = jax.random.randint(keys[9], (B, n_words), 0, NUM_WORDS)
    nt_ids = jax.random.randint(keys[10], (B,), 0, NUM_NT)

    events, sched, mask, flag_rows = build_schedule(n_words)
    x_push, x_hist = build_inputs(events, word_ids, nt_ids,
                                  word_embedding, nt_embedding, action_embedding)

    params = (w_sh, b_sh, w_buf, b_buf, w_comp, b_comp,
              wcomp, bcomp, w1, b1, w2, b2)
    out = rnng_forward(sched, mask, x_push, x_hist, params)    # (T, B, A_PAD)
    log_probs = out[jnp.array(flag_rows)][:, :, :NUM_ACTIONS]  # (steps, B, actions)
    jax.block_until_ready(log_probs)
    print("KERNEL_OK")
</pallas_src>

<mosaic_0001>
module attributes {stable_mosaic.version = 11 : i64} {
  func.func @rnng_kernel(%arg0: i32, %arg1: memref<11x10xi32, #tpu.memory_space<smem>>, %arg2: memref<10x128xf32, #tpu.memory_space<vmem>>, %arg3: memref<10x8x32xf32, #tpu.memory_space<vmem>>, %arg4: memref<10x8x32xf32, #tpu.memory_space<vmem>>, %arg5: memref<2x128x256xf32, #tpu.memory_space<vmem>>, %arg6: memref<2x256xf32, #tpu.memory_space<vmem>>, %arg7: memref<2x64x128xf32, #tpu.memory_space<vmem>>, %arg8: memref<2x128xf32, #tpu.memory_space<vmem>>, %arg9: memref<2x128x256xf32, #tpu.memory_space<vmem>>, %arg10: memref<2x256xf32, #tpu.memory_space<vmem>>, %arg11: memref<64x32xf32, #tpu.memory_space<vmem>>, %arg12: memref<1x32xf32, #tpu.memory_space<vmem>>, %arg13: memref<96x32xf32, #tpu.memory_space<vmem>>, %arg14: memref<1x32xf32, #tpu.memory_space<vmem>>, %arg15: memref<32x128xf32, #tpu.memory_space<vmem>>, %arg16: memref<1x128xf32, #tpu.memory_space<vmem>>, %arg17: memref<10x8x128xf32, #tpu.memory_space<vmem>>, %arg18: memref<27x8x128xf32, #tpu.memory_space<vmem>>, %arg19: memref<8x8x32xf32, #tpu.memory_space<vmem>>, %arg20: memref<8x96xf32, #tpu.memory_space<vmem>>, %arg21: memref<8x32xf32, #tpu.memory_space<vmem>>) attributes {dimension_semantics = [#tpu.dimension_semantics<arbitrary>], iteration_bounds = array<i64: 1>, scalar_prefetch = 1 : i64, scratch_operands = 4 : i64, tpu.core_type = #tpu.core_type<tc>, window_params = [{pipeline_mode = #tpu.pipeline_mode<synchronous>, transform_indices = @transform_0, window_bounds = array<i64: 10, 128>}, {pipeline_mode = #tpu.pipeline_mode<synchronous>, transform_indices = @transform_1, window_bounds = array<i64: 10, 8, 32>}, {pipeline_mode = #tpu.pipeline_mode<synchronous>, transform_indices = @transform_2, window_bounds = array<i64: 10, 8, 32>}, {pipeline_mode = #tpu.pipeline_mode<synchronous>, transform_indices = @transform_3, window_bounds = array<i64: 2, 128, 256>}, {pipeline_mode = #tpu.pipeline_mode<synchronous>, transform_indices = @transform_4, window_bounds = array<i64: 2, 256>}, {pipeline_mode = #tpu.pipeline_mode<synchronous>, transform_indices = @transform_5, window_bounds = array<i64: 2, 64, 128>}, {pipeline_mode = #tpu.pipeline_mode<synchronous>, transform_indices = @transform_6, window_bounds = array<i64: 2, 128>}, {pipeline_mode = #tpu.pipeline_mode<synchronous>, transform_indices = @transform_7, window_bounds = array<i64: 2, 128, 256>}, {pipeline_mode = #tpu.pipeline_mode<synchronous>, transform_indices = @transform_8, window_bounds = array<i64: 2, 256>}, {pipeline_mode = #tpu.pipeline_mode<synchronous>, transform_indices = @transform_9, window_bounds = array<i64: 64, 32>}, {pipeline_mode = #tpu.pipeline_mode<synchronous>, transform_indices = @transform_10, window_bounds = array<i64: 1, 32>}, {pipeline_mode = #tpu.pipeline_mode<synchronous>, transform_indices = @transform_11, window_bounds = array<i64: 96, 32>}, {pipeline_mode = #tpu.pipeline_mode<synchronous>, transform_indices = @transform_12, window_bounds = array<i64: 1, 32>}, {pipeline_mode = #tpu.pipeline_mode<synchronous>, transform_indices = @transform_13, window_bounds = array<i64: 32, 128>}, {pipeline_mode = #tpu.pipeline_mode<synchronous>, transform_indices = @transform_14, window_bounds = array<i64: 1, 128>}, {pipeline_mode = #tpu.pipeline_mode<synchronous>, transform_indices = @transform_15, window_bounds = array<i64: 10, 8, 128>}]} {
    %cst = arith.constant 0.000000e+00 : f32
    %0 = vector.broadcast %cst : f32 to vector<27x8x128xf32>
    %c0 = arith.constant 0 : index
    %c0_0 = arith.constant 0 : index
    %c0_1 = arith.constant 0 : index
    %1 = vector.load %arg18[%c0, %c0_0, %c0_1] : memref<27x8x128xf32, #tpu.memory_space<vmem>>, vector<27x8x128xf32>
    tpu.vector_store %arg18[%c0, %c0_0, %c0_1], %0 {strides = array<i32>} : memref<27x8x128xf32, #tpu.memory_space<vmem>>, vector<27x8x128xf32>,
    %cst_2 = arith.constant 0.000000e+00 : f32
    %2 = vector.broadcast %cst_2 : f32 to vector<8x8x32xf32>
    %c0_3 = arith.constant 0 : index
    %c0_4 = arith.constant 0 : index
    %c0_5 = arith.constant 0 : index
    %3 = vector.load %arg19[%c0_3, %c0_4, %c0_5] : memref<8x8x32xf32, #tpu.memory_space<vmem>>, vector<8x8x32xf32>
    tpu.vector_store %arg19[%c0_3, %c0_4, %c0_5], %2 {strides = array<i32>} : memref<8x8x32xf32, #tpu.memory_space<vmem>>, vector<8x8x32xf32>,
    %cst_6 = arith.constant 0.000000e+00 : f32
    %4 = vector.broadcast %cst_6 : f32 to vector<8x96xf32>
    %c0_7 = arith.constant 0 : index
    %c0_8 = arith.constant 0 : index
    %5 = vector.load %arg20[%c0_7, %c0_8] : memref<8x96xf32, #tpu.memory_space<vmem>>, vector<8x96xf32>
    tpu.vector_store %arg20[%c0_7, %c0_8], %4 {strides = array<i32>} : memref<8x96xf32, #tpu.memory_space<vmem>>, vector<8x96xf32>,
    %cst_9 = arith.constant 0.000000e+00 : f32
    %6 = vector.broadcast %cst_9 : f32 to vector<8x32xf32>
    %c0_10 = arith.constant 0 : index
    %c0_11 = arith.constant 0 : index
    %7 = vector.load %arg21[%c0_10, %c0_11] : memref<8x32xf32, #tpu.memory_space<vmem>>, vector<8x32xf32>
    tpu.vector_store %arg21[%c0_10, %c0_11], %6 {strides = array<i32>} : memref<8x32xf32, #tpu.memory_space<vmem>>, vector<8x32xf32>,
    %cst_12 = arith.constant 0.000000e+00 : f32
    %8 = vector.broadcast %cst_12 : f32 to vector<10x8x128xf32>
    %c0_13 = arith.constant 0 : index
    %c0_14 = arith.constant 0 : index
    %c0_15 = arith.constant 0 : index
    %9 = vector.load %arg17[%c0_13, %c0_14, %c0_15] : memref<10x8x128xf32, #tpu.memory_space<vmem>>, vector<10x8x128xf32>
    tpu.vector_store %arg17[%c0_13, %c0_14, %c0_15], %8 {strides = array<i32>} : memref<10x8x128xf32, #tpu.memory_space<vmem>>, vector<10x8x128xf32>,
    %c0_i32 = arith.constant 0 : i32
    %c10_i32 = arith.constant 10 : i32
    %10 = arith.addi %c0_i32, %c10_i32 : i32
    %c1_i32 = arith.constant 1 : i32
    scf.for %arg22 = %c0_i32 to %10 step %c1_i32  : i32 {
      %c1_i32_17 = arith.constant 1 : i32
      %11 = arith.muli %arg22, %c1_i32_17 : i32
      %c0_i32_18 = arith.constant 0 : i32
      %12 = arith.addi %c0_i32_18, %11 : i32
      %c0_19 = arith.constant 0 : index
      %13 = arith.index_cast %12 : i32 to index
      %14 = memref.load %arg1[%c0_19, %13] : memref<11x10xi32, #tpu.memory_space<smem>>
      %c1 = arith.constant 1 : index
      %15 = arith.index_cast %12 : i32 to index
      %16 = memref.load %arg1[%c1, %15] : memref<11x10xi32, #tpu.memory_space<smem>>
      %c1_i32_20 = arith.constant 1 : i32
      %17 = arith.cmpi eq, %16, %c1_i32_20 : i32
      %18 = arith.extui %17 : i1 to i32
      %c0_i32_21 = arith.constant 0 : i32
      %19 = arith.cmpi ne, %18, %c0_i32_21 : i32
      scf.if %19 {
        %c0_27 = arith.constant 0 : index
        %c0_28 = arith.constant 0 : index
        %31 = vector.load %arg20[%c0_27, %c0_28] : memref<8x96xf32, #tpu.memory_space<vmem>>, vector<8x96xf32>
        %c0_29 = arith.constant 0 : index
        %c0_30 = arith.constant 0 : index
        %32 = vector.load %arg13[%c0_29, %c0_30] : memref<96x32xf32, #tpu.memory_space<vmem>>, vector<96x32xf32>
        %cst_31 = arith.constant dense<0.000000e+00> : vector<8x32xf32>
        %33 = tpu.matmul %31, %32, %cst_31 {dimension_numbers = #tpu.dot_dimension_numbers<[1], [0], [0], [1], [0, 0, 1, 1], [], []>} : vector<8x96xf32>, vector<96x32xf32>, vector<8x32xf32> -> vector<8x32xf32>
        %c0_32 = arith.constant 0 : index
        %c0_33 = arith.constant 0 : index
        %34 = vector.load %arg14[%c0_32, %c0_33] : memref<1x32xf32, #tpu.memory_space<vmem>>, vector<1x32xf32>
        %35 = vector.broadcast %34 : vector<1x32xf32> to vector<8x32xf32>
        %36 = arith.addf %33, %35 : vector<8x32xf32>
        %cst_34 = arith.constant 0.000000e+00 : f32
        %37 = vector.broadcast %cst_34 : f32 to vector<8x32xf32>
        %38 = arith.maximumf %36, %37 : vector<8x32xf32>
        %c0_35 = arith.constant 0 : index
        %c0_36 = arith.constant 0 : index
        %39 = vector.load %arg15[%c0_35, %c0_36] : memref<32x128xf32, #tpu.memory_space<vmem>>, vector<32x128xf32>
        %cst_37 = arith.constant dense<0.000000e+00> : vector<8x128xf32>
        %40 = tpu.matmul %38, %39, %cst_37 {dimension_numbers = #tpu.dot_dimension_numbers<[1], [0], [0], [1], [0, 0, 1, 1], [], []>} : vector<8x32xf32>, vector<32x128xf32>, vector<8x128xf32> -> vector<8x128xf32>
        %c0_38 = arith.constant 0 : index
        %c0_39 = arith.constant 0 : index
        %41 = vector.load %arg16[%c0_38, %c0_39] : memref<1x128xf32, #tpu.memory_space<vmem>>, vector<1x128xf32>
        %42 = vector.broadcast %41 : vector<1x128xf32> to vector<8x128xf32>
        %43 = arith.addf %40, %42 : vector<8x128xf32>
        %44 = arith.index_cast %12 : i32 to index
        %c0_40 = arith.constant 0 : index
        %45 = vector.load %arg2[%44, %c0_40] : memref<10x128xf32, #tpu.memory_space<vmem>>, vector<1x128xf32>
        %46 = vector.broadcast %45 : vector<1x128xf32> to vector<8x128xf32>
        %47 = arith.addf %43, %46 : vector<8x128xf32>
        %cst_41 = arith.constant dense<0xFF800000> : vector<8xf32>
        %48 = vector.multi_reduction <maximumf>, %47, %cst_41 [1] : vector<8x128xf32> to vector<8xf32>
        %49 = vector.shape_cast %48 : vector<8xf32> to vector<8x1xf32>
        %50 = vector.broadcast %49 : vector<8x1xf32> to vector<8x128xf32>
        %51 = arith.subf %47, %50 : vector<8x128xf32>
        %52 = math.exp %51 : vector<8x128xf32>
        %cst_42 = arith.constant dense<0.000000e+00> : vector<8xf32>
        %53 = vector.multi_reduction <add>, %52, %cst_42 [1] : vector<8x128xf32> to vector<8xf32>
        %54 = vector.shape_cast %53 : vector<8xf32> to vector<8x1xf32>
        %55 = math.log %54 : vector<8x1xf32>
        %56 = arith.addf %55, %49 : vector<8x1xf32>
        %57 = vector.broadcast %56 : vector<8x1xf32> to vector<8x128xf32>
        %58 = arith.subf %47, %57 : vector<8x128xf32>
        %59 = arith.index_cast %12 : i32 to index
        %c0_43 = arith.constant 0 : index
        %c0_44 = arith.constant 0 : index
        %60 = vector.load %arg17[%59, %c0_43, %c0_44] : memref<10x8x128xf32, #tpu.memory_space<vmem>>, vector<1x8x128xf32>
        %61 = vector.shape_cast %60 : vector<1x8x128xf32> to vector<8x128xf32>
        %62 = vector.shape_cast %58 : vector<8x128xf32> to vector<1x8x128xf32>
        tpu.vector_store %arg17[%59, %c0_43, %c0_44], %62 {strides = array<i32>} : memref<10x8x128xf32, #tpu.memory_space<vmem>>, vector<1x8x128xf32>,
      } else {
      }
      %c1_i32_22 = arith.constant 1 : i32
      %20 = arith.cmpi eq, %14, %c1_i32_22 : i32
      %21 = arith.extui %20 : i1 to i32
      %c0_i32_23 = arith.constant 0 : i32
      %22 = arith.cmpi ne, %21, %c0_i32_23 : i32
      scf.if %22 {
        %c7 = arith.constant 7 : index
        %31 = arith.index_cast %12 : i32 to index
        %32 = memref.load %arg1[%c7, %31] : memref<11x10xi32, #tpu.memory_space<smem>>
        %c9_i32 = arith.constant 9 : i32
        %33 = arith.addi %c9_i32, %32 : i32
        %34 = arith.index_cast %12 : i32 to index
        %c0_27 = arith.constant 0 : index
        %c0_28 = arith.constant 0 : index
        %35 = vector.load %arg3[%34, %c0_27, %c0_28] : memref<10x8x32xf32, #tpu.memory_space<vmem>>, vector<1x8x32xf32>
        %36 = vector.shape_cast %35 : vector<1x8x32xf32> to vector<8x32xf32>
        %37 = arith.index_cast %33 : i32 to index
        %c0_29 = arith.constant 0 : index
        %c0_30 = arith.constant 0 : index
        %38 = vector.load %arg18[%37, %c0_29, %c0_30] : memref<27x8x128xf32, #tpu.memory_space<vmem>>, vector<1x8x128xf32>
        %39 = vector.shape_cast %38 : vector<1x8x128xf32> to vector<8x128xf32>
        %40 = vector.extract_strided_slice %39 {offsets = [0, 0], sizes = [8, 32], strides = [1, 1]} : vector<8x128xf32> to vector<8x32xf32>
        %41 = tpu.concatenate %36, %40 in 1 : vector<8x32xf32>, vector<8x32xf32> -> vector<8x64xf32>
        %c0_31 = arith.constant 0 : index
        %c0_32 = arith.constant 0 : index
        %c0_33 = arith.constant 0 : index
        %42 = vector.load %arg7[%c0_31, %c0_32, %c0_33] : memref<2x64x128xf32, #tpu.memory_space<vmem>>, vector<1x64x128xf32>
        %43 = vector.shape_cast %42 : vector<1x64x128xf32> to vector<64x128xf32>
        %cst_34 = arith.constant dense<0.000000e+00> : vector<8x128xf32>
        %44 = tpu.matmul %41, %43, %cst_34 {dimension_numbers = #tpu.dot_dimension_numbers<[1], [0], [0], [1], [0, 0, 1, 1], [], []>} : vector<8x64xf32>, vector<64x128xf32>, vector<8x128xf32> -> vector<8x128xf32>
        %c0_35 = arith.constant 0 : index
        %c0_36 = arith.constant 0 : index
        %45 = vector.load %arg8[%c0_35, %c0_36] : memref<2x128xf32, #tpu.memory_space<vmem>>, vector<1x128xf32>
        %46 = vector.broadcast %45 : vector<1x128xf32> to vector<8x128xf32>
        %47 = arith.addf %44, %46 : vector<8x128xf32>
        %48 = vector.extract_strided_slice %39 {offsets = [0, 32], sizes = [8, 32], strides = [1, 1]} : vector<8x128xf32> to vector<8x32xf32>
        %49 = vector.extract_strided_slice %47 {offsets = [0, 0], sizes = [8, 32], strides = [1, 1]} : vector<8x128xf32> to vector<8x32xf32>
        %50 = arith.negf %49 : vector<8x32xf32>
        %51 = math.exp %50 : vector<8x32xf32>
        %cst_37 = arith.constant 1.000000e+00 : f32
        %52 = vector.broadcast %cst_37 : f32 to vector<8x32xf32>
        %53 = arith.addf %52, %51 : vector<8x32xf32>
        %54 = arith.divf %52, %53 : vector<8x32xf32>
        %55 = vector.extract_strided_slice %47 {offsets = [0, 32], sizes = [8, 32], strides = [1, 1]} : vector<8x128xf32> to vector<8x32xf32>
        %56 = arith.negf %55 : vector<8x32xf32>
        %57 = math.exp %56 : vector<8x32xf32>
        %cst_38 = arith.constant 1.000000e+00 : f32
        %58 = vector.broadcast %cst_38 : f32 to vector<8x32xf32>
        %59 = arith.addf %58, %57 : vector<8x32xf32>
        %60 = arith.divf %58, %59 : vector<8x32xf32>
        %61 = vector.extract_strided_slice %47 {offsets = [0, 64], sizes = [8, 32], strides = [1, 1]} : vector<8x128xf32> to vector<8x32xf32>
        %62 = math.tanh %61 : vector<8x32xf32>
        %63 = vector.extract_strided_slice %47 {offsets = [0, 96], sizes = [8, 32], strides = [1, 1]} : vector<8x128xf32> to vector<8x32xf32>
        %64 = arith.negf %63 : vector<8x32xf32>
        %65 = math.exp %64 : vector<8x32xf32>
        %cst_39 = arith.constant 1.000000e+00 : f32
        %66 = vector.broadcast %cst_39 : f32 to vector<8x32xf32>
        %67 = arith.addf %66, %65 : vector<8x32xf32>
        %68 = arith.divf %66, %67 : vector<8x32xf32>
        %69 = arith.mulf %60, %48 : vector<8x32xf32>
        %70 = arith.mulf %54, %62 : vector<8x32xf32>
        %71 = arith.addf %69, %70 : vector<8x32xf32>
        %72 = math.tanh %71 : vector<8x32xf32>
        %73 = arith.mulf %68, %72 : vector<8x32xf32>
        %74 = vector.extract_strided_slice %39 {offsets = [0, 64], sizes = [8, 32], strides = [1, 1]} : vector<8x128xf32> to vector<8x32xf32>
        %75 = tpu.concatenate %73, %74 in 1 : vector<8x32xf32>, vector<8x32xf32> -> vector<8x64xf32>
        %c1_40 = arith.constant 1 : index
        %c0_41 = arith.constant 0 : index
        %c0_42 = arith.constant 0 : index
        %76 = vector.load %arg7[%c1_40, %c0_41, %c0_42] : memref<2x64x128xf32, #tpu.memory_space<vmem>>, vector<1x64x128xf32>
        %77 = vector.shape_cast %76 : vector<1x64x128xf32> to vector<64x128xf32>
        %cst_43 = arith.constant dense<0.000000e+00> : vector<8x128xf32>
        %78 = tpu.matmul %75, %77, %cst_43 {dimension_numbers = #tpu.dot_dimension_numbers<[1], [0], [0], [1], [0, 0, 1, 1], [], []>} : vector<8x64xf32>, vector<64x128xf32>, vector<8x128xf32> -> vector<8x128xf32>
        %c1_44 = arith.constant 1 : index
        %c0_45 = arith.constant 0 : index
        %79 = vector.load %arg8[%c1_44, %c0_45] : memref<2x128xf32, #tpu.memory_space<vmem>>, vector<1x128xf32>
        %80 = vector.broadcast %79 : vector<1x128xf32> to vector<8x128xf32>
        %81 = arith.addf %78, %80 : vector<8x128xf32>
        %82 = vector.extract_strided_slice %39 {offsets = [0, 96], sizes = [8, 32], strides = [1, 1]} : vector<8x128xf32> to vector<8x32xf32>
        %83 = vector.extract_strided_slice %81 {offsets = [0, 0], sizes = [8, 32], strides = [1, 1]} : vector<8x128xf32> to vector<8x32xf32>
        %84 = arith.negf %83 : vector<8x32xf32>
        %85 = math.exp %84 : vector<8x32xf32>
        %cst_46 = arith.constant 1.000000e+00 : f32
        %86 = vector.broadcast %cst_46 : f32 to vector<8x32xf32>
        %87 = arith.addf %86, %85 : vector<8x32xf32>
        %88 = arith.divf %86, %87 : vector<8x32xf32>
        %89 = vector.extract_strided_slice %81 {offsets = [0, 32], sizes = [8, 32], strides = [1, 1]} : vector<8x128xf32> to vector<8x32xf32>
        %90 = arith.negf %89 : vector<8x32xf32>
        %91 = math.exp %90 : vector<8x32xf32>
        %cst_47 = arith.constant 1.000000e+00 : f32
        %92 = vector.broadcast %cst_47 : f32 to vector<8x32xf32>
        %93 = arith.addf %92, %91 : vector<8x32xf32>
        %94 = arith.divf %92, %93 : vector<8x32xf32>
        %95 = vector.extract_strided_slice %81 {offsets = [0, 64], sizes = [8, 32], strides = [1, 1]} : vector<8x128xf32> to vector<8x32xf32>
        %96 = math.tanh %95 : vector<8x32xf32>
        %97 = vector.extract_strided_slice %81 {offsets = [0, 96], sizes = [8, 32], strides = [1, 1]} : vector<8x128xf32> to vector<8x32xf32>
        %98 = arith.negf %97 : vector<8x32xf32>
        %99 = math.exp %98 : vector<8x32xf32>
        %cst_48 = arith.constant 1.000000e+00 : f32
        %100 = vector.broadcast %cst_48 : f32 to vector<8x32xf32>
        %101 = arith.addf %100, %99 : vector<8x32xf32>
        %102 = arith.divf %100, %101 : vector<8x32xf32>
        %103 = arith.mulf %94, %82 : vector<8x32xf32>
        %104 = arith.mulf %88, %96 : vector<8x32xf32>
        %105 = arith.addf %103, %104 : vector<8x32xf32>
        %106 = math.tanh %105 : vector<8x32xf32>
        %107 = arith.mulf %102, %106 : vector<8x32xf32>
        %108 = tpu.concatenate %73, %71, %107, %105 in 1 : vector<8x32xf32>, vector<8x32xf32>, vector<8x32xf32>, vector<8x32xf32> -> vector<8x128xf32>
        %c1_i32_49 = arith.constant 1 : i32
        %109 = arith.addi %33, %c1_i32_49 : i32
        %110 = arith.index_cast %109 : i32 to index
        %c0_50 = arith.constant 0 : index
        %c0_51 = arith.constant 0 : index
        %111 = vector.load %arg18[%110, %c0_50, %c0_51] : memref<27x8x128xf32, #tpu.memory_space<vmem>>, vector<1x8x128xf32>
        %112 = vector.shape_cast %111 : vector<1x8x128xf32> to vector<8x128xf32>
        %113 = vector.shape_cast %108 : vector<8x128xf32> to vector<1x8x128xf32>
        tpu.vector_store %arg18[%110, %c0_50, %c0_51], %113 {strides = array<i32>} : memref<27x8x128xf32, #tpu.memory_space<vmem>>, vector<1x8x128xf32>,
        %c0_52 = arith.constant 0 : index
        %c32 = arith.constant 32 : index
        %114 = vector.load %arg20[%c0_52, %c32] : memref<8x96xf32, #tpu.memory_space<vmem>>, vector<8x32xf32>
        tpu.vector_store %arg20[%c0_52, %c32], %107 {strides = array<i32>} : memref<8x96xf32, #tpu.memory_space<vmem>>, vector<8x32xf32>,
      } else {
      }
      %c2_i32 = arith.constant 2 : i32
      %23 = arith.cmpi eq, %14, %c2_i32 : i32
      %24 = arith.extui %23 : i1 to i32
      %c0_i32_24 = arith.constant 0 : i32
      %25 = arith.cmpi ne, %24, %c0_i32_24 : i32
      scf.if %25 {
        %c2 = arith.constant 2 : index
        %31 = arith.index_cast %12 : i32 to index
        %32 = memref.load %arg1[%c2, %31] : memref<11x10xi32, #tpu.memory_space<smem>>
        %c1_i32_27 = arith.constant 1 : i32
        %33 = arith.cmpi eq, %32, %c1_i32_27 : i32
        %34 = arith.extui %33 : i1 to i32
        %c0_i32_28 = arith.constant 0 : i32
        %35 = arith.cmpi ne, %34, %c0_i32_28 : i32
        scf.if %35 {
          %c8 = arith.constant 8 : index
          %202 = arith.index_cast %12 : i32 to index
          %203 = memref.load %arg1[%c8, %202] : memref<11x10xi32, #tpu.memory_space<smem>>
          %c9 = arith.constant 9 : index
          %204 = arith.index_cast %12 : i32 to index
          %205 = memref.load %arg1[%c9, %204] : memref<11x10xi32, #tpu.memory_space<smem>>
          %cst_76 = arith.constant 0.000000e+00 : f32
          %206 = vector.broadcast %cst_76 : f32 to vector<8x32xf32>
          %cst_77 = arith.constant 0.000000e+00 : f32
          %207 = vector.broadcast %cst_77 : f32 to vector<8x32xf32>
          %cst_78 = arith.constant 0.000000e+00 : f32
          %208 = vector.broadcast %cst_78 : f32 to vector<8x32xf32>
          %cst_79 = arith.constant 0.000000e+00 : f32
          %209 = vector.broadcast %cst_79 : f32 to vector<8x32xf32>
          %cst_80 = arith.constant 0.000000e+00 : f32
          %210 = vector.broadcast %cst_80 : f32 to vector<8x32xf32>
          %cst_81 = arith.constant 0.000000e+00 : f32
          %211 = vector.broadcast %cst_81 : f32 to vector<8x32xf32>
          %cst_82 = arith.constant 0.000000e+00 : f32
          %212 = vector.broadcast %cst_82 : f32 to vector<8x32xf32>
          %cst_83 = arith.constant 0.000000e+00 : f32
          %213 = vector.broadcast %cst_83 : f32 to vector<8x32xf32>
          %c0_i32_84 = arith.constant 0 : i32
          %214 = arith.addi %203, %c0_i32_84 : i32
          %c7_i32 = arith.constant 7 : i32
          %215 = arith.minsi %214, %c7_i32 : i32
          %216 = arith.index_cast %215 : i32 to index
          %c0_85 = arith.constant 0 : index
          %c0_86 = arith.constant 0 : index
          %217 = vector.load %arg19[%216, %c0_85, %c0_86] : memref<8x8x32xf32, #tpu.memory_space<vmem>>, vector<1x8x32xf32>
          %218 = vector.shape_cast %217 : vector<1x8x32xf32> to vector<8x32xf32>
          %219 = arith.index_cast %203 : i32 to index
          %c0_87 = arith.constant 0 : index
          %c0_88 = arith.constant 0 : index
          %220 = vector.load %arg19[%219, %c0_87, %c0_88] : memref<8x8x32xf32, #tpu.memory_space<vmem>>, vector<1x8x32xf32>
          %221 = vector.shape_cast %220 : vector<1x8x32xf32> to vector<8x32xf32>
          %c1_i32_89 = arith.constant 1 : i32
          %222 = arith.addi %205, %c1_i32_89 : i32
          %c0_i32_90 = arith.constant 0 : i32
          %223 = arith.cmpi sgt, %222, %c0_i32_90 : i32
          %224 = arith.extui %223 : i1 to i32
          %225 = arith.sitofp %224 : i32 to f32
          %226 = tpu.concatenate %218, %206, %221, %208 in 1 : vector<8x32xf32>, vector<8x32xf32>, vector<8x32xf32>, vector<8x32xf32> -> vector<8x128xf32>
          %c0_91 = arith.constant 0 : index
          %c0_92 = arith.constant 0 : index
          %c0_93 = arith.constant 0 : index
          %227 = vector.load %arg9[%c0_91, %c0_92, %c0_93] : memref<2x128x256xf32, #tpu.memory_space<vmem>>, vector<1x128x256xf32>
          %228 = vector.shape_cast %227 : vector<1x128x256xf32> to vector<128x256xf32>
          %cst_94 = arith.constant dense<0.000000e+00> : vector<8x256xf32>
          %229 = tpu.matmul %226, %228, %cst_94 {dimension_numbers = #tpu.dot_dimension_numbers<[1], [0], [0], [1], [0, 0, 1, 1], [], []>} : vector<8x128xf32>, vector<128x256xf32>, vector<8x256xf32> -> vector<8x256xf32>
          %c0_95 = arith.constant 0 : index
          %c0_96 = arith.constant 0 : index
          %230 = vector.load %arg10[%c0_95, %c0_96] : memref<2x256xf32, #tpu.memory_space<vmem>>, vector<1x256xf32>
          %231 = vector.broadcast %230 : vector<1x256xf32> to vector<8x256xf32>
          %232 = arith.addf %229, %231 : vector<8x256xf32>
          %233 = vector.extract_strided_slice %232 {offsets = [0, 0], sizes = [8, 128], strides = [1, 1]} : vector<8x256xf32> to vector<8x128xf32>
          %234 = vector.extract_strided_slice %233 {offsets = [0, 0], sizes = [8, 32], strides = [1, 1]} : vector<8x128xf32> to vector<8x32xf32>
          %235 = arith.negf %234 : vector<8x32xf32>
          %236 = math.exp %235 : vector<8x32xf32>
          %cst_97 = arith.constant 1.000000e+00 : f32
          %237 = vector.broadcast %cst_97 : f32 to vector<8x32xf32>
          %238 = arith.addf %237, %236 : vector<8x32xf32>
          %239 = arith.divf %237, %238 : vector<8x32xf32>
          %240 = vector.extract_strided_slice %233 {offsets = [0, 32], sizes = [8, 32], strides = [1, 1]} : vector<8x128xf32> to vector<8x32xf32>
          %241 = arith.negf %240 : vector<8x32xf32>
          %242 = math.exp %241 : vector<8x32xf32>
          %cst_98 = arith.constant 1.000000e+00 : f32
          %243 = vector.broadcast %cst_98 : f32 to vector<8x32xf32>
          %244 = arith.addf %243, %242 : vector<8x32xf32>
          %245 = arith.divf %243, %244 : vector<8x32xf32>
          %246 = vector.extract_strided_slice %233 {offsets = [0, 64], sizes = [8, 32], strides = [1, 1]} : vector<8x128xf32> to vector<8x32xf32>
          %247 = math.tanh %246 : vector<8x32xf32>
          %248 = vector.extract_strided_slice %233 {offsets = [0, 96], sizes = [8, 32], strides = [1, 1]} : vector<8x128xf32> to vector<8x32xf32>
          %249 = arith.negf %248 : vector<8x32xf32>
          %250 = math.exp %249 : vector<8x32xf32>
          %cst_99 = arith.constant 1.000000e+00 : f32
          %251 = vector.broadcast %cst_99 : f32 to vector<8x32xf32>
          %252 = arith.addf %251, %250 : vector<8x32xf32>
          %253 = arith.divf %251, %252 : vector<8x32xf32>
          %254 = arith.mulf %245, %210 : vector<8x32xf32>
          %255 = arith.mulf %239, %247 : vector<8x32xf32>
          %256 = arith.addf %254, %255 : vector<8x32xf32>
          %257 = math.tanh %256 : vector<8x32xf32>
          %258 = arith.mulf %253, %257 : vector<8x32xf32>
          %259 = vector.extract_strided_slice %232 {offsets = [0, 128], sizes = [8, 128], strides = [1, 1]} : vector<8x256xf32> to vector<8x128xf32>
          %260 = vector.extract_strided_slice %259 {offsets = [0, 0], sizes = [8, 32], strides = [1, 1]} : vector<8x128xf32> to vector<8x32xf32>
          %261 = arith.negf %260 : vector<8x32xf32>
          %262 = math.exp %261 : vector<8x32xf32>
          %cst_100 = arith.constant 1.000000e+00 : f32
          %263 = vector.broadcast %cst_100 : f32 to vector<8x32xf32>
          %264 = arith.addf %263, %262 : vector<8x32xf32>
          %265 = arith.divf %263, %264 : vector<8x32xf32>
          %266 = vector.extract_strided_slice %259 {offsets = [0, 32], sizes = [8, 32], strides = [1, 1]} : vector<8x128xf32> to vector<8x32xf32>
          %267 = arith.negf %266 : vector<8x32xf32>
          %268 = math.exp %267 : vector<8x32xf32>
          %cst_101 = arith.constant 1.000000e+00 : f32
          %269 = vector.broadcast %cst_101 : f32 to vector<8x32xf32>
          %270 = arith.addf %269, %268 : vector<8x32xf32>
          %271 = arith.divf %269, %270 : vector<8x32xf32>
          %272 = vector.extract_strided_slice %259 {offsets = [0, 64], sizes = [8, 32], strides = [1, 1]} : vector<8x128xf32> to vector<8x32xf32>
          %273 = math.tanh %272 : vector<8x32xf32>
          %274 = vector.extract_strided_slice %259 {offsets = [0, 96], sizes = [8, 32], strides = [1, 1]} : vector<8x128xf32> to vector<8x32xf32>
          %275 = arith.negf %274 : vector<8x32xf32>
          %276 = math.exp %275 : vector<8x32xf32>
          %cst_102 = arith.constant 1.000000e+00 : f32
          %277 = vector.broadcast %cst_102 : f32 to vector<8x32xf32>
          %278 = arith.addf %277, %276 : vector<8x32xf32>
          %279 = arith.divf %277, %278 : vector<8x32xf32>
          %280 = arith.mulf %271, %212 : vector<8x32xf32>
          %281 = arith.mulf %265, %273 : vector<8x32xf32>
          %282 = arith.addf %280, %281 : vector<8x32xf32>
          %283 = math.tanh %282 : vector<8x32xf32>
          %284 = arith.mulf %279, %283 : vector<8x32xf32>
          %285 = vector.broadcast %225 : f32 to vector<8x32xf32>
          %286 = arith.mulf %285, %258 : vector<8x32xf32>
          %cst_103 = arith.constant 1.000000e+00 : f32
          %287 = arith.subf %cst_103, %225 : f32
          %288 = vector.broadcast %287 : f32 to vector<8x32xf32>
          %289 = arith.mulf %288, %206 : vector<8x32xf32>
          %290 = arith.addf %286, %289 : vector<8x32xf32>
          %291 = vector.broadcast %225 : f32 to vector<8x32xf32>
          %292 = arith.mulf %291, %256 : vector<8x32xf32>
          %cst_104 = arith.constant 1.000000e+00 : f32
          %293 = arith.subf %cst_104, %225 : f32
          %294 = vector.broadcast %293 : f32 to vector<8x32xf32>
          %295 = arith.mulf %294, %210 : vector<8x32xf32>
          %296 = arith.addf %292, %295 : vector<8x32xf32>
          %297 = vector.broadcast %225 : f32 to vector<8x32xf32>
          %298 = arith.mulf %297, %284 : vector<8x32xf32>
          %cst_105 = arith.constant 1.000000e+00 : f32
          %299 = arith.subf %cst_105, %225 : f32
          %300 = vector.broadcast %299 : f32 to vector<8x32xf32>
          %301 = arith.mulf %300, %208 : vector<8x32xf32>
          %302 = arith.addf %298, %301 : vector<8x32xf32>
          %303 = vector.broadcast %225 : f32 to vector<8x32xf32>
          %304 = arith.mulf %303, %282 : vector<8x32xf32>
          %cst_106 = arith.constant 1.000000e+00 : f32
          %305 = arith.subf %cst_106, %225 : f32
          %306 = vector.broadcast %305 : f32 to vector<8x32xf32>
          %307 = arith.mulf %306, %212 : vector<8x32xf32>
          %308 = arith.addf %304, %307 : vector<8x32xf32>
          %309 = tpu.concatenate %290, %207, %302, %209 in 1 : vector<8x32xf32>, vector<8x32xf32>, vector<8x32xf32>, vector<8x32xf32> -> vector<8x128xf32>
          %c1_107 = arith.constant 1 : index
          %c0_108 = arith.constant 0 : index
          %c0_109 = arith.constant 0 : index
          %310 = vector.load %arg9[%c1_107, %c0_108, %c0_109] : memref<2x128x256xf32, #tpu.memory_space<vmem>>, vector<1x128x256xf32>
          %311 = vector.shape_cast %310 : vector<1x128x256xf32> to vector<128x256xf32>
          %cst_110 = arith.constant dense<0.000000e+00> : vector<8x256xf32>
          %312 = tpu.matmul %309, %311, %cst_110 {dimension_numbers = #tpu.dot_dimension_numbers<[1], [0], [0], [1], [0, 0, 1, 1], [], []>} : vector<8x128xf32>, vector<128x256xf32>, vector<8x256xf32> -> vector<8x256xf32>
          %c1_111 = arith.constant 1 : index
          %c0_112 = arith.constant 0 : index
          %313 = vector.load %arg10[%c1_111, %c0_112] : memref<2x256xf32, #tpu.memory_space<vmem>>, vector<1x256xf32>
          %314 = vector.broadcast %313 : vector<1x256xf32> to vector<8x256xf32>
          %315 = arith.addf %312, %314 : vector<8x256xf32>
          %316 = vector.extract_strided_slice %315 {offsets = [0, 0], sizes = [8, 128], strides = [1, 1]} : vector<8x256xf32> to vector<8x128xf32>
          %317 = vector.extract_strided_slice %316 {offsets = [0, 0], sizes = [8, 32], strides = [1, 1]} : vector<8x128xf32> to vector<8x32xf32>
          %318 = arith.negf %317 : vector<8x32xf32>
          %319 = math.exp %318 : vector<8x32xf32>
          %cst_113 = arith.constant 1.000000e+00 : f32
          %320 = vector.broadcast %cst_113 : f32 to vector<8x32xf32>
          %321 = arith.addf %320, %319 : vector<8x32xf32>
          %322 = arith.divf %320, %321 : vector<8x32xf32>
          %323 = vector.extract_strided_slice %316 {offsets = [0, 32], sizes = [8, 32], strides = [1, 1]} : vector<8x128xf32> to vector<8x32xf32>
          %324 = arith.negf %323 : vector<8x32xf32>
          %325 = math.exp %324 : vector<8x32xf32>
          %cst_114 = arith.constant 1.000000e+00 : f32
          %326 = vector.broadcast %cst_114 : f32 to vector<8x32xf32>
          %327 = arith.addf %326, %325 : vector<8x32xf32>
          %328 = arith.divf %326, %327 : vector<8x32xf32>
          %329 = vector.extract_strided_slice %316 {offsets = [0, 64], sizes = [8, 32], strides = [1, 1]} : vector<8x128xf32> to vector<8x32xf32>
          %330 = math.tanh %329 : vector<8x32xf32>
          %331 = vector.extract_strided_slice %316 {offsets = [0, 96], sizes = [8, 32], strides = [1, 1]} : vector<8x128xf32> to vector<8x32xf32>
          %332 = arith.negf %331 : vector<8x32xf32>
          %333 = math.exp %332 : vector<8x32xf32>
          %cst_115 = arith.constant 1.000000e+00 : f32
          %334 = vector.broadcast %cst_115 : f32 to vector<8x32xf32>
          %335 = arith.addf %334, %333 : vector<8x32xf32>
          %336 = arith.divf %334, %335 : vector<8x32xf32>
          %337 = arith.mulf %328, %211 : vector<8x32xf32>
          %338 = arith.mulf %322, %330 : vector<8x32xf32>
          %339 = arith.addf %337, %338 : vector<8x32xf32>
          %340 = math.tanh %339 : vector<8x32xf32>
          %341 = arith.mulf %336, %340 : vector<8x32xf32>
          %342 = vector.extract_strided_slice %315 {offsets = [0, 128], sizes = [8, 128], strides = [1, 1]} : vector<8x256xf32> to vector<8x128xf32>
          %343 = vector.extract_strided_slice %342 {offsets = [0, 0], sizes = [8, 32], strides = [1, 1]} : vector<8x128xf32> to vector<8x32xf32>
          %344 = arith.negf %343 : vector<8x32xf32>
          %345 = math.exp %344 : vector<8x32xf32>
          %cst_116 = arith.constant 1.000000e+00 : f32
          %346 = vector.broadcast %cst_116 : f32 to vector<8x32xf32>
          %347 = arith.addf %346, %345 : vector<8x32xf32>
          %348 = arith.divf %346, %347 : vector<8x32xf32>
          %349 = vector.extract_strided_slice %342 {offsets = [0, 32], sizes = [8, 32], strides = [1, 1]} : vector<8x128xf32> to vector<8x32xf32>
          %350 = arith.negf %349 : vector<8x32xf32>
          %351 = math.exp %350 : vector<8x32xf32>
          %cst_117 = arith.constant 1.000000e+00 : f32
          %352 = vector.broadcast %cst_117 : f32 to vector<8x32xf32>
          %353 = arith.addf %352, %351 : vector<8x32xf32>
          %354 = arith.divf %352, %353 : vector<8x32xf32>
          %355 = vector.extract_strided_slice %342 {offsets = [0, 64], sizes = [8, 32], strides = [1, 1]} : vector<8x128xf32> to vector<8x32xf32>
          %356 = math.tanh %355 : vector<8x32xf32>
          %357 = vector.extract_strided_slice %342 {offsets = [0, 96], sizes = [8, 32], strides = [1, 1]} : vector<8x128xf32> to vector<8x32xf32>
          %358 = arith.negf %357 : vector<8x32xf32>
          %359 = math.exp %358 : vector<8x32xf32>
          %cst_118 = arith.constant 1.000000e+00 : f32
          %360 = vector.broadcast %cst_118 : f32 to vector<8x32xf32>
          %361 = arith.addf %360, %359 : vector<8x32xf32>
          %362 = arith.divf %360, %361 : vector<8x32xf32>
          %363 = arith.mulf %354, %213 : vector<8x32xf32>
          %364 = arith.mulf %348, %356 : vector<8x32xf32>
          %365 = arith.addf %363, %364 : vector<8x32xf32>
          %366 = math.tanh %365 : vector<8x32xf32>
          %367 = arith.mulf %362, %366 : vector<8x32xf32>
          %368 = vector.broadcast %225 : f32 to vector<8x32xf32>
          %369 = arith.mulf %368, %341 : vector<8x32xf32>
          %cst_119 = arith.constant 1.000000e+00 : f32
          %370 = arith.subf %cst_119, %225 : f32
          %371 = vector.broadcast %370 : f32 to vector<8x32xf32>
          %372 = arith.mulf %371, %207 : vector<8x32xf32>
          %373 = arith.addf %369, %372 : vector<8x32xf32>
          %374 = vector.broadcast %225 : f32 to vector<8x32xf32>
          %375 = arith.mulf %374, %339 : vector<8x32xf32>
          %cst_120 = arith.constant 1.000000e+00 : f32
          %376 = arith.subf %cst_120, %225 : f32
          %377 = vector.broadcast %376 : f32 to vector<8x32xf32>
          %378 = arith.mulf %377, %211 : vector<8x32xf32>
          %379 = arith.addf %375, %378 : vector<8x32xf32>
          %380 = vector.broadcast %225 : f32 to vector<8x32xf32>
          %381 = arith.mulf %380, %367 : vector<8x32xf32>
          %cst_121 = arith.constant 1.000000e+00 : f32
          %382 = arith.subf %cst_121, %225 : f32
          %383 = vector.broadcast %382 : f32 to vector<8x32xf32>
          %384 = arith.mulf %383, %209 : vector<8x32xf32>
          %385 = arith.addf %381, %384 : vector<8x32xf32>
          %386 = vector.broadcast %225 : f32 to vector<8x32xf32>
          %387 = arith.mulf %386, %365 : vector<8x32xf32>
          %cst_122 = arith.constant 1.000000e+00 : f32
          %388 = arith.subf %cst_122, %225 : f32
          %389 = vector.broadcast %388 : f32 to vector<8x32xf32>
          %390 = arith.mulf %389, %213 : vector<8x32xf32>
          %391 = arith.addf %387, %390 : vector<8x32xf32>
          %c1_i32_123 = arith.constant 1 : i32
          %392 = arith.addi %203, %c1_i32_123 : i32
          %c7_i32_124 = arith.constant 7 : i32
          %393 = arith.minsi %392, %c7_i32_124 : i32
          %c1_i32_125 = arith.constant 1 : i32
          %394 = arith.addi %203, %c1_i32_125 : i32
          %395 = arith.addi %394, %205 : i32
          %c1_i32_126 = arith.constant 1 : i32
          %396 = arith.subi %395, %c1_i32_126 : i32
          %c0_i32_127 = arith.constant 0 : i32
          %c7_i32_128 = arith.constant 7 : i32
          %397 = arith.maxsi %c0_i32_127, %396 : i32
          %398 = arith.minsi %c7_i32_128, %397 : i32
          %399 = arith.index_cast %393 : i32 to index
          %c0_129 = arith.constant 0 : index
          %c0_130 = arith.constant 0 : index
          %400 = vector.load %arg19[%399, %c0_129, %c0_130] : memref<8x8x32xf32, #tpu.memory_space<vmem>>, vector<1x8x32xf32>
          %401 = vector.shape_cast %400 : vector<1x8x32xf32> to vector<8x32xf32>
          %402 = arith.index_cast %398 : i32 to index
          %c0_131 = arith.constant 0 : index
          %c0_132 = arith.constant 0 : index
          %403 = vector.load %arg19[%402, %c0_131, %c0_132] : memref<8x8x32xf32, #tpu.memory_space<vmem>>, vector<1x8x32xf32>
          %404 = vector.shape_cast %403 : vector<1x8x32xf32> to vector<8x32xf32>
          %c1_i32_133 = arith.constant 1 : i32
          %405 = arith.addi %205, %c1_i32_133 : i32
          %c1_i32_134 = arith.constant 1 : i32
          %406 = arith.cmpi sgt, %405, %c1_i32_134 : i32
          %407 = arith.extui %406 : i1 to i32
          %408 = arith.sitofp %407 : i32 to f32
          %409 = tpu.concatenate %401, %290, %404, %302 in 1 : vector<8x32xf32>, vector<8x32xf32>, vector<8x32xf32>, vector<8x32xf32> -> vector<8x128xf32>
          %c0_135 = arith.constant 0 : index
          %c0_136 = arith.constant 0 : index
          %c0_137 = arith.constant 0 : index
          %410 = vector.load %arg9[%c0_135, %c0_136, %c0_137] : memref<2x128x256xf32, #tpu.memory_space<vmem>>, vector<1x128x256xf32>
          %411 = vector.shape_cast %410 : vector<1x128x256xf32> to vector<128x256xf32>
          %cst_138 = arith.constant dense<0.000000e+00> : vector<8x256xf32>
          %412 = tpu.matmul %409, %411, %cst_138 {dimension_numbers = #tpu.dot_dimension_numbers<[1], [0], [0], [1], [0, 0, 1, 1], [], []>} : vector<8x128xf32>, vector<128x256xf32>, vector<8x256xf32> -> vector<8x256xf32>
          %c0_139 = arith.constant 0 : index
          %c0_140 = arith.constant 0 : index
          %413 = vector.load %arg10[%c0_139, %c0_140] : memref<2x256xf32, #tpu.memory_space<vmem>>, vector<1x256xf32>
          %414 = vector.broadcast %413 : vector<1x256xf32> to vector<8x256xf32>
          %415 = arith.addf %412, %414 : vector<8x256xf32>
          %416 = vector.extract_strided_slice %415 {offsets = [0, 0], sizes = [8, 128], strides = [1, 1]} : vector<8x256xf32> to vector<8x128xf32>
          %417 = vector.extract_strided_slice %416 {offsets = [0, 0], sizes = [8, 32], strides = [1, 1]} : vector<8x128xf32> to vector<8x32xf32>
          %418 = arith.negf %417 : vector<8x32xf32>
          %419 = math.exp %418 : vector<8x32xf32>
          %cst_141 = arith.constant 1.000000e+00 : f32
          %420 = vector.broadcast %cst_141 : f32 to vector<8x32xf32>
          %421 = arith.addf %420, %419 : vector<8x32xf32>
          %422 = arith.divf %420, %421 : vector<8x32xf32>
          %423 = vector.extract_strided_slice %416 {offsets = [0, 32], sizes = [8, 32], strides = [1, 1]} : vector<8x128xf32> to vector<8x32xf32>
          %424 = arith.negf %423 : vector<8x32xf32>
          %425 = math.exp %424 : vector<8x32xf32>
          %cst_142 = arith.constant 1.000000e+00 : f32
          %426 = vector.broadcast %cst_142 : f32 to vector<8x32xf32>
          %427 = arith.addf %426, %425 : vector<8x32xf32>
          %428 = arith.divf %426, %427 : vector<8x32xf32>
          %429 = vector.extract_strided_slice %416 {offsets = [0, 64], sizes = [8, 32], strides = [1, 1]} : vector<8x128xf32> to vector<8x32xf32>
          %430 = math.tanh %429 : vector<8x32xf32>
          %431 = vector.extract_strided_slice %416 {offsets = [0, 96], sizes = [8, 32], strides = [1, 1]} : vector<8x128xf32> to vector<8x32xf32>
          %432 = arith.negf %431 : vector<8x32xf32>
          %433 = math.exp %432 : vector<8x32xf32>
          %cst_143 = arith.constant 1.000000e+00 : f32
          %434 = vector.broadcast %cst_143 : f32 to vector<8x32xf32>
          %435 = arith.addf %434, %433 : vector<8x32xf32>
          %436 = arith.divf %434, %435 : vector<8x32xf32>
          %437 = arith.mulf %428, %296 : vector<8x32xf32>
          %438 = arith.mulf %422, %430 : vector<8x32xf32>
          %439 = arith.addf %437, %438 : vector<8x32xf32>
          %440 = math.tanh %439 : vector<8x32xf32>
          %441 = arith.mulf %436, %440 : vector<8x32xf32>
          %442 = vector.extract_strided_slice %415 {offsets = [0, 128], sizes = [8, 128], strides = [1, 1]} : vector<8x256xf32> to vector<8x128xf32>
          %443 = vector.extract_strided_slice %442 {offsets = [0, 0], sizes = [8, 32], strides = [1, 1]} : vector<8x128xf32> to vector<8x32xf32>
          %444 = arith.negf %443 : vector<8x32xf32>
          %445 = math.exp %444 : vector<8x32xf32>
          %cst_144 = arith.constant 1.000000e+00 : f32
          %446 = vector.broadcast %cst_144 : f32 to vector<8x32xf32>
          %447 = arith.addf %446, %445 : vector<8x32xf32>
          %448 = arith.divf %446, %447 : vector<8x32xf32>
          %449 = vector.extract_strided_slice %442 {offsets = [0, 32], sizes = [8, 32], strides = [1, 1]} : vector<8x128xf32> to vector<8x32xf32>
          %450 = arith.negf %449 : vector<8x32xf32>
          %451 = math.exp %450 : vector<8x32xf32>
          %cst_145 = arith.constant 1.000000e+00 : f32
          %452 = vector.broadcast %cst_145 : f32 to vector<8x32xf32>
          %453 = arith.addf %452, %451 : vector<8x32xf32>
          %454 = arith.divf %452, %453 : vector<8x32xf32>
          %455 = vector.extract_strided_slice %442 {offsets = [0, 64], sizes = [8, 32], strides = [1, 1]} : vector<8x128xf32> to vector<8x32xf32>
          %456 = math.tanh %455 : vector<8x32xf32>
          %457 = vector.extract_strided_slice %442 {offsets = [0, 96], sizes = [8, 32], strides = [1, 1]} : vector<8x128xf32> to vector<8x32xf32>
          %458 = arith.negf %457 : vector<8x32xf32>
          %459 = math.exp %458 : vector<8x32xf32>
          %cst_146 = arith.constant 1.000000e+00 : f32
          %460 = vector.broadcast %cst_146 : f32 to vector<8x32xf32>
          %461 = arith.addf %460, %459 : vector<8x32xf32>
          %462 = arith.divf %460, %461 : vector<8x32xf32>
          %463 = arith.mulf %454, %308 : vector<8x32xf32>
          %464 = arith.mulf %448, %456 : vector<8x32xf32>
          %465 = arith.addf %463, %464 : vector<8x32xf32>
          %466 = math.tanh %465 : vector<8x32xf32>
          %467 = arith.mulf %462, %466 : vector<8x32xf32>
          %468 = vector.broadcast %408 : f32 to vector<8x32xf32>
          %469 = arith.mulf %468, %441 : vector<8x32xf32>
          %cst_147 = arith.constant 1.000000e+00 : f32
          %470 = arith.subf %cst_147, %408 : f32
          %471 = vector.broadcast %470 : f32 to vector<8x32xf32>
          %472 = arith.mulf %471, %290 : vector<8x32xf32>
          %473 = arith.addf %469, %472 : vector<8x32xf32>
          %474 = vector.broadcast %408 : f32 to vector<8x32xf32>
          %475 = arith.mulf %474, %439 : vector<8x32xf32>
          %cst_148 = arith.constant 1.000000e+00 : f32
          %476 = arith.subf %cst_148, %408 : f32
          %477 = vector.broadcast %476 : f32 to vector<8x32xf32>
          %478 = arith.mulf %477, %296 : vector<8x32xf32>
          %479 = arith.addf %475, %478 : vector<8x32xf32>
          %480 = vector.broadcast %408 : f32 to vector<8x32xf32>
          %481 = arith.mulf %480, %467 : vector<8x32xf32>
          %cst_149 = arith.constant 1.000000e+00 : f32
          %482 = arith.subf %cst_149, %408 : f32
          %483 = vector.broadcast %482 : f32 to vector<8x32xf32>
          %484 = arith.mulf %483, %302 : vector<8x32xf32>
          %485 = arith.addf %481, %484 : vector<8x32xf32>
          %486 = vector.broadcast %408 : f32 to vector<8x32xf32>
          %487 = arith.mulf %486, %465 : vector<8x32xf32>
          %cst_150 = arith.constant 1.000000e+00 : f32
          %488 = arith.subf %cst_150, %408 : f32
          %489 = vector.broadcast %488 : f32 to vector<8x32xf32>
          %490 = arith.mulf %489, %308 : vector<8x32xf32>
          %491 = arith.addf %487, %490 : vector<8x32xf32>
          %492 = tpu.concatenate %473, %373, %485, %385 in 1 : vector<8x32xf32>, vector<8x32xf32>, vector<8x32xf32>, vector<8x32xf32> -> vector<8x128xf32>
          %c1_151 = arith.constant 1 : index
          %c0_152 = arith.constant 0 : index
          %c0_153 = arith.constant 0 : index
          %493 = vector.load %arg9[%c1_151, %c0_152, %c0_153] : memref<2x128x256xf32, #tpu.memory_space<vmem>>, vector<1x128x256xf32>
          %494 = vector.shape_cast %493 : vector<1x128x256xf32> to vector<128x256xf32>
          %cst_154 = arith.constant dense<0.000000e+00> : vector<8x256xf32>
          %495 = tpu.matmul %492, %494, %cst_154 {dimension_numbers = #tpu.dot_dimension_numbers<[1], [0], [0], [1], [0, 0, 1, 1], [], []>} : vector<8x128xf32>, vector<128x256xf32>, vector<8x256xf32> -> vector<8x256xf32>
          %c1_155 = arith.constant 1 : index
          %c0_156 = arith.constant 0 : index
          %496 = vector.load %arg10[%c1_155, %c0_156] : memref<2x256xf32, #tpu.memory_space<vmem>>, vector<1x256xf32>
          %497 = vector.broadcast %496 : vector<1x256xf32> to vector<8x256xf32>
          %498 = arith.addf %495, %497 : vector<8x256xf32>
          %499 = vector.extract_strided_slice %498 {offsets = [0, 0], sizes = [8, 128], strides = [1, 1]} : vector<8x256xf32> to vector<8x128xf32>
          %500 = vector.extract_strided_slice %499 {offsets = [0, 0], sizes = [8, 32], strides = [1, 1]} : vector<8x128xf32> to vector<8x32xf32>
          %501 = arith.negf %500 : vector<8x32xf32>
          %502 = math.exp %501 : vector<8x32xf32>
          %cst_157 = arith.constant 1.000000e+00 : f32
          %503 = vector.broadcast %cst_157 : f32 to vector<8x32xf32>
          %504 = arith.addf %503, %502 : vector<8x32xf32>
          %505 = arith.divf %503, %504 : vector<8x32xf32>
          %506 = vector.extract_strided_slice %499 {offsets = [0, 32], sizes = [8, 32], strides = [1, 1]} : vector<8x128xf32> to vector<8x32xf32>
          %507 = arith.negf %506 : vector<8x32xf32>
          %508 = math.exp %507 : vector<8x32xf32>
          %cst_158 = arith.constant 1.000000e+00 : f32
          %509 = vector.broadcast %cst_158 : f32 to vector<8x32xf32>
          %510 = arith.addf %509, %508 : vector<8x32xf32>
          %511 = arith.divf %509, %510 : vector<8x32xf32>
          %512 = vector.extract_strided_slice %499 {offsets = [0, 64], sizes = [8, 32], strides = [1, 1]} : vector<8x128xf32> to vector<8x32xf32>
          %513 = math.tanh %512 : vector<8x32xf32>
          %514 = vector.extract_strided_slice %499 {offsets = [0, 96], sizes = [8, 32], strides = [1, 1]} : vector<8x128xf32> to vector<8x32xf32>
          %515 = arith.negf %514 : vector<8x32xf32>
          %516 = math.exp %515 : vector<8x32xf32>
          %cst_159 = arith.constant 1.000000e+00 : f32
          %517 = vector.broadcast %cst_159 : f32 to vector<8x32xf32>
          %518 = arith.addf %517, %516 : vector<8x32xf32>
          %519 = arith.divf %517, %518 : vector<8x32xf32>
          %520 = arith.mulf %511, %379 : vector<8x32xf32>
          %521 = arith.mulf %505, %513 : vector<8x32xf32>
          %522 = arith.addf %520, %521 : vector<8x32xf32>
          %523 = math.tanh %522 : vector<8x32xf32>
          %524 = arith.mulf %519, %523 : vector<8x32xf32>
          %525 = vector.extract_strided_slice %498 {offsets = [0, 128], sizes = [8, 128], strides = [1, 1]} : vector<8x256xf32> to vector<8x128xf32>
          %526 = vector.extract_strided_slice %525 {offsets = [0, 0], sizes = [8, 32], strides = [1, 1]} : vector<8x128xf32> to vector<8x32xf32>
          %527 = arith.negf %526 : vector<8x32xf32>
          %528 = math.exp %527 : vector<8x32xf32>
          %cst_160 = arith.constant 1.000000e+00 : f32
          %529 = vector.broadcast %cst_160 : f32 to vector<8x32xf32>
          %530 = arith.addf %529, %528 : vector<8x32xf32>
          %531 = arith.divf %529, %530 : vector<8x32xf32>
          %532 = vector.extract_strided_slice %525 {offsets = [0, 32], sizes = [8, 32], strides = [1, 1]} : vector<8x128xf32> to vector<8x32xf32>
          %533 = arith.negf %532 : vector<8x32xf32>
          %534 = math.exp %533 : vector<8x32xf32>
          %cst_161 = arith.constant 1.000000e+00 : f32
          %535 = vector.broadcast %cst_161 : f32 to vector<8x32xf32>
          %536 = arith.addf %535, %534 : vector<8x32xf32>
          %537 = arith.divf %535, %536 : vector<8x32xf32>
          %538 = vector.extract_strided_slice %525 {offsets = [0, 64], sizes = [8, 32], strides = [1, 1]} : vector<8x128xf32> to vector<8x32xf32>
          %539 = math.tanh %538 : vector<8x32xf32>
          %540 = vector.extract_strided_slice %525 {offsets = [0, 96], sizes = [8, 32], strides = [1, 1]} : vector<8x128xf32> to vector<8x32xf32>
          %541 = arith.negf %540 : vector<8x32xf32>
          %542 = math.exp %541 : vector<8x32xf32>
          %cst_162 = arith.constant 1.000000e+00 : f32
          %543 = vector.broadcast %cst_162 : f32 to vector<8x32xf32>
          %544 = arith.addf %543, %542 : vector<8x32xf32>
          %545 = arith.divf %543, %544 : vector<8x32xf32>
          %546 = arith.mulf %537, %391 : vector<8x32xf32>
          %547 = arith.mulf %531, %539 : vector<8x32xf32>
          %548 = arith.addf %546, %547 : vector<8x32xf32>
          %549 = math.tanh %548 : vector<8x32xf32>
          %550 = arith.mulf %545, %549 : vector<8x32xf32>
          %551 = vector.broadcast %408 : f32 to vector<8x32xf32>
          %552 = arith.mulf %551, %524 : vector<8x32xf32>
          %cst_163 = arith.constant 1.000000e+00 : f32
          %553 = arith.subf %cst_163, %408 : f32
          %554 = vector.broadcast %553 : f32 to vector<8x32xf32>
          %555 = arith.mulf %554, %373 : vector<8x32xf32>
          %556 = arith.addf %552, %555 : vector<8x32xf32>
          %557 = vector.broadcast %408 : f32 to vector<8x32xf32>
          %558 = arith.mulf %557, %522 : vector<8x32xf32>
          %cst_164 = arith.constant 1.000000e+00 : f32
          %559 = arith.subf %cst_164, %408 : f32
          %560 = vector.broadcast %559 : f32 to vector<8x32xf32>
          %561 = arith.mulf %560, %379 : vector<8x32xf32>
          %562 = arith.addf %558, %561 : vector<8x32xf32>
          %563 = vector.broadcast %408 : f32 to vector<8x32xf32>
          %564 = arith.mulf %563, %550 : vector<8x32xf32>
          %cst_165 = arith.constant 1.000000e+00 : f32
          %565 = arith.subf %cst_165, %408 : f32
          %566 = vector.broadcast %565 : f32 to vector<8x32xf32>
          %567 = arith.mulf %566, %385 : vector<8x32xf32>
          %568 = arith.addf %564, %567 : vector<8x32xf32>
          %569 = vector.broadcast %408 : f32 to vector<8x32xf32>
          %570 = arith.mulf %569, %548 : vector<8x32xf32>
          %cst_166 = arith.constant 1.000000e+00 : f32
          %571 = arith.subf %cst_166, %408 : f32
          %572 = vector.broadcast %571 : f32 to vector<8x32xf32>
          %573 = arith.mulf %572, %391 : vector<8x32xf32>
          %574 = arith.addf %570, %573 : vector<8x32xf32>
          %c2_i32_167 = arith.constant 2 : i32
          %575 = arith.addi %203, %c2_i32_167 : i32
          %c7_i32_168 = arith.constant 7 : i32
          %576 = arith.minsi %575, %c7_i32_168 : i32
          %c1_i32_169 = arith.constant 1 : i32
          %577 = arith.addi %203, %c1_i32_169 : i32
          %578 = arith.addi %577, %205 : i32
          %c2_i32_170 = arith.constant 2 : i32
          %579 = arith.subi %578, %c2_i32_170 : i32
          %c0_i32_171 = arith.constant 0 : i32
          %c7_i32_172 = arith.constant 7 : i32
          %580 = arith.maxsi %c0_i32_171, %579 : i32
          %581 = arith.minsi %c7_i32_172, %580 : i32
          %582 = arith.index_cast %576 : i32 to index
          %c0_173 = arith.constant 0 : index
          %c0_174 = arith.constant 0 : index
          %583 = vector.load %arg19[%582, %c0_173, %c0_174] : memref<8x8x32xf32, #tpu.memory_space<vmem>>, vector<1x8x32xf32>
          %584 = vector.shape_cast %583 : vector<1x8x32xf32> to vector<8x32xf32>
          %585 = arith.index_cast %581 : i32 to index
          %c0_175 = arith.constant 0 : index
          %c0_176 = arith.constant 0 : index
          %586 = vector.load %arg19[%585, %c0_175, %c0_176] : memref<8x8x32xf32, #tpu.memory_space<vmem>>, vector<1x8x32xf32>
          %587 = vector.shape_cast %586 : vector<1x8x32xf32> to vector<8x32xf32>
          %c1_i32_177 = arith.constant 1 : i32
          %588 = arith.addi %205, %c1_i32_177 : i32
          %c2_i32_178 = arith.constant 2 : i32
          %589 = arith.cmpi sgt, %588, %c2_i32_178 : i32
          %590 = arith.extui %589 : i1 to i32
          %591 = arith.sitofp %590 : i32 to f32
          %592 = tpu.concatenate %584, %473, %587, %485 in 1 : vector<8x32xf32>, vector<8x32xf32>, vector<8x32xf32>, vector<8x32xf32> -> vector<8x128xf32>
          %c0_179 = arith.constant 0 : index
          %c0_180 = arith.constant 0 : index
          %c0_181 = arith.constant 0 : index
          %593 = vector.load %arg9[%c0_179, %c0_180, %c0_181] : memref<2x128x256xf32, #tpu.memory_space<vmem>>, vector<1x128x256xf32>
          %594 = vector.shape_cast %593 : vector<1x128x256xf32> to vector<128x256xf32>
          %cst_182 = arith.constant dense<0.000000e+00> : vector<8x256xf32>
          %595 = tpu.matmul %592, %594, %cst_182 {dimension_numbers = #tpu.dot_dimension_numbers<[1], [0], [0], [1], [0, 0, 1, 1], [], []>} : vector<8x128xf32>, vector<128x256xf32>, vector<8x256xf32> -> vector<8x256xf32>
          %c0_183 = arith.constant 0 : index
          %c0_184 = arith.constant 0 : index
          %596 = vector.load %arg10[%c0_183, %c0_184] : memref<2x256xf32, #tpu.memory_space<vmem>>, vector<1x256xf32>
          %597 = vector.broadcast %596 : vector<1x256xf32> to vector<8x256xf32>
          %598 = arith.addf %595, %597 : vector<8x256xf32>
          %599 = vector.extract_strided_slice %598 {offsets = [0, 0], sizes = [8, 128], strides = [1, 1]} : vector<8x256xf32> to vector<8x128xf32>
          %600 = vector.extract_strided_slice %599 {offsets = [0, 0], sizes = [8, 32], strides = [1, 1]} : vector<8x128xf32> to vector<8x32xf32>
          %601 = arith.negf %600 : vector<8x32xf32>
          %602 = math.exp %601 : vector<8x32xf32>
          %cst_185 = arith.constant 1.000000e+00 : f32
          %603 = vector.broadcast %cst_185 : f32 to vector<8x32xf32>
          %604 = arith.addf %603, %602 : vector<8x32xf32>
          %605 = arith.divf %603, %604 : vector<8x32xf32>
          %606 = vector.extract_strided_slice %599 {offsets = [0, 32], sizes = [8, 32], strides = [1, 1]} : vector<8x128xf32> to vector<8x32xf32>
          %607 = arith.negf %606 : vector<8x32xf32>
          %608 = math.exp %607 : vector<8x32xf32>
          %cst_186 = arith.constant 1.000000e+00 : f32
          %609 = vector.broadcast %cst_186 : f32 to vector<8x32xf32>
          %610 = arith.addf %609, %608 : vector<8x32xf32>
          %611 = arith.divf %609, %610 : vector<8x32xf32>
          %612 = vector.extract_strided_slice %599 {offsets = [0, 64], sizes = [8, 32], strides = [1, 1]} : vector<8x128xf32> to vector<8x32xf32>
          %613 = math.tanh %612 : vector<8x32xf32>
          %614 = vector.extract_strided_slice %599 {offsets = [0, 96], sizes = [8, 32], strides = [1, 1]} : vector<8x128xf32> to vector<8x32xf32>
          %615 = arith.negf %614 : vector<8x32xf32>
          %616 = math.exp %615 : vector<8x32xf32>
          %cst_187 = arith.constant 1.000000e+00 : f32
          %617 = vector.broadcast %cst_187 : f32 to vector<8x32xf32>
          %618 = arith.addf %617, %616 : vector<8x32xf32>
          %619 = arith.divf %617, %618 : vector<8x32xf32>
          %620 = arith.mulf %611, %479 : vector<8x32xf32>
          %621 = arith.mulf %605, %613 : vector<8x32xf32>
          %622 = arith.addf %620, %621 : vector<8x32xf32>
          %623 = math.tanh %622 : vector<8x32xf32>
          %624 = arith.mulf %619, %623 : vector<8x32xf32>
          %625 = vector.extract_strided_slice %598 {offsets = [0, 128], sizes = [8, 128], strides = [1, 1]} : vector<8x256xf32> to vector<8x128xf32>
          %626 = vector.extract_strided_slice %625 {offsets = [0, 0], sizes = [8, 32], strides = [1, 1]} : vector<8x128xf32> to vector<8x32xf32>
          %627 = arith.negf %626 : vector<8x32xf32>
          %628 = math.exp %627 : vector<8x32xf32>
          %cst_188 = arith.constant 1.000000e+00 : f32
          %629 = vector.broadcast %cst_188 : f32 to vector<8x32xf32>
          %630 = arith.addf %629, %628 : vector<8x32xf32>
          %631 = arith.divf %629, %630 : vector<8x32xf32>
          %632 = vector.extract_strided_slice %625 {offsets = [0, 32], sizes = [8, 32], strides = [1, 1]} : vector<8x128xf32> to vector<8x32xf32>
          %633 = arith.negf %632 : vector<8x32xf32>
          %634 = math.exp %633 : vector<8x32xf32>
          %cst_189 = arith.constant 1.000000e+00 : f32
          %635 = vector.broadcast %cst_189 : f32 to vector<8x32xf32>
          %636 = arith.addf %635, %634 : vector<8x32xf32>
          %637 = arith.divf %635, %636 : vector<8x32xf32>
          %638 = vector.extract_strided_slice %625 {offsets = [0, 64], sizes = [8, 32], strides = [1, 1]} : vector<8x128xf32> to vector<8x32xf32>
          %639 = math.tanh %638 : vector<8x32xf32>
          %640 = vector.extract_strided_slice %625 {offsets = [0, 96], sizes = [8, 32], strides = [1, 1]} : vector<8x128xf32> to vector<8x32xf32>
          %641 = arith.negf %640 : vector<8x32xf32>
          %642 = math.exp %641 : vector<8x32xf32>
          %cst_190 = arith.constant 1.000000e+00 : f32
          %643 = vector.broadcast %cst_190 : f32 to vector<8x32xf32>
          %644 = arith.addf %643, %642 : vector<8x32xf32>
          %645 = arith.divf %643, %644 : vector<8x32xf32>
          %646 = arith.mulf %637, %491 : vector<8x32xf32>
          %647 = arith.mulf %631, %639 : vector<8x32xf32>
          %648 = arith.addf %646, %647 : vector<8x32xf32>
          %649 = math.tanh %648 : vector<8x32xf32>
          %650 = arith.mulf %645, %649 : vector<8x32xf32>
          %651 = vector.broadcast %591 : f32 to vector<8x32xf32>
          %652 = arith.mulf %651, %624 : vector<8x32xf32>
          %cst_191 = arith.constant 1.000000e+00 : f32
          %653 = arith.subf %cst_191, %591 : f32
          %654 = vector.broadcast %653 : f32 to vector<8x32xf32>
          %655 = arith.mulf %654, %473 : vector<8x32xf32>
          %656 = arith.addf %652, %655 : vector<8x32xf32>
          %657 = vector.broadcast %591 : f32 to vector<8x32xf32>
          %658 = arith.mulf %657, %622 : vector<8x32xf32>
          %cst_192 = arith.constant 1.000000e+00 : f32
          %659 = arith.subf %cst_192, %591 : f32
          %660 = vector.broadcast %659 : f32 to vector<8x32xf32>
          %661 = arith.mulf %660, %479 : vector<8x32xf32>
          %662 = arith.addf %658, %661 : vector<8x32xf32>
          %663 = vector.broadcast %591 : f32 to vector<8x32xf32>
          %664 = arith.mulf %663, %650 : vector<8x32xf32>
          %cst_193 = arith.constant 1.000000e+00 : f32
          %665 = arith.subf %cst_193, %591 : f32
          %666 = vector.broadcast %665 : f32 to vector<8x32xf32>
          %667 = arith.mulf %666, %485 : vector<8x32xf32>
          %668 = arith.addf %664, %667 : vector<8x32xf32>
          %669 = vector.broadcast %591 : f32 to vector<8x32xf32>
          %670 = arith.mulf %669, %648 : vector<8x32xf32>
          %cst_194 = arith.constant 1.000000e+00 : f32
          %671 = arith.subf %cst_194, %591 : f32
          %672 = vector.broadcast %671 : f32 to vector<8x32xf32>
          %673 = arith.mulf %672, %491 : vector<8x32xf32>
          %674 = arith.addf %670, %673 : vector<8x32xf32>
          %675 = tpu.concatenate %656, %556, %668, %568 in 1 : vector<8x32xf32>, vector<8x32xf32>, vector<8x32xf32>, vector<8x32xf32> -> vector<8x128xf32>
          %c1_195 = arith.constant 1 : index
          %c0_196 = arith.constant 0 : index
          %c0_197 = arith.constant 0 : index
          %676 = vector.load %arg9[%c1_195, %c0_196, %c0_197] : memref<2x128x256xf32, #tpu.memory_space<vmem>>, vector<1x128x256xf32>
          %677 = vector.shape_cast %676 : vector<1x128x256xf32> to vector<128x256xf32>
          %cst_198 = arith.constant dense<0.000000e+00> : vector<8x256xf32>
          %678 = tpu.matmul %675, %677, %cst_198 {dimension_numbers = #tpu.dot_dimension_numbers<[1], [0], [0], [1], [0, 0, 1, 1], [], []>} : vector<8x128xf32>, vector<128x256xf32>, vector<8x256xf32> -> vector<8x256xf32>
          %c1_199 = arith.constant 1 : index
          %c0_200 = arith.constant 0 : index
          %679 = vector.load %arg10[%c1_199, %c0_200] : memref<2x256xf32, #tpu.memory_space<vmem>>, vector<1x256xf32>
          %680 = vector.broadcast %679 : vector<1x256xf32> to vector<8x256xf32>
          %681 = arith.addf %678, %680 : vector<8x256xf32>
          %682 = vector.extract_strided_slice %681 {offsets = [0, 0], sizes = [8, 128], strides = [1, 1]} : vector<8x256xf32> to vector<8x128xf32>
          %683 = vector.extract_strided_slice %682 {offsets = [0, 0], sizes = [8, 32], strides = [1, 1]} : vector<8x128xf32> to vector<8x32xf32>
          %684 = arith.negf %683 : vector<8x32xf32>
          %685 = math.exp %684 : vector<8x32xf32>
          %cst_201 = arith.constant 1.000000e+00 : f32
          %686 = vector.broadcast %cst_201 : f32 to vector<8x32xf32>
          %687 = arith.addf %686, %685 : vector<8x32xf32>
          %688 = arith.divf %686, %687 : vector<8x32xf32>
          %689 = vector.extract_strided_slice %682 {offsets = [0, 32], sizes = [8, 32], strides = [1, 1]} : vector<8x128xf32> to vector<8x32xf32>
          %690 = arith.negf %689 : vector<8x32xf32>
          %691 = math.exp %690 : vector<8x32xf32>
          %cst_202 = arith.constant 1.000000e+00 : f32
          %692 = vector.broadcast %cst_202 : f32 to vector<8x32xf32>
          %693 = arith.addf %692, %691 : vector<8x32xf32>
          %694 = arith.divf %692, %693 : vector<8x32xf32>
          %695 = vector.extract_strided_slice %682 {offsets = [0, 64], sizes = [8, 32], strides = [1, 1]} : vector<8x128xf32> to vector<8x32xf32>
          %696 = math.tanh %695 : vector<8x32xf32>
          %697 = vector.extract_strided_slice %682 {offsets = [0, 96], sizes = [8, 32], strides = [1, 1]} : vector<8x128xf32> to vector<8x32xf32>
          %698 = arith.negf %697 : vector<8x32xf32>
          %699 = math.exp %698 : vector<8x32xf32>
          %cst_203 = arith.constant 1.000000e+00 : f32
          %700 = vector.broadcast %cst_203 : f32 to vector<8x32xf32>
          %701 = arith.addf %700, %699 : vector<8x32xf32>
          %702 = arith.divf %700, %701 : vector<8x32xf32>
          %703 = arith.mulf %694, %562 : vector<8x32xf32>
          %704 = arith.mulf %688, %696 : vector<8x32xf32>
          %705 = arith.addf %703, %704 : vector<8x32xf32>
          %706 = math.tanh %705 : vector<8x32xf32>
          %707 = arith.mulf %702, %706 : vector<8x32xf32>
          %708 = vector.extract_strided_slice %681 {offsets = [0, 128], sizes = [8, 128], strides = [1, 1]} : vector<8x256xf32> to vector<8x128xf32>
          %709 = vector.extract_strided_slice %708 {offsets = [0, 0], sizes = [8, 32], strides = [1, 1]} : vector<8x128xf32> to vector<8x32xf32>
          %710 = arith.negf %709 : vector<8x32xf32>
          %711 = math.exp %710 : vector<8x32xf32>
          %cst_204 = arith.constant 1.000000e+00 : f32
          %712 = vector.broadcast %cst_204 : f32 to vector<8x32xf32>
          %713 = arith.addf %712, %711 : vector<8x32xf32>
          %714 = arith.divf %712, %713 : vector<8x32xf32>
          %715 = vector.extract_strided_slice %708 {offsets = [0, 32], sizes = [8, 32], strides = [1, 1]} : vector<8x128xf32> to vector<8x32xf32>
          %716 = arith.negf %715 : vector<8x32xf32>
          %717 = math.exp %716 : vector<8x32xf32>
          %cst_205 = arith.constant 1.000000e+00 : f32
          %718 = vector.broadcast %cst_205 : f32 to vector<8x32xf32>
          %719 = arith.addf %718, %717 : vector<8x32xf32>
          %720 = arith.divf %718, %719 : vector<8x32xf32>
          %721 = vector.extract_strided_slice %708 {offsets = [0, 64], sizes = [8, 32], strides = [1, 1]} : vector<8x128xf32> to vector<8x32xf32>
          %722 = math.tanh %721 : vector<8x32xf32>
          %723 = vector.extract_strided_slice %708 {offsets = [0, 96], sizes = [8, 32], strides = [1, 1]} : vector<8x128xf32> to vector<8x32xf32>
          %724 = arith.negf %723 : vector<8x32xf32>
          %725 = math.exp %724 : vector<8x32xf32>
          %cst_206 = arith.constant 1.000000e+00 : f32
          %726 = vector.broadcast %cst_206 : f32 to vector<8x32xf32>
          %727 = arith.addf %726, %725 : vector<8x32xf32>
          %728 = arith.divf %726, %727 : vector<8x32xf32>
          %729 = arith.mulf %720, %574 : vector<8x32xf32>
          %730 = arith.mulf %714, %722 : vector<8x32xf32>
          %731 = arith.addf %729, %730 : vector<8x32xf32>
          %732 = math.tanh %731 : vector<8x32xf32>
          %733 = arith.mulf %728, %732 : vector<8x32xf32>
          %734 = vector.broadcast %591 : f32 to vector<8x32xf32>
          %735 = arith.mulf %734, %707 : vector<8x32xf32>
          %cst_207 = arith.constant 1.000000e+00 : f32
          %736 = arith.subf %cst_207, %591 : f32
          %737 = vector.broadcast %736 : f32 to vector<8x32xf32>
          %738 = arith.mulf %737, %556 : vector<8x32xf32>
          %739 = arith.addf %735, %738 : vector<8x32xf32>
          %740 = vector.broadcast %591 : f32 to vector<8x32xf32>
          %741 = arith.mulf %740, %705 : vector<8x32xf32>
          %cst_208 = arith.constant 1.000000e+00 : f32
          %742 = arith.subf %cst_208, %591 : f32
          %743 = vector.broadcast %742 : f32 to vector<8x32xf32>
          %744 = arith.mulf %743, %562 : vector<8x32xf32>
          %745 = arith.addf %741, %744 : vector<8x32xf32>
          %746 = vector.broadcast %591 : f32 to vector<8x32xf32>
          %747 = arith.mulf %746, %733 : vector<8x32xf32>
          %cst_209 = arith.constant 1.000000e+00 : f32
          %748 = arith.subf %cst_209, %591 : f32
          %749 = vector.broadcast %748 : f32 to vector<8x32xf32>
          %750 = arith.mulf %749, %568 : vector<8x32xf32>
          %751 = arith.addf %747, %750 : vector<8x32xf32>
          %752 = vector.broadcast %591 : f32 to vector<8x32xf32>
          %753 = arith.mulf %752, %731 : vector<8x32xf32>
          %cst_210 = arith.constant 1.000000e+00 : f32
          %754 = arith.subf %cst_210, %591 : f32
          %755 = vector.broadcast %754 : f32 to vector<8x32xf32>
          %756 = arith.mulf %755, %574 : vector<8x32xf32>
          %757 = arith.addf %753, %756 : vector<8x32xf32>
          %c3_i32 = arith.constant 3 : i32
          %758 = arith.addi %203, %c3_i32 : i32
          %c7_i32_211 = arith.constant 7 : i32
          %759 = arith.minsi %758, %c7_i32_211 : i32
          %c1_i32_212 = arith.constant 1 : i32
          %760 = arith.addi %203, %c1_i32_212 : i32
          %761 = arith.addi %760, %205 : i32
          %c3_i32_213 = arith.constant 3 : i32
          %762 = arith.subi %761, %c3_i32_213 : i32
          %c0_i32_214 = arith.constant 0 : i32
          %c7_i32_215 = arith.constant 7 : i32
          %763 = arith.maxsi %c0_i32_214, %762 : i32
          %764 = arith.minsi %c7_i32_215, %763 : i32
          %765 = arith.index_cast %759 : i32 to index
          %c0_216 = arith.constant 0 : index
          %c0_217 = arith.constant 0 : index
          %766 = vector.load %arg19[%765, %c0_216, %c0_217] : memref<8x8x32xf32, #tpu.memory_space<vmem>>, vector<1x8x32xf32>
          %767 = vector.shape_cast %766 : vector<1x8x32xf32> to vector<8x32xf32>
          %768 = arith.index_cast %764 : i32 to index
          %c0_218 = arith.constant 0 : index
          %c0_219 = arith.constant 0 : index
          %769 = vector.load %arg19[%768, %c0_218, %c0_219] : memref<8x8x32xf32, #tpu.memory_space<vmem>>, vector<1x8x32xf32>
          %770 = vector.shape_cast %769 : vector<1x8x32xf32> to vector<8x32xf32>
          %c1_i32_220 = arith.constant 1 : i32
          %771 = arith.addi %205, %c1_i32_220 : i32
          %c3_i32_221 = arith.constant 3 : i32
          %772 = arith.cmpi sgt, %771, %c3_i32_221 : i32
          %773 = arith.extui %772 : i1 to i32
          %774 = arith.sitofp %773 : i32 to f32
          %775 = tpu.concatenate %767, %656, %770, %668 in 1 : vector<8x32xf32>, vector<8x32xf32>, vector<8x32xf32>, vector<8x32xf32> -> vector<8x128xf32>
          %c0_222 = arith.constant 0 : index
          %c0_223 = arith.constant 0 : index
          %c0_224 = arith.constant 0 : index
          %776 = vector.load %arg9[%c0_222, %c0_223, %c0_224] : memref<2x128x256xf32, #tpu.memory_space<vmem>>, vector<1x128x256xf32>
          %777 = vector.shape_cast %776 : vector<1x128x256xf32> to vector<128x256xf32>
          %cst_225 = arith.constant dense<0.000000e+00> : vector<8x256xf32>
          %778 = tpu.matmul %775, %777, %cst_225 {dimension_numbers = #tpu.dot_dimension_numbers<[1], [0], [0], [1], [0, 0, 1, 1], [], []>} : vector<8x128xf32>, vector<128x256xf32>, vector<8x256xf32> -> vector<8x256xf32>
          %c0_226 = arith.constant 0 : index
          %c0_227 = arith.constant 0 : index
          %779 = vector.load %arg10[%c0_226, %c0_227] : memref<2x256xf32, #tpu.memory_space<vmem>>, vector<1x256xf32>
          %780 = vector.broadcast %779 : vector<1x256xf32> to vector<8x256xf32>
          %781 = arith.addf %778, %780 : vector<8x256xf32>
          %782 = vector.extract_strided_slice %781 {offsets = [0, 0], sizes = [8, 128], strides = [1, 1]} : vector<8x256xf32> to vector<8x128xf32>
          %783 = vector.extract_strided_slice %782 {offsets = [0, 0], sizes = [8, 32], strides = [1, 1]} : vector<8x128xf32> to vector<8x32xf32>
          %784 = arith.negf %783 : vector<8x32xf32>
          %785 = math.exp %784 : vector<8x32xf32>
          %cst_228 = arith.constant 1.000000e+00 : f32
          %786 = vector.broadcast %cst_228 : f32 to vector<8x32xf32>
          %787 = arith.addf %786, %785 : vector<8x32xf32>
          %788 = arith.divf %786, %787 : vector<8x32xf32>
          %789 = vector.extract_strided_slice %782 {offsets = [0, 32], sizes = [8, 32], strides = [1, 1]} : vector<8x128xf32> to vector<8x32xf32>
          %790 = arith.negf %789 : vector<8x32xf32>
          %791 = math.exp %790 : vector<8x32xf32>
          %cst_229 = arith.constant 1.000000e+00 : f32
          %792 = vector.broadcast %cst_229 : f32 to vector<8x32xf32>
          %793 = arith.addf %792, %791 : vector<8x32xf32>
          %794 = arith.divf %792, %793 : vector<8x32xf32>
          %795 = vector.extract_strided_slice %782 {offsets = [0, 64], sizes = [8, 32], strides = [1, 1]} : vector<8x128xf32> to vector<8x32xf32>
          %796 = math.tanh %795 : vector<8x32xf32>
          %797 = vector.extract_strided_slice %782 {offsets = [0, 96], sizes = [8, 32], strides = [1, 1]} : vector<8x128xf32> to vector<8x32xf32>
          %798 = arith.negf %797 : vector<8x32xf32>
          %799 = math.exp %798 : vector<8x32xf32>
          %cst_230 = arith.constant 1.000000e+00 : f32
          %800 = vector.broadcast %cst_230 : f32 to vector<8x32xf32>
          %801 = arith.addf %800, %799 : vector<8x32xf32>
          %802 = arith.divf %800, %801 : vector<8x32xf32>
          %803 = arith.mulf %794, %662 : vector<8x32xf32>
          %804 = arith.mulf %788, %796 : vector<8x32xf32>
          %805 = arith.addf %803, %804 : vector<8x32xf32>
          %806 = math.tanh %805 : vector<8x32xf32>
          %807 = arith.mulf %802, %806 : vector<8x32xf32>
          %808 = vector.extract_strided_slice %781 {offsets = [0, 128], sizes = [8, 128], strides = [1, 1]} : vector<8x256xf32> to vector<8x128xf32>
          %809 = vector.extract_strided_slice %808 {offsets = [0, 0], sizes = [8, 32], strides = [1, 1]} : vector<8x128xf32> to vector<8x32xf32>
          %810 = arith.negf %809 : vector<8x32xf32>
          %811 = math.exp %810 : vector<8x32xf32>
          %cst_231 = arith.constant 1.000000e+00 : f32
          %812 = vector.broadcast %cst_231 : f32 to vector<8x32xf32>
          %813 = arith.addf %812, %811 : vector<8x32xf32>
          %814 = arith.divf %812, %813 : vector<8x32xf32>
          %815 = vector.extract_strided_slice %808 {offsets = [0, 32], sizes = [8, 32], strides = [1, 1]} : vector<8x128xf32> to vector<8x32xf32>
          %816 = arith.negf %815 : vector<8x32xf32>
          %817 = math.exp %816 : vector<8x32xf32>
          %cst_232 = arith.constant 1.000000e+00 : f32
          %818 = vector.broadcast %cst_232 : f32 to vector<8x32xf32>
          %819 = arith.addf %818, %817 : vector<8x32xf32>
          %820 = arith.divf %818, %819 : vector<8x32xf32>
          %821 = vector.extract_strided_slice %808 {offsets = [0, 64], sizes = [8, 32], strides = [1, 1]} : vector<8x128xf32> to vector<8x32xf32>
          %822 = math.tanh %821 : vector<8x32xf32>
          %823 = vector.extract_strided_slice %808 {offsets = [0, 96], sizes = [8, 32], strides = [1, 1]} : vector<8x128xf32> to vector<8x32xf32>
          %824 = arith.negf %823 : vector<8x32xf32>
          %825 = math.exp %824 : vector<8x32xf32>
          %cst_233 = arith.constant 1.000000e+00 : f32
          %826 = vector.broadcast %cst_233 : f32 to vector<8x32xf32>
          %827 = arith.addf %826, %825 : vector<8x32xf32>
          %828 = arith.divf %826, %827 : vector<8x32xf32>
          %829 = arith.mulf %820, %674 : vector<8x32xf32>
          %830 = arith.mulf %814, %822 : vector<8x32xf32>
          %831 = arith.addf %829, %830 : vector<8x32xf32>
          %832 = math.tanh %831 : vector<8x32xf32>
          %833 = arith.mulf %828, %832 : vector<8x32xf32>
          %834 = vector.broadcast %774 : f32 to vector<8x32xf32>
          %835 = arith.mulf %834, %807 : vector<8x32xf32>
          %cst_234 = arith.constant 1.000000e+00 : f32
          %836 = arith.subf %cst_234, %774 : f32
          %837 = vector.broadcast %836 : f32 to vector<8x32xf32>
          %838 = arith.mulf %837, %656 : vector<8x32xf32>
          %839 = arith.addf %835, %838 : vector<8x32xf32>
          %840 = vector.broadcast %774 : f32 to vector<8x32xf32>
          %841 = arith.mulf %840, %805 : vector<8x32xf32>
          %cst_235 = arith.constant 1.000000e+00 : f32
          %842 = arith.subf %cst_235, %774 : f32
          %843 = vector.broadcast %842 : f32 to vector<8x32xf32>
          %844 = arith.mulf %843, %662 : vector<8x32xf32>
          %845 = arith.addf %841, %844 : vector<8x32xf32>
          %846 = vector.broadcast %774 : f32 to vector<8x32xf32>
          %847 = arith.mulf %846, %833 : vector<8x32xf32>
          %cst_236 = arith.constant 1.000000e+00 : f32
          %848 = arith.subf %cst_236, %774 : f32
          %849 = vector.broadcast %848 : f32 to vector<8x32xf32>
          %850 = arith.mulf %849, %668 : vector<8x32xf32>
          %851 = arith.addf %847, %850 : vector<8x32xf32>
          %852 = vector.broadcast %774 : f32 to vector<8x32xf32>
          %853 = arith.mulf %852, %831 : vector<8x32xf32>
          %cst_237 = arith.constant 1.000000e+00 : f32
          %854 = arith.subf %cst_237, %774 : f32
          %855 = vector.broadcast %854 : f32 to vector<8x32xf32>
          %856 = arith.mulf %855, %674 : vector<8x32xf32>
          %857 = arith.addf %853, %856 : vector<8x32xf32>
          %858 = tpu.concatenate %839, %739, %851, %751 in 1 : vector<8x32xf32>, vector<8x32xf32>, vector<8x32xf32>, vector<8x32xf32> -> vector<8x128xf32>
          %c1_238 = arith.constant 1 : index
          %c0_239 = arith.constant 0 : index
          %c0_240 = arith.constant 0 : index
          %859 = vector.load %arg9[%c1_238, %c0_239, %c0_240] : memref<2x128x256xf32, #tpu.memory_space<vmem>>, vector<1x128x256xf32>
          %860 = vector.shape_cast %859 : vector<1x128x256xf32> to vector<128x256xf32>
          %cst_241 = arith.constant dense<0.000000e+00> : vector<8x256xf32>
          %861 = tpu.matmul %858, %860, %cst_241 {dimension_numbers = #tpu.dot_dimension_numbers<[1], [0], [0], [1], [0, 0, 1, 1], [], []>} : vector<8x128xf32>, vector<128x256xf32>, vector<8x256xf32> -> vector<8x256xf32>
          %c1_242 = arith.constant 1 : index
          %c0_243 = arith.constant 0 : index
          %862 = vector.load %arg10[%c1_242, %c0_243] : memref<2x256xf32, #tpu.memory_space<vmem>>, vector<1x256xf32>
          %863 = vector.broadcast %862 : vector<1x256xf32> to vector<8x256xf32>
          %864 = arith.addf %861, %863 : vector<8x256xf32>
          %865 = vector.extract_strided_slice %864 {offsets = [0, 0], sizes = [8, 128], strides = [1, 1]} : vector<8x256xf32> to vector<8x128xf32>
          %866 = vector.extract_strided_slice %865 {offsets = [0, 0], sizes = [8, 32], strides = [1, 1]} : vector<8x128xf32> to vector<8x32xf32>
          %867 = arith.negf %866 : vector<8x32xf32>
          %868 = math.exp %867 : vector<8x32xf32>
          %cst_244 = arith.constant 1.000000e+00 : f32
          %869 = vector.broadcast %cst_244 : f32 to vector<8x32xf32>
          %870 = arith.addf %869, %868 : vector<8x32xf32>
          %871 = arith.divf %869, %870 : vector<8x32xf32>
          %872 = vector.extract_strided_slice %865 {offsets = [0, 32], sizes = [8, 32], strides = [1, 1]} : vector<8x128xf32> to vector<8x32xf32>
          %873 = arith.negf %872 : vector<8x32xf32>
          %874 = math.exp %873 : vector<8x32xf32>
          %cst_245 = arith.constant 1.000000e+00 : f32
          %875 = vector.broadcast %cst_245 : f32 to vector<8x32xf32>
          %876 = arith.addf %875, %874 : vector<8x32xf32>
          %877 = arith.divf %875, %876 : vector<8x32xf32>
          %878 = vector.extract_strided_slice %865 {offsets = [0, 64], sizes = [8, 32], strides = [1, 1]} : vector<8x128xf32> to vector<8x32xf32>
          %879 = math.tanh %878 : vector<8x32xf32>
          %880 = vector.extract_strided_slice %865 {offsets = [0, 96], sizes = [8, 32], strides = [1, 1]} : vector<8x128xf32> to vector<8x32xf32>
          %881 = arith.negf %880 : vector<8x32xf32>
          %882 = math.exp %881 : vector<8x32xf32>
          %cst_246 = arith.constant 1.000000e+00 : f32
          %883 = vector.broadcast %cst_246 : f32 to vector<8x32xf32>
          %884 = arith.addf %883, %882 : vector<8x32xf32>
          %885 = arith.divf %883, %884 : vector<8x32xf32>
          %886 = arith.mulf %877, %745 : vector<8x32xf32>
          %887 = arith.mulf %871, %879 : vector<8x32xf32>
          %888 = arith.addf %886, %887 : vector<8x32xf32>
          %889 = math.tanh %888 : vector<8x32xf32>
          %890 = arith.mulf %885, %889 : vector<8x32xf32>
          %891 = vector.extract_strided_slice %864 {offsets = [0, 128], sizes = [8, 128], strides = [1, 1]} : vector<8x256xf32> to vector<8x128xf32>
          %892 = vector.extract_strided_slice %891 {offsets = [0, 0], sizes = [8, 32], strides = [1, 1]} : vector<8x128xf32> to vector<8x32xf32>
          %893 = arith.negf %892 : vector<8x32xf32>
          %894 = math.exp %893 : vector<8x32xf32>
          %cst_247 = arith.constant 1.000000e+00 : f32
          %895 = vector.broadcast %cst_247 : f32 to vector<8x32xf32>
          %896 = arith.addf %895, %894 : vector<8x32xf32>
          %897 = arith.divf %895, %896 : vector<8x32xf32>
          %898 = vector.extract_strided_slice %891 {offsets = [0, 32], sizes = [8, 32], strides = [1, 1]} : vector<8x128xf32> to vector<8x32xf32>
          %899 = arith.negf %898 : vector<8x32xf32>
          %900 = math.exp %899 : vector<8x32xf32>
          %cst_248 = arith.constant 1.000000e+00 : f32
          %901 = vector.broadcast %cst_248 : f32 to vector<8x32xf32>
          %902 = arith.addf %901, %900 : vector<8x32xf32>
          %903 = arith.divf %901, %902 : vector<8x32xf32>
          %904 = vector.extract_strided_slice %891 {offsets = [0, 64], sizes = [8, 32], strides = [1, 1]} : vector<8x128xf32> to vector<8x32xf32>
          %905 = math.tanh %904 : vector<8x32xf32>
          %906 = vector.extract_strided_slice %891 {offsets = [0, 96], sizes = [8, 32], strides = [1, 1]} : vector<8x128xf32> to vector<8x32xf32>
          %907 = arith.negf %906 : vector<8x32xf32>
          %908 = math.exp %907 : vector<8x32xf32>
          %cst_249 = arith.constant 1.000000e+00 : f32
          %909 = vector.broadcast %cst_249 : f32 to vector<8x32xf32>
          %910 = arith.addf %909, %908 : vector<8x32xf32>
          %911 = arith.divf %909, %910 : vector<8x32xf32>
          %912 = arith.mulf %903, %757 : vector<8x32xf32>
          %913 = arith.mulf %897, %905 : vector<8x32xf32>
          %914 = arith.addf %912, %913 : vector<8x32xf32>
          %915 = math.tanh %914 : vector<8x32xf32>
          %916 = arith.mulf %911, %915 : vector<8x32xf32>
          %917 = vector.broadcast %774 : f32 to vector<8x32xf32>
          %918 = arith.mulf %917, %890 : vector<8x32xf32>
          %cst_250 = arith.constant 1.000000e+00 : f32
          %919 = arith.subf %cst_250, %774 : f32
          %920 = vector.broadcast %919 : f32 to vector<8x32xf32>
          %921 = arith.mulf %920, %739 : vector<8x32xf32>
          %922 = arith.addf %918, %921 : vector<8x32xf32>
          %923 = vector.broadcast %774 : f32 to vector<8x32xf32>
          %924 = arith.mulf %923, %888 : vector<8x32xf32>
          %cst_251 = arith.constant 1.000000e+00 : f32
          %925 = arith.subf %cst_251, %774 : f32
          %926 = vector.broadcast %925 : f32 to vector<8x32xf32>
          %927 = arith.mulf %926, %745 : vector<8x32xf32>
          %928 = arith.addf %924, %927 : vector<8x32xf32>
          %929 = vector.broadcast %774 : f32 to vector<8x32xf32>
          %930 = arith.mulf %929, %916 : vector<8x32xf32>
          %cst_252 = arith.constant 1.000000e+00 : f32
          %931 = arith.subf %cst_252, %774 : f32
          %932 = vector.broadcast %931 : f32 to vector<8x32xf32>
          %933 = arith.mulf %932, %751 : vector<8x32xf32>
          %934 = arith.addf %930, %933 : vector<8x32xf32>
          %935 = vector.broadcast %774 : f32 to vector<8x32xf32>
          %936 = arith.mulf %935, %914 : vector<8x32xf32>
          %cst_253 = arith.constant 1.000000e+00 : f32
          %937 = arith.subf %cst_253, %774 : f32
          %938 = vector.broadcast %937 : f32 to vector<8x32xf32>
          %939 = arith.mulf %938, %757 : vector<8x32xf32>
          %940 = arith.addf %936, %939 : vector<8x32xf32>
          %c4_i32 = arith.constant 4 : i32
          %941 = arith.addi %203, %c4_i32 : i32
          %c7_i32_254 = arith.constant 7 : i32
          %942 = arith.minsi %941, %c7_i32_254 : i32
          %c1_i32_255 = arith.constant 1 : i32
          %943 = arith.addi %203, %c1_i32_255 : i32
          %944 = arith.addi %943, %205 : i32
          %c4_i32_256 = arith.constant 4 : i32
          %945 = arith.subi %944, %c4_i32_256 : i32
          %c0_i32_257 = arith.constant 0 : i32
          %c7_i32_258 = arith.constant 7 : i32
          %946 = arith.maxsi %c0_i32_257, %945 : i32
          %947 = arith.minsi %c7_i32_258, %946 : i32
          %948 = arith.index_cast %942 : i32 to index
          %c0_259 = arith.constant 0 : index
          %c0_260 = arith.constant 0 : index
          %949 = vector.load %arg19[%948, %c0_259, %c0_260] : memref<8x8x32xf32, #tpu.memory_space<vmem>>, vector<1x8x32xf32>
          %950 = vector.shape_cast %949 : vector<1x8x32xf32> to vector<8x32xf32>
          %951 = arith.index_cast %947 : i32 to index
          %c0_261 = arith.constant 0 : index
          %c0_262 = arith.constant 0 : index
          %952 = vector.load %arg19[%951, %c0_261, %c0_262] : memref<8x8x32xf32, #tpu.memory_space<vmem>>, vector<1x8x32xf32>
          %953 = vector.shape_cast %952 : vector<1x8x32xf32> to vector<8x32xf32>
          %c1_i32_263 = arith.constant 1 : i32
          %954 = arith.addi %205, %c1_i32_263 : i32
          %c4_i32_264 = arith.constant 4 : i32
          %955 = arith.cmpi sgt, %954, %c4_i32_264 : i32
          %956 = arith.extui %955 : i1 to i32
          %957 = arith.sitofp %956 : i32 to f32
          %958 = tpu.concatenate %950, %839, %953, %851 in 1 : vector<8x32xf32>, vector<8x32xf32>, vector<8x32xf32>, vector<8x32xf32> -> vector<8x128xf32>
          %c0_265 = arith.constant 0 : index
          %c0_266 = arith.constant 0 : index
          %c0_267 = arith.constant 0 : index
          %959 = vector.load %arg9[%c0_265, %c0_266, %c0_267] : memref<2x128x256xf32, #tpu.memory_space<vmem>>, vector<1x128x256xf32>
          %960 = vector.shape_cast %959 : vector<1x128x256xf32> to vector<128x256xf32>
          %cst_268 = arith.constant dense<0.000000e+00> : vector<8x256xf32>
          %961 = tpu.matmul %958, %960, %cst_268 {dimension_numbers = #tpu.dot_dimension_numbers<[1], [0], [0], [1], [0, 0, 1, 1], [], []>} : vector<8x128xf32>, vector<128x256xf32>, vector<8x256xf32> -> vector<8x256xf32>
          %c0_269 = arith.constant 0 : index
          %c0_270 = arith.constant 0 : index
          %962 = vector.load %arg10[%c0_269, %c0_270] : memref<2x256xf32, #tpu.memory_space<vmem>>, vector<1x256xf32>
          %963 = vector.broadcast %962 : vector<1x256xf32> to vector<8x256xf32>
          %964 = arith.addf %961, %963 : vector<8x256xf32>
          %965 = vector.extract_strided_slice %964 {offsets = [0, 0], sizes = [8, 128], strides = [1, 1]} : vector<8x256xf32> to vector<8x128xf32>
          %966 = vector.extract_strided_slice %965 {offsets = [0, 0], sizes = [8, 32], strides = [1, 1]} : vector<8x128xf32> to vector<8x32xf32>
          %967 = arith.negf %966 : vector<8x32xf32>
          %968 = math.exp %967 : vector<8x32xf32>
          %cst_271 = arith.constant 1.000000e+00 : f32
          %969 = vector.broadcast %cst_271 : f32 to vector<8x32xf32>
          %970 = arith.addf %969, %968 : vector<8x32xf32>
          %971 = arith.divf %969, %970 : vector<8x32xf32>
          %972 = vector.extract_strided_slice %965 {offsets = [0, 32], sizes = [8, 32], strides = [1, 1]} : vector<8x128xf32> to vector<8x32xf32>
          %973 = arith.negf %972 : vector<8x32xf32>
          %974 = math.exp %973 : vector<8x32xf32>
          %cst_272 = arith.constant 1.000000e+00 : f32
          %975 = vector.broadcast %cst_272 : f32 to vector<8x32xf32>
          %976 = arith.addf %975, %974 : vector<8x32xf32>
          %977 = arith.divf %975, %976 : vector<8x32xf32>
          %978 = vector.extract_strided_slice %965 {offsets = [0, 64], sizes = [8, 32], strides = [1, 1]} : vector<8x128xf32> to vector<8x32xf32>
          %979 = math.tanh %978 : vector<8x32xf32>
          %980 = vector.extract_strided_slice %965 {offsets = [0, 96], sizes = [8, 32], strides = [1, 1]} : vector<8x128xf32> to vector<8x32xf32>
          %981 = arith.negf %980 : vector<8x32xf32>
          %982 = math.exp %981 : vector<8x32xf32>
          %cst_273 = arith.constant 1.000000e+00 : f32
          %983 = vector.broadcast %cst_273 : f32 to vector<8x32xf32>
          %984 = arith.addf %983, %982 : vector<8x32xf32>
          %985 = arith.divf %983, %984 : vector<8x32xf32>
          %986 = arith.mulf %977, %845 : vector<8x32xf32>
          %987 = arith.mulf %971, %979 : vector<8x32xf32>
          %988 = arith.addf %986, %987 : vector<8x32xf32>
          %989 = math.tanh %988 : vector<8x32xf32>
          %990 = arith.mulf %985, %989 : vector<8x32xf32>
          %991 = vector.extract_strided_slice %964 {offsets = [0, 128], sizes = [8, 128], strides = [1, 1]} : vector<8x256xf32> to vector<8x128xf32>
          %992 = vector.extract_strided_slice %991 {offsets = [0, 0], sizes = [8, 32], strides = [1, 1]} : vector<8x128xf32> to vector<8x32xf32>
          %993 = arith.negf %992 : vector<8x32xf32>
          %994 = math.exp %993 : vector<8x32xf32>
          %cst_274 = arith.constant 1.000000e+00 : f32
          %995 = vector.broadcast %cst_274 : f32 to vector<8x32xf32>
          %996 = arith.addf %995, %994 : vector<8x32xf32>
          %997 = arith.divf %995, %996 : vector<8x32xf32>
          %998 = vector.extract_strided_slice %991 {offsets = [0, 32], sizes = [8, 32], strides = [1, 1]} : vector<8x128xf32> to vector<8x32xf32>
          %999 = arith.negf %998 : vector<8x32xf32>
          %1000 = math.exp %999 : vector<8x32xf32>
          %cst_275 = arith.constant 1.000000e+00 : f32
          %1001 = vector.broadcast %cst_275 : f32 to vector<8x32xf32>
          %1002 = arith.addf %1001, %1000 : vector<8x32xf32>
          %1003 = arith.divf %1001, %1002 : vector<8x32xf32>
          %1004 = vector.extract_strided_slice %991 {offsets = [0, 64], sizes = [8, 32], strides = [1, 1]} : vector<8x128xf32> to vector<8x32xf32>
          %1005 = math.tanh %1004 : vector<8x32xf32>
          %1006 = vector.extract_strided_slice %991 {offsets = [0, 96], sizes = [8, 32], strides = [1, 1]} : vector<8x128xf32> to vector<8x32xf32>
          %1007 = arith.negf %1006 : vector<8x32xf32>
          %1008 = math.exp %1007 : vector<8x32xf32>
          %cst_276 = arith.constant 1.000000e+00 : f32
          %1009 = vector.broadcast %cst_276 : f32 to vector<8x32xf32>
          %1010 = arith.addf %1009, %1008 : vector<8x32xf32>
          %1011 = arith.divf %1009, %1010 : vector<8x32xf32>
          %1012 = arith.mulf %1003, %857 : vector<8x32xf32>
          %1013 = arith.mulf %997, %1005 : vector<8x32xf32>
          %1014 = arith.addf %1012, %1013 : vector<8x32xf32>
          %1015 = math.tanh %1014 : vector<8x32xf32>
          %1016 = arith.mulf %1011, %1015 : vector<8x32xf32>
          %1017 = vector.broadcast %957 : f32 to vector<8x32xf32>
          %1018 = arith.mulf %1017, %990 : vector<8x32xf32>
          %cst_277 = arith.constant 1.000000e+00 : f32
          %1019 = arith.subf %cst_277, %957 : f32
          %1020 = vector.broadcast %1019 : f32 to vector<8x32xf32>
          %1021 = arith.mulf %1020, %839 : vector<8x32xf32>
          %1022 = arith.addf %1018, %1021 : vector<8x32xf32>
          %1023 = vector.broadcast %957 : f32 to vector<8x32xf32>
          %1024 = arith.mulf %1023, %1016 : vector<8x32xf32>
          %cst_278 = arith.constant 1.000000e+00 : f32
          %1025 = arith.subf %cst_278, %957 : f32
          %1026 = vector.broadcast %1025 : f32 to vector<8x32xf32>
          %1027 = arith.mulf %1026, %851 : vector<8x32xf32>
          %1028 = arith.addf %1024, %1027 : vector<8x32xf32>
          %1029 = tpu.concatenate %1022, %922, %1028, %934 in 1 : vector<8x32xf32>, vector<8x32xf32>, vector<8x32xf32>, vector<8x32xf32> -> vector<8x128xf32>
          %c1_279 = arith.constant 1 : index
          %c0_280 = arith.constant 0 : index
          %c0_281 = arith.constant 0 : index
          %1030 = vector.load %arg9[%c1_279, %c0_280, %c0_281] : memref<2x128x256xf32, #tpu.memory_space<vmem>>, vector<1x128x256xf32>
          %1031 = vector.shape_cast %1030 : vector<1x128x256xf32> to vector<128x256xf32>
          %cst_282 = arith.constant dense<0.000000e+00> : vector<8x256xf32>
          %1032 = tpu.matmul %1029, %1031, %cst_282 {dimension_numbers = #tpu.dot_dimension_numbers<[1], [0], [0], [1], [0, 0, 1, 1], [], []>} : vector<8x128xf32>, vector<128x256xf32>, vector<8x256xf32> -> vector<8x256xf32>
          %c1_283 = arith.constant 1 : index
          %c0_284 = arith.constant 0 : index
          %1033 = vector.load %arg10[%c1_283, %c0_284] : memref<2x256xf32, #tpu.memory_space<vmem>>, vector<1x256xf32>
          %1034 = vector.broadcast %1033 : vector<1x256xf32> to vector<8x256xf32>
          %1035 = arith.addf %1032, %1034 : vector<8x256xf32>
          %1036 = vector.extract_strided_slice %1035 {offsets = [0, 0], sizes = [8, 128], strides = [1, 1]} : vector<8x256xf32> to vector<8x128xf32>
          %1037 = vector.extract_strided_slice %1036 {offsets = [0, 0], sizes = [8, 32], strides = [1, 1]} : vector<8x128xf32> to vector<8x32xf32>
          %1038 = arith.negf %1037 : vector<8x32xf32>
          %1039 = math.exp %1038 : vector<8x32xf32>
          %cst_285 = arith.constant 1.000000e+00 : f32
          %1040 = vector.broadcast %cst_285 : f32 to vector<8x32xf32>
          %1041 = arith.addf %1040, %1039 : vector<8x32xf32>
          %1042 = arith.divf %1040, %1041 : vector<8x32xf32>
          %1043 = vector.extract_strided_slice %1036 {offsets = [0, 32], sizes = [8, 32], strides = [1, 1]} : vector<8x128xf32> to vector<8x32xf32>
          %1044 = arith.negf %1043 : vector<8x32xf32>
          %1045 = math.exp %1044 : vector<8x32xf32>
          %cst_286 = arith.constant 1.000000e+00 : f32
          %1046 = vector.broadcast %cst_286 : f32 to vector<8x32xf32>
          %1047 = arith.addf %1046, %1045 : vector<8x32xf32>
          %1048 = arith.divf %1046, %1047 : vector<8x32xf32>
          %1049 = vector.extract_strided_slice %1036 {offsets = [0, 64], sizes = [8, 32], strides = [1, 1]} : vector<8x128xf32> to vector<8x32xf32>
          %1050 = math.tanh %1049 : vector<8x32xf32>
          %1051 = vector.extract_strided_slice %1036 {offsets = [0, 96], sizes = [8, 32], strides = [1, 1]} : vector<8x128xf32> to vector<8x32xf32>
          %1052 = arith.negf %1051 : vector<8x32xf32>
          %1053 = math.exp %1052 : vector<8x32xf32>
          %cst_287 = arith.constant 1.000000e+00 : f32
          %1054 = vector.broadcast %cst_287 : f32 to vector<8x32xf32>
          %1055 = arith.addf %1054, %1053 : vector<8x32xf32>
          %1056 = arith.divf %1054, %1055 : vector<8x32xf32>
          %1057 = arith.mulf %1048, %928 : vector<8x32xf32>
          %1058 = arith.mulf %1042, %1050 : vector<8x32xf32>
          %1059 = arith.addf %1057, %1058 : vector<8x32xf32>
          %1060 = math.tanh %1059 : vector<8x32xf32>
          %1061 = arith.mulf %1056, %1060 : vector<8x32xf32>
          %1062 = vector.extract_strided_slice %1035 {offsets = [0, 128], sizes = [8, 128], strides = [1, 1]} : vector<8x256xf32> to vector<8x128xf32>
          %1063 = vector.extract_strided_slice %1062 {offsets = [0, 0], sizes = [8, 32], strides = [1, 1]} : vector<8x128xf32> to vector<8x32xf32>
          %1064 = arith.negf %1063 : vector<8x32xf32>
          %1065 = math.exp %1064 : vector<8x32xf32>
          %cst_288 = arith.constant 1.000000e+00 : f32
          %1066 = vector.broadcast %cst_288 : f32 to vector<8x32xf32>
          %1067 = arith.addf %1066, %1065 : vector<8x32xf32>
          %1068 = arith.divf %1066, %1067 : vector<8x32xf32>
          %1069 = vector.extract_strided_slice %1062 {offsets = [0, 32], sizes = [8, 32], strides = [1, 1]} : vector<8x128xf32> to vector<8x32xf32>
          %1070 = arith.negf %1069 : vector<8x32xf32>
          %1071 = math.exp %1070 : vector<8x32xf32>
          %cst_289 = arith.constant 1.000000e+00 : f32
          %1072 = vector.broadcast %cst_289 : f32 to vector<8x32xf32>
          %1073 = arith.addf %1072, %1071 : vector<8x32xf32>
          %1074 = arith.divf %1072, %1073 : vector<8x32xf32>
          %1075 = vector.extract_strided_slice %1062 {offsets = [0, 64], sizes = [8, 32], strides = [1, 1]} : vector<8x128xf32> to vector<8x32xf32>
          %1076 = math.tanh %1075 : vector<8x32xf32>
          %1077 = vector.extract_strided_slice %1062 {offsets = [0, 96], sizes = [8, 32], strides = [1, 1]} : vector<8x128xf32> to vector<8x32xf32>
          %1078 = arith.negf %1077 : vector<8x32xf32>
          %1079 = math.exp %1078 : vector<8x32xf32>
          %cst_290 = arith.constant 1.000000e+00 : f32
          %1080 = vector.broadcast %cst_290 : f32 to vector<8x32xf32>
          %1081 = arith.addf %1080, %1079 : vector<8x32xf32>
          %1082 = arith.divf %1080, %1081 : vector<8x32xf32>
          %1083 = arith.mulf %1074, %940 : vector<8x32xf32>
          %1084 = arith.mulf %1068, %1076 : vector<8x32xf32>
          %1085 = arith.addf %1083, %1084 : vector<8x32xf32>
          %1086 = math.tanh %1085 : vector<8x32xf32>
          %1087 = arith.mulf %1082, %1086 : vector<8x32xf32>
          %1088 = vector.broadcast %957 : f32 to vector<8x32xf32>
          %1089 = arith.mulf %1088, %1061 : vector<8x32xf32>
          %cst_291 = arith.constant 1.000000e+00 : f32
          %1090 = arith.subf %cst_291, %957 : f32
          %1091 = vector.broadcast %1090 : f32 to vector<8x32xf32>
          %1092 = arith.mulf %1091, %922 : vector<8x32xf32>
          %1093 = arith.addf %1089, %1092 : vector<8x32xf32>
          %1094 = vector.broadcast %957 : f32 to vector<8x32xf32>
          %1095 = arith.mulf %1094, %1087 : vector<8x32xf32>
          %cst_292 = arith.constant 1.000000e+00 : f32
          %1096 = arith.subf %cst_292, %957 : f32
          %1097 = vector.broadcast %1096 : f32 to vector<8x32xf32>
          %1098 = arith.mulf %1097, %934 : vector<8x32xf32>
          %1099 = arith.addf %1095, %1098 : vector<8x32xf32>
          %1100 = tpu.concatenate %1093, %1099 in 1 : vector<8x32xf32>, vector<8x32xf32> -> vector<8x64xf32>
          %c0_293 = arith.constant 0 : index
          %c0_294 = arith.constant 0 : index
          %1101 = vector.load %arg11[%c0_293, %c0_294] : memref<64x32xf32, #tpu.memory_space<vmem>>, vector<64x32xf32>
          %cst_295 = arith.constant dense<0.000000e+00> : vector<8x32xf32>
          %1102 = tpu.matmul %1100, %1101, %cst_295 {dimension_numbers = #tpu.dot_dimension_numbers<[1], [0], [0], [1], [0, 0, 1, 1], [], []>} : vector<8x64xf32>, vector<64x32xf32>, vector<8x32xf32> -> vector<8x32xf32>
          %c0_296 = arith.constant 0 : index
          %c0_297 = arith.constant 0 : index
          %1103 = vector.load %arg12[%c0_296, %c0_297] : memref<1x32xf32, #tpu.memory_space<vmem>>, vector<1x32xf32>
          %1104 = vector.broadcast %1103 : vector<1x32xf32> to vector<8x32xf32>
          %1105 = arith.addf %1102, %1104 : vector<8x32xf32>
          %cst_298 = arith.constant 0.000000e+00 : f32
          %1106 = vector.broadcast %cst_298 : f32 to vector<8x32xf32>
          %1107 = arith.maximumf %1105, %1106 : vector<8x32xf32>
          %c0_299 = arith.constant 0 : index
          %c0_300 = arith.constant 0 : index
          %1108 = vector.load %arg21[%c0_299, %c0_300] : memref<8x32xf32, #tpu.memory_space<vmem>>, vector<8x32xf32>
          tpu.vector_store %arg21[%c0_299, %c0_300], %1107 {strides = array<i32>} : memref<8x32xf32, #tpu.memory_space<vmem>>, vector<8x32xf32>,
        } else {
        }
        %c2_29 = arith.constant 2 : index
        %36 = arith.index_cast %12 : i32 to index
        %37 = memref.load %arg1[%c2_29, %36] : memref<11x10xi32, #tpu.memory_space<smem>>
        %c0_i32_30 = arith.constant 0 : i32
        %38 = arith.cmpi eq, %37, %c0_i32_30 : i32
        %39 = arith.extui %38 : i1 to i32
        %c0_i32_31 = arith.constant 0 : i32
        %40 = arith.cmpi ne, %39, %c0_i32_31 : i32
        scf.if %40 {
          %202 = arith.index_cast %12 : i32 to index
          %c0_76 = arith.constant 0 : index
          %c0_77 = arith.constant 0 : index
          %203 = vector.load %arg3[%202, %c0_76, %c0_77] : memref<10x8x32xf32, #tpu.memory_space<vmem>>, vector<1x8x32xf32>
          %204 = vector.shape_cast %203 : vector<1x8x32xf32> to vector<8x32xf32>
          %c0_78 = arith.constant 0 : index
          %c0_79 = arith.constant 0 : index
          %205 = vector.load %arg21[%c0_78, %c0_79] : memref<8x32xf32, #tpu.memory_space<vmem>>, vector<8x32xf32>
          tpu.vector_store %arg21[%c0_78, %c0_79], %204 {strides = array<i32>} : memref<8x32xf32, #tpu.memory_space<vmem>>, vector<8x32xf32>,
        } else {
        }
        %c0_32 = arith.constant 0 : index
        %c0_33 = arith.constant 0 : index
        %41 = vector.load %arg21[%c0_32, %c0_33] : memref<8x32xf32, #tpu.memory_space<vmem>>, vector<8x32xf32>
        %c3 = arith.constant 3 : index
        %42 = arith.index_cast %12 : i32 to index
        %43 = memref.load %arg1[%c3, %42] : memref<11x10xi32, #tpu.memory_space<smem>>
        %c1_i32_34 = arith.constant 1 : i32
        %44 = arith.cmpi eq, %43, %c1_i32_34 : i32
        %45 = arith.extui %44 : i1 to i32
        %c0_i32_35 = arith.constant 0 : i32
        %46 = arith.cmpi ne, %45, %c0_i32_35 : i32
        scf.if %46 {
          %c4 = arith.constant 4 : index
          %202 = arith.index_cast %12 : i32 to index
          %203 = memref.load %arg1[%c4, %202] : memref<11x10xi32, #tpu.memory_space<smem>>
          %204 = arith.index_cast %203 : i32 to index
          %c0_76 = arith.constant 0 : index
          %c0_77 = arith.constant 0 : index
          %205 = vector.load %arg19[%204, %c0_76, %c0_77] : memref<8x8x32xf32, #tpu.memory_space<vmem>>, vector<1x8x32xf32>
          %206 = vector.shape_cast %205 : vector<1x8x32xf32> to vector<8x32xf32>
          %207 = vector.shape_cast %41 : vector<8x32xf32> to vector<1x8x32xf32>
          tpu.vector_store %arg19[%204, %c0_76, %c0_77], %207 {strides = array<i32>} : memref<8x8x32xf32, #tpu.memory_space<vmem>>, vector<1x8x32xf32>,
        } else {
        }
        %c5 = arith.constant 5 : index
        %47 = arith.index_cast %12 : i32 to index
        %48 = memref.load %arg1[%c5, %47] : memref<11x10xi32, #tpu.memory_space<smem>>
        %c0_i32_36 = arith.constant 0 : i32
        %49 = arith.addi %c0_i32_36, %48 : i32
        %c6 = arith.constant 6 : index
        %50 = arith.index_cast %12 : i32 to index
        %51 = memref.load %arg1[%c6, %50] : memref<11x10xi32, #tpu.memory_space<smem>>
        %c18_i32 = arith.constant 18 : i32
        %52 = arith.addi %c18_i32, %51 : i32
        %53 = arith.index_cast %12 : i32 to index
        %c0_37 = arith.constant 0 : index
        %c0_38 = arith.constant 0 : index
        %54 = vector.load %arg4[%53, %c0_37, %c0_38] : memref<10x8x32xf32, #tpu.memory_space<vmem>>, vector<1x8x32xf32>
        %55 = vector.shape_cast %54 : vector<1x8x32xf32> to vector<8x32xf32>
        %56 = arith.index_cast %49 : i32 to index
        %c0_39 = arith.constant 0 : index
        %c0_40 = arith.constant 0 : index
        %57 = vector.load %arg18[%56, %c0_39, %c0_40] : memref<27x8x128xf32, #tpu.memory_space<vmem>>, vector<1x8x128xf32>
        %58 = vector.shape_cast %57 : vector<1x8x128xf32> to vector<8x128xf32>
        %59 = arith.index_cast %52 : i32 to index
        %c0_41 = arith.constant 0 : index
        %c0_42 = arith.constant 0 : index
        %60 = vector.load %arg18[%59, %c0_41, %c0_42] : memref<27x8x128xf32, #tpu.memory_space<vmem>>, vector<1x8x128xf32>
        %61 = vector.shape_cast %60 : vector<1x8x128xf32> to vector<8x128xf32>
        %62 = vector.extract_strided_slice %58 {offsets = [0, 0], sizes = [8, 32], strides = [1, 1]} : vector<8x128xf32> to vector<8x32xf32>
        %63 = vector.extract_strided_slice %61 {offsets = [0, 0], sizes = [8, 32], strides = [1, 1]} : vector<8x128xf32> to vector<8x32xf32>
        %64 = tpu.concatenate %41, %62, %55, %63 in 1 : vector<8x32xf32>, vector<8x32xf32>, vector<8x32xf32>, vector<8x32xf32> -> vector<8x128xf32>
        %c0_43 = arith.constant 0 : index
        %c0_44 = arith.constant 0 : index
        %c0_45 = arith.constant 0 : index
        %65 = vector.load %arg5[%c0_43, %c0_44, %c0_45] : memref<2x128x256xf32, #tpu.memory_space<vmem>>, vector<1x128x256xf32>
        %66 = vector.shape_cast %65 : vector<1x128x256xf32> to vector<128x256xf32>
        %cst_46 = arith.constant dense<0.000000e+00> : vector<8x256xf32>
        %67 = tpu.matmul %64, %66, %cst_46 {dimension_numbers = #tpu.dot_dimension_numbers<[1], [0], [0], [1], [0, 0, 1, 1], [], []>} : vector<8x128xf32>, vector<128x256xf32>, vector<8x256xf32> -> vector<8x256xf32>
        %c0_47 = arith.constant 0 : index
        %c0_48 = arith.constant 0 : index
        %68 = vector.load %arg6[%c0_47, %c0_48] : memref<2x256xf32, #tpu.memory_space<vmem>>, vector<1x256xf32>
        %69 = vector.broadcast %68 : vector<1x256xf32> to vector<8x256xf32>
        %70 = arith.addf %67, %69 : vector<8x256xf32>
        %71 = vector.extract_strided_slice %70 {offsets = [0, 0], sizes = [8, 128], strides = [1, 1]} : vector<8x256xf32> to vector<8x128xf32>
        %72 = vector.extract_strided_slice %58 {offsets = [0, 32], sizes = [8, 32], strides = [1, 1]} : vector<8x128xf32> to vector<8x32xf32>
        %73 = vector.extract_strided_slice %71 {offsets = [0, 0], sizes = [8, 32], strides = [1, 1]} : vector<8x128xf32> to vector<8x32xf32>
        %74 = arith.negf %73 : vector<8x32xf32>
        %75 = math.exp %74 : vector<8x32xf32>
        %cst_49 = arith.constant 1.000000e+00 : f32
        %76 = vector.broadcast %cst_49 : f32 to vector<8x32xf32>
        %77 = arith.addf %76, %75 : vector<8x32xf32>
        %78 = arith.divf %76, %77 : vector<8x32xf32>
        %79 = vector.extract_strided_slice %71 {offsets = [0, 32], sizes = [8, 32], strides = [1, 1]} : vector<8x128xf32> to vector<8x32xf32>
        %80 = arith.negf %79 : vector<8x32xf32>
        %81 = math.exp %80 : vector<8x32xf32>
        %cst_50 = arith.constant 1.000000e+00 : f32
        %82 = vector.broadcast %cst_50 : f32 to vector<8x32xf32>
        %83 = arith.addf %82, %81 : vector<8x32xf32>
        %84 = arith.divf %82, %83 : vector<8x32xf32>
        %85 = vector.extract_strided_slice %71 {offsets = [0, 64], sizes = [8, 32], strides = [1, 1]} : vector<8x128xf32> to vector<8x32xf32>
        %86 = math.tanh %85 : vector<8x32xf32>
        %87 = vector.extract_strided_slice %71 {offsets = [0, 96], sizes = [8, 32], strides = [1, 1]} : vector<8x128xf32> to vector<8x32xf32>
        %88 = arith.negf %87 : vector<8x32xf32>
        %89 = math.exp %88 : vector<8x32xf32>
        %cst_51 = arith.constant 1.000000e+00 : f32
        %90 = vector.broadcast %cst_51 : f32 to vector<8x32xf32>
        %91 = arith.addf %90, %89 : vector<8x32xf32>
        %92 = arith.divf %90, %91 : vector<8x32xf32>
        %93 = arith.mulf %84, %72 : vector<8x32xf32>
        %94 = arith.mulf %78, %86 : vector<8x32xf32>
        %95 = arith.addf %93, %94 : vector<8x32xf32>
        %96 = math.tanh %95 : vector<8x32xf32>
        %97 = arith.mulf %92, %96 : vector<8x32xf32>
        %98 = vector.extract_strided_slice %70 {offsets = [0, 128], sizes = [8, 128], strides = [1, 1]} : vector<8x256xf32> to vector<8x128xf32>
        %99 = vector.extract_strided_slice %61 {offsets = [0, 32], sizes = [8, 32], strides = [1, 1]} : vector<8x128xf32> to vector<8x32xf32>
        %100 = vector.extract_strided_slice %98 {offsets = [0, 0], sizes = [8, 32], strides = [1, 1]} : vector<8x128xf32> to vector<8x32xf32>
        %101 = arith.negf %100 : vector<8x32xf32>
        %102 = math.exp %101 : vector<8x32xf32>
        %cst_52 = arith.constant 1.000000e+00 : f32
        %103 = vector.broadcast %cst_52 : f32 to vector<8x32xf32>
        %104 = arith.addf %103, %102 : vector<8x32xf32>
        %105 = arith.divf %103, %104 : vector<8x32xf32>
        %106 = vector.extract_strided_slice %98 {offsets = [0, 32], sizes = [8, 32], strides = [1, 1]} : vector<8x128xf32> to vector<8x32xf32>
        %107 = arith.negf %106 : vector<8x32xf32>
        %108 = math.exp %107 : vector<8x32xf32>
        %cst_53 = arith.constant 1.000000e+00 : f32
        %109 = vector.broadcast %cst_53 : f32 to vector<8x32xf32>
        %110 = arith.addf %109, %108 : vector<8x32xf32>
        %111 = arith.divf %109, %110 : vector<8x32xf32>
        %112 = vector.extract_strided_slice %98 {offsets = [0, 64], sizes = [8, 32], strides = [1, 1]} : vector<8x128xf32> to vector<8x32xf32>
        %113 = math.tanh %112 : vector<8x32xf32>
        %114 = vector.extract_strided_slice %98 {offsets = [0, 96], sizes = [8, 32], strides = [1, 1]} : vector<8x128xf32> to vector<8x32xf32>
        %115 = arith.negf %114 : vector<8x32xf32>
        %116 = math.exp %115 : vector<8x32xf32>
        %cst_54 = arith.constant 1.000000e+00 : f32
        %117 = vector.broadcast %cst_54 : f32 to vector<8x32xf32>
        %118 = arith.addf %117, %116 : vector<8x32xf32>
        %119 = arith.divf %117, %118 : vector<8x32xf32>
        %120 = arith.mulf %111, %99 : vector<8x32xf32>
        %121 = arith.mulf %105, %113 : vector<8x32xf32>
        %122 = arith.addf %120, %121 : vector<8x32xf32>
        %123 = math.tanh %122 : vector<8x32xf32>
        %124 = arith.mulf %119, %123 : vector<8x32xf32>
        %125 = vector.extract_strided_slice %58 {offsets = [0, 64], sizes = [8, 32], strides = [1, 1]} : vector<8x128xf32> to vector<8x32xf32>
        %126 = vector.extract_strided_slice %61 {offsets = [0, 64], sizes = [8, 32], strides = [1, 1]} : vector<8x128xf32> to vector<8x32xf32>
        %127 = tpu.concatenate %97, %125, %124, %126 in 1 : vector<8x32xf32>, vector<8x32xf32>, vector<8x32xf32>, vector<8x32xf32> -> vector<8x128xf32>
        %c1_55 = arith.constant 1 : index
        %c0_56 = arith.constant 0 : index
        %c0_57 = arith.constant 0 : index
        %128 = vector.load %arg5[%c1_55, %c0_56, %c0_57] : memref<2x128x256xf32, #tpu.memory_space<vmem>>, vector<1x128x256xf32>
        %129 = vector.shape_cast %128 : vector<1x128x256xf32> to vector<128x256xf32>
        %cst_58 = arith.constant dense<0.000000e+00> : vector<8x256xf32>
        %130 = tpu.matmul %127, %129, %cst_58 {dimension_numbers = #tpu.dot_dimension_numbers<[1], [0], [0], [1], [0, 0, 1, 1], [], []>} : vector<8x128xf32>, vector<128x256xf32>, vector<8x256xf32> -> vector<8x256xf32>
        %c1_59 = arith.constant 1 : index
        %c0_60 = arith.constant 0 : index
        %131 = vector.load %arg6[%c1_59, %c0_60] : memref<2x256xf32, #tpu.memory_space<vmem>>, vector<1x256xf32>
        %132 = vector.broadcast %131 : vector<1x256xf32> to vector<8x256xf32>
        %133 = arith.addf %130, %132 : vector<8x256xf32>
        %134 = vector.extract_strided_slice %133 {offsets = [0, 0], sizes = [8, 128], strides = [1, 1]} : vector<8x256xf32> to vector<8x128xf32>
        %135 = vector.extract_strided_slice %58 {offsets = [0, 96], sizes = [8, 32], strides = [1, 1]} : vector<8x128xf32> to vector<8x32xf32>
        %136 = vector.extract_strided_slice %134 {offsets = [0, 0], sizes = [8, 32], strides = [1, 1]} : vector<8x128xf32> to vector<8x32xf32>
        %137 = arith.negf %136 : vector<8x32xf32>
        %138 = math.exp %137 : vector<8x32xf32>
        %cst_61 = arith.constant 1.000000e+00 : f32
        %139 = vector.broadcast %cst_61 : f32 to vector<8x32xf32>
        %140 = arith.addf %139, %138 : vector<8x32xf32>
        %141 = arith.divf %139, %140 : vector<8x32xf32>
        %142 = vector.extract_strided_slice %134 {offsets = [0, 32], sizes = [8, 32], strides = [1, 1]} : vector<8x128xf32> to vector<8x32xf32>
        %143 = arith.negf %142 : vector<8x32xf32>
        %144 = math.exp %143 : vector<8x32xf32>
        %cst_62 = arith.constant 1.000000e+00 : f32
        %145 = vector.broadcast %cst_62 : f32 to vector<8x32xf32>
        %146 = arith.addf %145, %144 : vector<8x32xf32>
        %147 = arith.divf %145, %146 : vector<8x32xf32>
        %148 = vector.extract_strided_slice %134 {offsets = [0, 64], sizes = [8, 32], strides = [1, 1]} : vector<8x128xf32> to vector<8x32xf32>
        %149 = math.tanh %148 : vector<8x32xf32>
        %150 = vector.extract_strided_slice %134 {offsets = [0, 96], sizes = [8, 32], strides = [1, 1]} : vector<8x128xf32> to vector<8x32xf32>
        %151 = arith.negf %150 : vector<8x32xf32>
        %152 = math.exp %151 : vector<8x32xf32>
        %cst_63 = arith.constant 1.000000e+00 : f32
        %153 = vector.broadcast %cst_63 : f32 to vector<8x32xf32>
        %154 = arith.addf %153, %152 : vector<8x32xf32>
        %155 = arith.divf %153, %154 : vector<8x32xf32>
        %156 = arith.mulf %147, %135 : vector<8x32xf32>
        %157 = arith.mulf %141, %149 : vector<8x32xf32>
        %158 = arith.addf %156, %157 : vector<8x32xf32>
        %159 = math.tanh %158 : vector<8x32xf32>
        %160 = arith.mulf %155, %159 : vector<8x32xf32>
        %161 = vector.extract_strided_slice %133 {offsets = [0, 128], sizes = [8, 128], strides = [1, 1]} : vector<8x256xf32> to vector<8x128xf32>
        %162 = vector.extract_strided_slice %61 {offsets = [0, 96], sizes = [8, 32], strides = [1, 1]} : vector<8x128xf32> to vector<8x32xf32>
        %163 = vector.extract_strided_slice %161 {offsets = [0, 0], sizes = [8, 32], strides = [1, 1]} : vector<8x128xf32> to vector<8x32xf32>
        %164 = arith.negf %163 : vector<8x32xf32>
        %165 = math.exp %164 : vector<8x32xf32>
        %cst_64 = arith.constant 1.000000e+00 : f32
        %166 = vector.broadcast %cst_64 : f32 to vector<8x32xf32>
        %167 = arith.addf %166, %165 : vector<8x32xf32>
        %168 = arith.divf %166, %167 : vector<8x32xf32>
        %169 = vector.extract_strided_slice %161 {offsets = [0, 32], sizes = [8, 32], strides = [1, 1]} : vector<8x128xf32> to vector<8x32xf32>
        %170 = arith.negf %169 : vector<8x32xf32>
        %171 = math.exp %170 : vector<8x32xf32>
        %cst_65 = arith.constant 1.000000e+00 : f32
        %172 = vector.broadcast %cst_65 : f32 to vector<8x32xf32>
        %173 = arith.addf %172, %171 : vector<8x32xf32>
        %174 = arith.divf %172, %173 : vector<8x32xf32>
        %175 = vector.extract_strided_slice %161 {offsets = [0, 64], sizes = [8, 32], strides = [1, 1]} : vector<8x128xf32> to vector<8x32xf32>
        %176 = math.tanh %175 : vector<8x32xf32>
        %177 = vector.extract_strided_slice %161 {offsets = [0, 96], sizes = [8, 32], strides = [1, 1]} : vector<8x128xf32> to vector<8x32xf32>
        %178 = arith.negf %177 : vector<8x32xf32>
        %179 = math.exp %178 : vector<8x32xf32>
        %cst_66 = arith.constant 1.000000e+00 : f32
        %180 = vector.broadcast %cst_66 : f32 to vector<8x32xf32>
        %181 = arith.addf %180, %179 : vector<8x32xf32>
        %182 = arith.divf %180, %181 : vector<8x32xf32>
        %183 = arith.mulf %174, %162 : vector<8x32xf32>
        %184 = arith.mulf %168, %176 : vector<8x32xf32>
        %185 = arith.addf %183, %184 : vector<8x32xf32>
        %186 = math.tanh %185 : vector<8x32xf32>
        %187 = arith.mulf %182, %186 : vector<8x32xf32>
        %188 = tpu.concatenate %97, %95, %160, %158 in 1 : vector<8x32xf32>, vector<8x32xf32>, vector<8x32xf32>, vector<8x32xf32> -> vector<8x128xf32>
        %189 = tpu.concatenate %124, %122, %187, %185 in 1 : vector<8x32xf32>, vector<8x32xf32>, vector<8x32xf32>, vector<8x32xf32> -> vector<8x128xf32>
        %c1_i32_67 = arith.constant 1 : i32
        %190 = arith.addi %49, %c1_i32_67 : i32
        %191 = arith.index_cast %190 : i32 to index
        %c0_68 = arith.constant 0 : index
        %c0_69 = arith.constant 0 : index
        %192 = vector.load %arg18[%191, %c0_68, %c0_69] : memref<27x8x128xf32, #tpu.memory_space<vmem>>, vector<1x8x128xf32>
        %193 = vector.shape_cast %192 : vector<1x8x128xf32> to vector<8x128xf32>
        %194 = vector.shape_cast %188 : vector<8x128xf32> to vector<1x8x128xf32>
        tpu.vector_store %arg18[%191, %c0_68, %c0_69], %194 {strides = array<i32>} : memref<27x8x128xf32, #tpu.memory_space<vmem>>, vector<1x8x128xf32>,
        %c1_i32_70 = arith.constant 1 : i32
        %195 = arith.addi %52, %c1_i32_70 : i32
        %196 = arith.index_cast %195 : i32 to index
        %c0_71 = arith.constant 0 : index
        %c0_72 = arith.constant 0 : index
        %197 = vector.load %arg18[%196, %c0_71, %c0_72] : memref<27x8x128xf32, #tpu.memory_space<vmem>>, vector<1x8x128xf32>
        %198 = vector.shape_cast %197 : vector<1x8x128xf32> to vector<8x128xf32>
        %199 = vector.shape_cast %189 : vector<8x128xf32> to vector<1x8x128xf32>
        tpu.vector_store %arg18[%196, %c0_71, %c0_72], %199 {strides = array<i32>} : memref<27x8x128xf32, #tpu.memory_space<vmem>>, vector<1x8x128xf32>,
        %c0_73 = arith.constant 0 : index
        %c0_74 = arith.constant 0 : index
        %200 = vector.load %arg20[%c0_73, %c0_74] : memref<8x96xf32, #tpu.memory_space<vmem>>, vector<8x32xf32>
        tpu.vector_store %arg20[%c0_73, %c0_74], %160 {strides = array<i32>} : memref<8x96xf32, #tpu.memory_space<vmem>>, vector<8x32xf32>,
        %c0_75 = arith.constant 0 : index
        %c64 = arith.constant 64 : index
        %201 = vector.load %arg20[%c0_75, %c64] : memref<8x96xf32, #tpu.memory_space<vmem>>, vector<8x32xf32>
        tpu.vector_store %arg20[%c0_75, %c64], %187 {strides = array<i32>} : memref<8x96xf32, #tpu.memory_space<vmem>>, vector<8x32xf32>,
      } else {
      }
      %c10 = arith.constant 10 : index
      %26 = arith.index_cast %12 : i32 to index
      %27 = memref.load %arg1[%c10, %26] : memref<11x10xi32, #tpu.memory_space<smem>>
      %c0_i32_25 = arith.constant 0 : i32
      %28 = arith.cmpi sge, %27, %c0_i32_25 : i32
      %29 = arith.extui %28 : i1 to i32
      %c0_i32_26 = arith.constant 0 : i32
      %30 = arith.cmpi ne, %29, %c0_i32_26 : i32
      scf.if %30 {
        %c10_27 = arith.constant 10 : index
        %31 = arith.index_cast %12 : i32 to index
        %32 = memref.load %arg1[%c10_27, %31] : memref<11x10xi32, #tpu.memory_space<smem>>
        %33 = arith.index_cast %32 : i32 to index
        %c0_28 = arith.constant 0 : index
        %c0_29 = arith.constant 0 : index
        %34 = vector.load %arg18[%33, %c0_28, %c0_29] : memref<27x8x128xf32, #tpu.memory_space<vmem>>, vector<1x8x128xf32>
        %35 = vector.shape_cast %34 : vector<1x8x128xf32> to vector<8x128xf32>
        %36 = vector.extract_strided_slice %35 {offsets = [0, 64], sizes = [8, 32], strides = [1, 1]} : vector<8x128xf32> to vector<8x32xf32>
        %c0_30 = arith.constant 0 : index
        %c32 = arith.constant 32 : index
        %37 = vector.load %arg20[%c0_30, %c32] : memref<8x96xf32, #tpu.memory_space<vmem>>, vector<8x32xf32>
        tpu.vector_store %arg20[%c0_30, %c32], %36 {strides = array<i32>} : memref<8x96xf32, #tpu.memory_space<vmem>>, vector<8x32xf32>,
      } else {
      }
    }
    %c10_i32_16 = arith.constant 10 : i32
    return
  }
  func.func @transform_0(%arg0: i32, %arg1: memref<11x10xi32, #tpu.memory_space<smem>>) -> (i32, i32) {
    %c0_i32 = arith.constant 0 : i32
    %c0_i32_0 = arith.constant 0 : i32
    %c0_i32_1 = arith.constant 0 : i32
    return %c0_i32, %c0_i32_0 : i32, i32
  }
  func.func @transform_1(%arg0: i32, %arg1: memref<11x10xi32, #tpu.memory_space<smem>>) -> (i32, i32, i32) {
    %c0_i32 = arith.constant 0 : i32
    %c0_i32_0 = arith.constant 0 : i32
    %c0_i32_1 = arith.constant 0 : i32
    %c0_i32_2 = arith.constant 0 : i32
    return %c0_i32, %c0_i32_0, %c0_i32_1 : i32, i32, i32
  }
  func.func @transform_2(%arg0: i32, %arg1: memref<11x10xi32, #tpu.memory_space<smem>>) -> (i32, i32, i32) {
    %c0_i32 = arith.constant 0 : i32
    %c0_i32_0 = arith.constant 0 : i32
    %c0_i32_1 = arith.constant 0 : i32
    %c0_i32_2 = arith.constant 0 : i32
    return %c0_i32, %c0_i32_0, %c0_i32_1 : i32, i32, i32
  }
  func.func @transform_3(%arg0: i32, %arg1: memref<11x10xi32, #tpu.memory_space<smem>>) -> (i32, i32, i32) {
    %c0_i32 = arith.constant 0 : i32
    %c0_i32_0 = arith.constant 0 : i32
    %c0_i32_1 = arith.constant 0 : i32
    %c0_i32_2 = arith.constant 0 : i32
    return %c0_i32, %c0_i32_0, %c0_i32_1 : i32, i32, i32
  }
  func.func @transform_4(%arg0: i32, %arg1: memref<11x10xi32, #tpu.memory_space<smem>>) -> (i32, i32) {
    %c0_i32 = arith.constant 0 : i32
    %c0_i32_0 = arith.constant 0 : i32
    %c0_i32_1 = arith.constant 0 : i32
    return %c0_i32, %c0_i32_0 : i32, i32
  }
  func.func @transform_5(%arg0: i32, %arg1: memref<11x10xi32, #tpu.memory_space<smem>>) -> (i32, i32, i32) {
    %c0_i32 = arith.constant 0 : i32
    %c0_i32_0 = arith.constant 0 : i32
    %c0_i32_1 = arith.constant 0 : i32
    %c0_i32_2 = arith.constant 0 : i32
    return %c0_i32, %c0_i32_0, %c0_i32_1 : i32, i32, i32
  }
  func.func @transform_6(%arg0: i32, %arg1: memref<11x10xi32, #tpu.memory_space<smem>>) -> (i32, i32) {
    %c0_i32 = arith.constant 0 : i32
    %c0_i32_0 = arith.constant 0 : i32
    %c0_i32_1 = arith.constant 0 : i32
    return %c0_i32, %c0_i32_0 : i32, i32
  }
  func.func @transform_7(%arg0: i32, %arg1: memref<11x10xi32, #tpu.memory_space<smem>>) -> (i32, i32, i32) {
    %c0_i32 = arith.constant 0 : i32
    %c0_i32_0 = arith.constant 0 : i32
    %c0_i32_1 = arith.constant 0 : i32
    %c0_i32_2 = arith.constant 0 : i32
    return %c0_i32, %c0_i32_0, %c0_i32_1 : i32, i32, i32
  }
  func.func @transform_8(%arg0: i32, %arg1: memref<11x10xi32, #tpu.memory_space<smem>>) -> (i32, i32) {
    %c0_i32 = arith.constant 0 : i32
    %c0_i32_0 = arith.constant 0 : i32
    %c0_i32_1 = arith.constant 0 : i32
    return %c0_i32, %c0_i32_0 : i32, i32
  }
  func.func @transform_9(%arg0: i32, %arg1: memref<11x10xi32, #tpu.memory_space<smem>>) -> (i32, i32) {
    %c0_i32 = arith.constant 0 : i32
    %c0_i32_0 = arith.constant 0 : i32
    %c0_i32_1 = arith.constant 0 : i32
    return %c0_i32, %c0_i32_0 : i32, i32
  }
  func.func @transform_10(%arg0: i32, %arg1: memref<11x10xi32, #tpu.memory_space<smem>>) -> (i32, i32) {
    %c0_i32 = arith.constant 0 : i32
    %c0_i32_0 = arith.constant 0 : i32
    %c0_i32_1 = arith.constant 0 : i32
    return %c0_i32, %c0_i32_0 : i32, i32
  }
  func.func @transform_11(%arg0: i32, %arg1: memref<11x10xi32, #tpu.memory_space<smem>>) -> (i32, i32) {
    %c0_i32 = arith.constant 0 : i32
    %c0_i32_0 = arith.constant 0 : i32
    %c0_i32_1 = arith.constant 0 : i32
    return %c0_i32, %c0_i32_0 : i32, i32
  }
  func.func @transform_12(%arg0: i32, %arg1: memref<11x10xi32, #tpu.memory_space<smem>>) -> (i32, i32) {
    %c0_i32 = arith.constant 0 : i32
    %c0_i32_0 = arith.constant 0 : i32
    %c0_i32_1 = arith.constant 0 : i32
    return %c0_i32, %c0_i32_0 : i32, i32
  }
  func.func @transform_13(%arg0: i32, %arg1: memref<11x10xi32, #tpu.memory_space<smem>>) -> (i32, i32) {
    %c0_i32 = arith.constant 0 : i32
    %c0_i32_0 = arith.constant 0 : i32
    %c0_i32_1 = arith.constant 0 : i32
    return %c0_i32, %c0_i32_0 : i32, i32
  }
  func.func @transform_14(%arg0: i32, %arg1: memref<11x10xi32, #tpu.memory_space<smem>>) -> (i32, i32) {
    %c0_i32 = arith.constant 0 : i32
    %c0_i32_0 = arith.constant 0 : i32
    %c0_i32_1 = arith.constant 0 : i32
    return %c0_i32, %c0_i32_0 : i32, i32
  }
  func.func @transform_15(%arg0: i32, %arg1: memref<11x10xi32, #tpu.memory_space<smem>>) -> (i32, i32, i32) {
    %c0_i32 = arith.constant 0 : i32
    %c0_i32_0 = arith.constant 0 : i32
    %c0_i32_1 = arith.constant 0 : i32
    %c0_i32_2 = arith.constant 0 : i32
    return %c0_i32, %c0_i32_0, %c0_i32_1 : i32, i32, i32
  }
}

</mosaic_0001>

<bundles_post_ra>
// kernel: tpu_custom_call.1
= control target key start
LH: loop header
LB: loop body
LE: loop exit
PB: predicated region body
PF: predicated region fallthrough
CT: control target
= control target key end

     0   :  { %s3791_s21 = smov [#allocation7]   ;;  %s5292_s0 = inlined_call_operand.hbm [shape: s32[11,10], index: 0, kind: input, shape index: {}]   ;;  %s5293_s1 = inlined_call_operand.hbm [shape: f32[10,128], index: 1, kind: input, shape index: {}]   ;;  %s5294_s2 = inlined_call_operand.vmem [shape: f32[10,8,32], index: 2, kind: input, shape index: {}]   ;;  %s5295_s3 = inlined_call_operand.hbm [shape: f32[10,8,32], index: 3, kind: input, shape index: {}]   ;;  %s5296_s4 = inlined_call_operand.hbm [shape: f32[2,128,256], index: 4, kind: input, shape index: {}]   ;;  %s5297_s5 = inlined_call_operand.hbm [shape: f32[2,256], index: 5, kind: input, shape index: {}]   ;;  %s5298_s6 = inlined_call_operand.vmem [shape: f32[2,64,128], index: 6, kind: input, shape index: {}]   ;;  %s5299_s7 = inlined_call_operand.hbm [shape: f32[2,128], index: 7, kind: input, shape index: {}]   ;;  %s5300_s8 = inlined_call_operand.hbm [shape: f32[2,128,256], index: 8, kind: input, shape index: {}]   ;;  %s5301_s9 = inlined_call_operand.hbm [shape: f32[2,256], index: 9, kind: input, shape index: {}]   ;;  %s5302_s10 = inlined_call_operand.vmem [shape: f32[64,32], index: 10, kind: input, shape index: {}]   ;;  %s5303_s11 = inlined_call_operand.vmem [shape: f32[1,32], index: 11, kind: input, shape index: {}]   ;;  %s5304_s12 = inlined_call_operand.vmem [shape: f32[96,32], index: 12, kind: input, shape index: {}]   ;;  %s5305_s13 = inlined_call_operand.vmem [shape: f32[1,32], index: 13, kind: input, shape index: {}]   ;;  %s5306_s14 = inlined_call_operand.hbm [shape: f32[32,128], index: 14, kind: input, shape index: {}]   ;;  %s5307_s15 = inlined_call_operand.vmem [shape: f32[1,128], index: 15, kind: input, shape index: {}]   ;;  %s5308_s16 = inlined_call_operand.hbm [shape: f32[10,8,128], index: 16, kind: output, shape index: {}]  }
   0x1   :  { %5375 = sst [smem:[#allocation62_spill]] %s5292_s0 }
   0x2   :  { %5376 = sst [smem:[#allocation63_spill]] %s5302_s10 }
   0x3   :  { %s5377_s10 = sld [smem:[#allocation62_spill]] }
   0x9   :  { %22 = dma.hbm_to_smem %s5377_s10, 256, %s3791_s21, [#allocation6] }
   0xa   :  { %3773 = dma.done.wait [#allocation6], 256 }
   0xb   :  { %3774 = vsyncadd [#allocation6], 4294967040 }
   0xc   :  { %24 = sfence }
   0xd   :  { %25 = vsyncpa [#allocation9], 0 }
   0xe   :  { %26 = vsyncpa [#allocation12], 0 }
   0xf   :  { %27 = vsyncpa [#allocation15], 0 }
  0x10   :  { %28 = vsyncpa [#allocation18], 0 }
  0x11   :  { %29 = vsyncpa [#allocation21], 0 }
  0x12   :  { %30 = vsyncpa [#allocation10], 0  ;;  %s3792_s24 = smov [#allocation11]   ;;  %s3793_s26 = smov [#allocation14]  }
  0x13   :  { %s50_s25 = sshll.u32 %s3792_s24, 4  ;;  %s75_s27 = sshll.u32 %s3793_s26, 4  ;;  %s51_s25 = int_to_ptr.vmem [resolvable:$true] %s50_s25  ;;  %s76_s27 = int_to_ptr.vmem [resolvable:$true] %s75_s27 }
  0x14   :  { %s3597_s28 = scalar_lea.vmem %s51_s25, 1280  ;;  %p3602_p1 = scmp.lt.s32.totalorder %s51_s25, %s51_s25 }
  0x15   :  { %p3598_p0 = scmp.ne.s32.totalorder %s51_s25, %s3597_s28  ;;  %p3603_p2 = scmp.lt.s32.totalorder %s3597_s28, %s3597_s28 }
  0x17   :  { %p3604_p3 = por %p3603_p2, %p3602_p1 }
  0x19   :  { %p3605_p4 = pnand %p3604_p3, %p3598_p0 }
  0x1b   :  { %3608 = shalt.err (!%p3605_p4)
}
  0x1c   :  { %s3794_s10 = smov 128   ;;  %s3795_s29 = smov 8  }
  0x1d   :  { %56 = dma.hbm_to_vmem [thread:$0]  %s5295_s3, 1280, %s51_s25, [#allocation12], %s3794_s10, %s3794_s10, %s3795_s29  }
  0x1e   :  { %s3617_s17 = scalar_lea.vmem %s76_s27, 64  ;;  %p3622_p6 = scmp.lt.s32.totalorder %s76_s27, %s76_s27 }
  0x1f   :  { %p3618_p5 = scmp.ne.s32.totalorder %s76_s27, %s3617_s17  ;;  %p3623_p7 = scmp.lt.s32.totalorder %s3617_s17, %s3617_s17 }
  0x21   :  { %p3624_p8 = por %p3623_p7, %p3622_p6 }
  0x23   :  { %p3625_p9 = pnand %p3624_p8, %p3618_p5 }
  0x25   :  { %3628 = shalt.err (!%p3625_p9)
}
  0x26   :  { %78 = dma.hbm_to_vmem [thread:$0]  %s5297_s5, 64, %s76_s27, [#allocation15]  }
  0x27   :  { %s3796_s20 = smov [#allocation17]   ;;  %s3797_s22 = smov [#allocation8]  }
  0x28   :  { %s96_s21 = sshll.u32 %s3796_s20, 4  ;;  %s36_s23 = sshll.u32 %s3797_s22, 4  ;;  %s97_s21 = int_to_ptr.vmem [resolvable:$true] %s96_s21  ;;  %s37_s23 = int_to_ptr.vmem [resolvable:$true] %s36_s23 }
  0x29   :  { %s3637_s24 = scalar_lea.vmem %s97_s21, 8192  ;;  %p3642_p11 = scmp.lt.s32.totalorder %s97_s21, %s97_s21 }
  0x2a   :  { %p3638_p10 = scmp.ne.s32.totalorder %s97_s21, %s3637_s24  ;;  %p3643_p12 = scmp.lt.s32.totalorder %s3637_s24, %s3637_s24 }
  0x2c   :  { %p3644_p13 = por %p3643_p12, %p3642_p11 }
  0x2e   :  { %p3645_p0 = pnand %p3644_p13, %p3638_p10 }
  0x30   :  { %3648 = shalt.err (!%p3645_p0)
}
  0x31   :  { %s3798_s3 = smov 256   ;;  %s3799_s25 = smov 16  }
  0x32   :  { %102 = dma.hbm_to_vmem [thread:$0]  %s5300_s8, 8192, %s97_s21, [#allocation18], %s3798_s3, %s3798_s3, %s3799_s25  }
  0x33   :  { %s3657_s5 = scalar_lea.vmem %s37_s23, 256  ;;  %p3662_p2 = scmp.lt.s32.totalorder %s37_s23, %s37_s23 }
  0x34   :  { %p3658_p1 = scmp.ne.s32.totalorder %s37_s23, %s3657_s5  ;;  %p3663_p3 = scmp.lt.s32.totalorder %s3657_s5, %s3657_s5 }
  0x36   :  { %p3664_p4 = por %p3663_p3, %p3662_p2 }
  0x38   :  { %p3665_p5 = pnand %p3664_p4, %p3658_p1 }
  0x3a   :  { %3668 = shalt.err (!%p3665_p5)
}
  0x3b   :  { %42 = dma.hbm_to_vmem [thread:$0]  %s5293_s1, 256, %s37_s23, [#allocation9], %s3794_s10, %s3794_s10, %s3795_s29  }
  0x3c   :  { %s3800_s0 = smov [#allocation13]   ;;  %s3801_s18 = smov [#allocation16]  }
  0x3d   :  { %s62_s17 = sshll.u32 %s3800_s0, 4  ;;  %s87_s19 = sshll.u32 %s3801_s18, 4  ;;  %s63_s17 = int_to_ptr.vmem [resolvable:$true] %s62_s17  ;;  %s88_s19 = int_to_ptr.vmem [resolvable:$true] %s87_s19 }
  0x3e   :  { %s3677_s8 = scalar_lea.vmem %s63_s17, 8192  ;;  %p3682_p7 = scmp.lt.s32.totalorder %s63_s17, %s63_s17 }
  0x3f   :  { %p3678_p6 = scmp.ne.s32.totalorder %s63_s17, %s3677_s8  ;;  %p3683_p8 = scmp.lt.s32.totalorder %s3677_s8, %s3677_s8 }
  0x41   :  { %p3684_p9 = por %p3683_p8, %p3682_p7 }
  0x43   :  { %p3685_p10 = pnand %p3684_p9, %p3678_p6 }
  0x45   :  { %3688 = shalt.err (!%p3685_p10)
}
  0x46   :  { %68 = dma.hbm_to_vmem [thread:$0]  %s5296_s4, 8192, %s63_s17, [#allocation12], %s3798_s3, %s3798_s3, %s3799_s25  }
  0x47   :  { %s3697_s22 = scalar_lea.vmem %s88_s19, 32  ;;  %p3702_p12 = scmp.lt.s32.totalorder %s88_s19, %s88_s19 }
  0x48   :  { %p3698_p11 = scmp.ne.s32.totalorder %s88_s19, %s3697_s22  ;;  %p3703_p13 = scmp.lt.s32.totalorder %s3697_s22, %s3697_s22 }
  0x4a   :  { %p3704_p0 = por %p3703_p13, %p3702_p12 }
  0x4c   :  { %p3705_p1 = pnand %p3704_p0, %p3698_p11 }
  0x4e   :  { %3708 = shalt.err (!%p3705_p1)
}
  0x4f   :  { %90 = dma.hbm_to_vmem [thread:$0]  %s5299_s7, 32, %s88_s19, [#allocation15]  }
  0x50   :  { %s3802_s24 = smov [#allocation19]   ;;  %s3803_s28 = smov [#allocation20]  }
  0x51   :  { %s109_s26 = sshll.u32 %s3802_s24, 4  ;;  %s126_s5 = sshll.u32 %s3803_s28, 4  ;;  %s110_s26 = int_to_ptr.vmem [resolvable:$true] %s109_s26  ;;  %s127_s5 = int_to_ptr.vmem [resolvable:$true] %s126_s5 }
  0x52   :  { %s3717_s27 = scalar_lea.vmem %s110_s26, 64  ;;  %p3722_p3 = scmp.lt.s32.totalorder %s110_s26, %s110_s26 }
  0x53   :  { %p3718_p2 = scmp.ne.s32.totalorder %s110_s26, %s3717_s27  ;;  %p3723_p4 = scmp.lt.s32.totalorder %s3717_s27, %s3717_s27 }
  0x55   :  { %p3724_p5 = por %p3723_p4, %p3722_p3 }
  0x57   :  { %p3725_p6 = pnand %p3724_p5, %p3718_p2 }
  0x59   :  { %3728 = shalt.err (!%p3725_p6)
}
  0x5a   :  { %112 = dma.hbm_to_vmem [thread:$0]  %s5301_s9, 64, %s110_s26, [#allocation18]  }
  0x5b   :  { %s3737_s25 = scalar_lea.vmem %s127_s5, 512  ;;  %p3742_p8 = scmp.lt.s32.totalorder %s127_s5, %s127_s5 }
  0x5c   :  { %p3738_p7 = scmp.ne.s32.totalorder %s127_s5, %s3737_s25  ;;  %p3743_p9 = scmp.lt.s32.totalorder %s3737_s25, %s3737_s25 }
  0x5e   :  { %p3744_p10 = por %p3743_p9, %p3742_p8 }
  0x60   :  { %p3745_p11 = pnand %p3744_p10, %p3738_p7 }
  0x62   :  { %3748 = shalt.err (!%p3745_p11)
}
  0x63   :  { %132 = dma.hbm_to_vmem [thread:$0]  %s5306_s14, 512, %s127_s5, [#allocation21], %s3794_s10, %s3794_s10, %s3795_s29  }
  0x64   :  { %3775 = dma.done.wait [#allocation9], 256  }
  0x65   :  { %3776 = vsyncadd [#allocation9], 4294967040 }
  0x66   :  { %3777 = dma.done.wait [#allocation12], 9472  }
  0x67   :  { %3778 = vsyncadd [#allocation12], 4294957824 }
  0x68   :  { %3779 = dma.done.wait [#allocation15], 96  }
  0x69   :  { %3780 = vsyncadd [#allocation15], 4294967200 }
  0x6a   :  { %3781 = dma.done.wait [#allocation18], 8256  }
  0x6b   :  { %3782 = vsyncadd [#allocation18], 4294959040 }
  0x6c   :  { %3783 = dma.done.wait [#allocation21], 512  }
  0x6d   :  { %3784 = vsyncadd [#allocation21], 4294966784  ;;  %vm186_vm0 = vcmask 261120   ;;  %vm195_vm1 = vcmask 785408   ;;  %v3804_v0 = vmov 0.0   ;;  %s3954_s9 = smov 0  }
  0x6e   :  { %159 = vst [vmem:[#allocation2] sm:$0xff] %v3804_v0  ;;  %160 = vst [vmem:[#allocation2 + $0x8] sm:$0xff] %v3804_v0 }
  0x6f   :  { %161 = vst [vmem:[#allocation2 + $0x10] sm:$0xff] %v3804_v0  ;;  %162 = vst [vmem:[#allocation2 + $0x18] sm:$0xff] %v3804_v0 }
  0x70   :  { %163 = vst [vmem:[#allocation2 + $0x20] sm:$0xff] %v3804_v0  ;;  %164 = vst [vmem:[#allocation2 + $0x28] sm:$0xff] %v3804_v0 }
  0x71   :  { %165 = vst [vmem:[#allocation2 + $0x30] sm:$0xff] %v3804_v0  ;;  %166 = vst [vmem:[#allocation2 + $0x38] sm:$0xff] %v3804_v0 }
  0x72   :  { %167 = vst [vmem:[#allocation2 + $0x40] sm:$0xff] %v3804_v0  ;;  %168 = vst [vmem:[#allocation2 + $0x48] sm:$0xff] %v3804_v0 }
  0x73   :  { %169 = vst [vmem:[#allocation2 + $0x50] sm:$0xff] %v3804_v0  ;;  %170 = vst [vmem:[#allocation2 + $0x58] sm:$0xff] %v3804_v0 }
  0x74   :  { %171 = vst [vmem:[#allocation2 + $0x60] sm:$0xff] %v3804_v0  ;;  %172 = vst [vmem:[#allocation2 + $0x68] sm:$0xff] %v3804_v0 }
  0x75   :  { %173 = vst [vmem:[#allocation2 + $0x70] sm:$0xff] %v3804_v0  ;;  %174 = vst [vmem:[#allocation2 + $0x78] sm:$0xff] %v3804_v0 }
  0x76   :  { %175 = vst [vmem:[#allocation2 + $0x80] sm:$0xff] %v3804_v0  ;;  %176 = vst [vmem:[#allocation2 + $0x88] sm:$0xff] %v3804_v0 }
  0x77   :  { %177 = vst [vmem:[#allocation2 + $0x90] sm:$0xff] %v3804_v0  ;;  %178 = vst [vmem:[#allocation2 + $0x98] sm:$0xff] %v3804_v0 }
  0x78   :  { %179 = vst [vmem:[#allocation2 + $0xa0] sm:$0xff] %v3804_v0  ;;  %180 = vst [vmem:[#allocation2 + $0xa8] sm:$0xff] %v3804_v0 }
  0x79   :  { %181 = vst [vmem:[#allocation2 + $0xb0] sm:$0xff] %v3804_v0  ;;  %182 = vst [vmem:[#allocation2 + $0xb8] sm:$0xff] %v3804_v0 }
  0x7a   :  { %183 = vst [vmem:[#allocation2 + $0xc0] sm:$0xff] %v3804_v0  ;;  %184 = vst [vmem:[#allocation2 + $0xc8] sm:$0xff] %v3804_v0 }
  0x7b   :  { %185 = vst [vmem:[#allocation2 + $0xd0] sm:$0xff] %v3804_v0  ;;  %198 = vst [vmem:[#allocation22] sm:$0xff] %v3804_v0 }
  0x7c   :  { %199 = vst [vmem:[#allocation22 + $0x8] sm:$0xff] %v3804_v0  ;;  %200 = vst [vmem:[#allocation22 + $0x10] sm:$0xff] %v3804_v0 }
  0x7d   :  { %201 = vst [vmem:[#allocation22 + $0x18] sm:$0xff] %v3804_v0  ;;  %202 = vst [vmem:[#allocation22 + $0x20] sm:$0xff] %v3804_v0 }
  0x7e   :  { %203 = vst [vmem:[#allocation22 + $0x28] sm:$0xff] %v3804_v0  ;;  %204 = vst [vmem:[#allocation22 + $0x30] sm:$0xff] %v3804_v0 }
  0x7f   :  { %205 = vst [vmem:[#allocation22 + $0x38] sm:$0xff] %v3804_v0  ;;  %206 = vst [vmem:[#allocation22 + $0x40] sm:$0xff] %v3804_v0 }
  0x80   :  { %207 = vst [vmem:[#allocation22 + $0x48] sm:$0xff] %v3804_v0  ;;  %187 = vst.msk [vmem:[#allocation3] sm:$0xff] %vm186_vm0, %v3804_v0 }
  0x81   :  { %188 = vst.msk [vmem:[#allocation3 + $0x8] sm:$0xff] %vm186_vm0, %v3804_v0  ;;  %189 = vst.msk [vmem:[#allocation3 + $0x10] sm:$0xff] %vm186_vm0, %v3804_v0 }
  0x82   :  { %190 = vst.msk [vmem:[#allocation3 + $0x18] sm:$0xff] %vm186_vm0, %v3804_v0  ;;  %191 = vst.msk [vmem:[#allocation3 + $0x20] sm:$0xff] %vm186_vm0, %v3804_v0 }
  0x83   :  { %192 = vst.msk [vmem:[#allocation3 + $0x28] sm:$0xff] %vm186_vm0, %v3804_v0  ;;  %193 = vst.msk [vmem:[#allocation3 + $0x30] sm:$0xff] %vm186_vm0, %v3804_v0 }
  0x84   :  { %194 = vst.msk [vmem:[#allocation3 + $0x38] sm:$0xff] %vm186_vm0, %v3804_v0  ;;  %197 = vst.msk [vmem:[#allocation5] sm:$0xff] %vm186_vm0, %v3804_v0 }
  0x85   :  { %196 = vst.msk [vmem:[#allocation4] sm:$0xff] %vm195_vm1, %v3804_v0 }
  0x86 LB: > { %s3960_s14 = sld [smem:[#allocation7 + %s3789_s9]]  ;;  %s215_s0 = sshra.s32 %s3789_s9, 7  ;;  %s3789_s9 = sphi %s3954_s9, %s213_s9  }
  0x87   : > { %s3963_s17 = sshll.u32 %s215_s0, 7  ;;  %s3966_s18 = sand.u32 127, %s3789_s9 }
  0x88   : > { %s3073_s19 = sadd.s32 128, %s3963_s17 }
  0x89   : > { %s221_s8 = sadd.s32 %s3073_s19, %s3966_s18 }
  0x8a   : > { %s222_s20 = sld [smem:[#allocation7 + %s221_s8]] }
  0x90   : > { %p2958_p12 = scmp.ne.s32.totalorder %s222_s20, 1 }
  0x91   : > { %s405_s3 = scalar_lea.vmem (!%p2958_p12), [#allocation8], %s3789_s9  ;;  %s2964_s25 = sshll.u32 (!%p2958_p12), %s3789_s9, 3 }
  0x92   : > { %226 = sbr.rel (%p2958_p12) target bundleno = 885 (0x375), region = 104  ;;  %s424_s7 = scalar_lea.vmem (!%p2958_p12), [#allocation22], %s2964_s25 }
  0x97   : > { %v239_v1 = vld [vmem:[%s5304_s12 + $0x58] sm:$0xff]  ;;  %v3805_v2 = vmov 0.0   ;;  %v238_v3 = vld [vmem:[%s5304_s12 + $0x50] sm:$0xff]  ;;  %vm3806_vm2 = vmmov 0   ;;  %v237_v4 = vld [vmem:[%s5304_s12 + $0x48] sm:$0xff] }
  0x98   : > { %3145 = vmatprep.subr.mxu0 %v3805_v2  ;;  %3169 = vmatprep.mubr.msk.f32.mxu0 %vm3806_vm2, %v3805_v2  ;;  %v324_v5 = vld [vmem:[#allocation20 + $0x18] sm:$0xff]  ;;  %v236_v6 = vld [vmem:[%s5304_s12 + $0x40] sm:$0xff]  ;;  %v235_v7 = vld [vmem:[%s5304_s12 + $0x38] sm:$0xff] }
  0x99   : > { %3146 = vmatpush3.msra.mxu0 %v239_v1  ;;  %3172 = vmatprep.subr.mxu1 %v3805_v2  ;;  %v234_v8 = vld [vmem:[%s5304_s12 + $0x30] sm:$0xff]  ;;  %v233_v9 = vld [vmem:[%s5304_s12 + $0x28] sm:$0xff]  ;;  %v232_v10 = vld [vmem:[%s5304_s12 + $0x20] sm:$0xff] }
  0x9a   : > { %3147 = vmatprep.subr.mxu0 %v3805_v2  ;;  %3180 = vmatprep.mubr.msk.f32.mxu1 %vm3806_vm2, %v3805_v2  ;;  %v231_v11 = vld [vmem:[%s5304_s12 + $0x18] sm:$0xff]  ;;  %v230_v12 = vld [vmem:[%s5304_s12 + $0x10] sm:$0xff]  ;;  %v229_v13 = vld [vmem:[%s5304_s12 + $0x8] sm:$0xff] }
  0x9b   : > { %3148 = vmatpush3.msra.mxu0 %v238_v3  ;;  %3173 = vmatpush3.msra.mxu1 %v324_v5  ;;  %v228_v14 = vld [vmem:[%s5304_s12] sm:$0xff]  ;;  %v227_v15 = vld [vmem:[#allocation4] sm:$0xff] }
  0x9c   : > { %3149 = vmatprep.subr.mxu0 %v3805_v2  ;;  %3174 = vmatprep.subr.mxu1 %v3805_v2  ;;  %v323_v16 = vld [vmem:[#allocation20 + $0x10] sm:$0xff]  ;;  %v322_v17 = vld [vmem:[#allocation20 + $0x8] sm:$0xff]  ;;  %v321_v18 = vld [vmem:[#allocation20] sm:$0xff] }
  0x9d   : > { %3150 = vmatpush3.msra.mxu0 %v237_v4  ;;  %3175 = vmatpush3.msra.mxu1 %v323_v16  ;;  %v2959_v19 = vld [vmem:[%s5305_s13] ss:$0 sm:$0xff] }
  0x9e   : > { %3151 = vmatprep.subr.mxu0 %v3805_v2  ;;  %3176 = vmatprep.subr.mxu1 %v3805_v2  ;;  %v2961_v24 = vld [vmem:[%s5307_s15] ss:$0 sm:$0xff] }
  0x9f   : > { %3152 = vmatpush3.msra.mxu0 %v236_v6  ;;  %3177 = vmatpush3.msra.mxu1 %v322_v17  ;;  %v2963_v26 = vld [vmem:[%s405_s3] ss:$0 sm:$0xff] }
  0xa0   : > { %3153 = vmatprep.subr.mxu0 %v3805_v2  ;;  %3178 = vmatprep.subr.mxu1 %v3805_v2 }
  0xa1   : > { %3154 = vmatpush3.msra.mxu0 %v235_v7  ;;  %3179 = vmatpush3.msra.mxu1 %v321_v18 }
  0xa2   : > { %3155 = vmatprep.subr.mxu0 %v3805_v2 }
  0xa3   : > { %3156 = vmatpush3.msra.mxu0 %v234_v8 }
  0xa4   : > { %3157 = vmatprep.subr.mxu0 %v3805_v2 }
  0xa5   : > { %3158 = vmatpush3.msra.mxu0 %v233_v9 }
  0xa6   : > { %3159 = vmatprep.subr.mxu0 %v3805_v2 }
  0xa7   : > { %3160 = vmatpush3.msra.mxu0 %v232_v10 }
  0xa8   : > { %3161 = vmatprep.subr.mxu0 %v3805_v2 }
  0xa9   : > { %3162 = vmatpush3.msra.mxu0 %v231_v11 }
  0xaa   : > { %3163 = vmatprep.subr.mxu0 %v3805_v2 }
  0xab   : > { %3164 = vmatpush3.msra.mxu0 %v230_v12 }
  0xac   : > { %3165 = vmatprep.subr.mxu0 %v3805_v2 }
  0xad   : > { %3166 = vmatpush3.msra.mxu0 %v229_v13 }
  0xae   : > { %3167 = vmatprep.subr.mxu0 %v3805_v2 }
  0xaf   : > { %3168 = vmatpush3.msra.mxu0 %v228_v14 }
  0xb0   : > { %3170 = vmatmul.mubr.msk.f32.vlgmr.msra.gmra.mxu0 %vm195_vm1, %v227_v15 }
 0x170   : > { %v316_v20 = vpop.f32.mrf.mxu0 }
 0x171   : > { %v317_v21 = vadd.f32 %v2959_v19, %v316_v20 }
 0x172   : > { %v3171_v22 = vpop.f32.mrf.mxu0 }
 0x173   : > { %v320_v23 = vmax.f32 %v317_v21, 0.0 }
 0x175   : > { %3181 = vmatmul.mubr.msk.f32.vlgmr.msra.gmra.mxu1 %vm186_vm0, %v320_v23 }
 0x235   : > { %v401_v25 = vpop.f32.mrf.mxu1 }
 0x236   : > { %v402_v27 = vadd.f32 %v2961_v24, %v401_v25 }
 0x237   : > { %v3182_v28 = vpop.f32.mrf.mxu1 }
 0x238   : > { %v411_v29 = vadd.f32 %v2963_v26, %v402_v27 }
 0x23a   : > { %412 = vmax.xlane.f32.xlu0 %v411_v29 }
 0x2c3   : > { %v413_v30 = vpop.xlane.xlu0 %412 }
 0x2c4   : > { %v414_v31 = vsub.f32 %v411_v29, %v413_v30 }
 0x2c6   : > { %v415_v32 = vmul.f32 1.442695, %v414_v31 }
 0x2c8   : > { %3280 = vpow2.f32 %v415_v32 }
 0x2d5   : > { %v3281_v33 = vpop.eup %3280 }
 0x2d6   : > { %417 = vadd.xlane.f32.xlu0 %v3281_v33 }
 0x35f   : > { %v418_v34 = vpop.xlane.xlu0 %417 }
 0x360   : > { %3282 = vlog2.f32 %v418_v34 }
 0x36d   : > { %v3283_v35 = vpop.eup %3282 }
 0x36e   : > { %v420_v36 = vmul.f32 0.6931472, %v3283_v35 }
 0x370   : > { %v421_v37 = vadd.f32 %v420_v36, %v413_v30 }
 0x372   : > { %v422_v38 = vsub.f32 %v411_v29, %v421_v37 }
 0x374   : > { %425 = vst [vmem:[%s424_s7] sm:$0xff] %v422_v38 }
 0x375 PF: > { %p2965_p13 = scmp.ne.s32.totalorder %s3960_s14, 1 }
 0x376   : > { %s3075_s30 = sadd.s32 (!%p2965_p13), 896, %s3963_s17  ;;  %s3809_s7 = smov (!%p2965_p13), 32  }
 0x377   : > { %429 = sbr.rel (%p2965_p13) target bundleno = 2397 (0x95d), region = 108  ;;  %s432_s8 = sadd.s32 (!%p2965_p13), %s3075_s30, %s3966_s18 }
 0x378   : > { %s433_s22 = sld [smem:[#allocation7 + %s432_s8]] (!%p2965_p13)  ;;  %s2967_s20 = sshll.u32 (!%p2965_p13), %s3789_s9, 3 }
 0x379   : > { %s436_s1 = scalar_lea.vmem (!%p2965_p13), %s5294_s2, %s2967_s20  ;;  %s3810_s23 = smov (!%p2965_p13), 64  }
 0x37c   : > { %v453_v39 = vld [vmem:[%s5298_s6 + $0x38] sm:$0xff]  ;;  %v3807_v40 = vmov 0.0   ;;  %v452_v41 = vld [vmem:[%s5298_s6 + $0x30] sm:$0xff]  ;;  %vm3808_vm3 = vmmov 0   ;;  %v451_v42 = vld [vmem:[%s5298_s6 + $0x28] sm:$0xff]  ;;  %vm459_vm4 = vcmask 523264  }
 0x37d   : > { %3183 = vmatprep.subr.mxu0 %v3807_v40  ;;  %3202 = vmatprep.subr.mxu1 %v3807_v40  ;;  %v450_v43 = vld [vmem:[%s5298_s6 + $0x20] sm:$0xff]  ;;  %v449_v44 = vld [vmem:[%s5298_s6 + $0x18] sm:$0xff]  ;;  %v448_v45 = vld [vmem:[%s5298_s6 + $0x10] sm:$0xff]  ;;  %vm697_vm5 = vcmask 523520  }
 0x37e   : > { %3184 = vmatpush3.msra.mxu0 %v453_v39  ;;  %3199 = vmatprep.mubr.msk.f32.mxu0 %vm3808_vm3, %v3807_v40  ;;  %s2968_s27 = sshll.u32 %s433_s22, 3  ;;  %v447_v47 = vld [vmem:[%s5298_s6 + $0x8] sm:$0xff]  ;;  %v446_v48 = vld [vmem:[%s5298_s6] sm:$0xff]  ;;  %v2980_v2 = vld [vmem:[%s5298_s6 + $0x78] sm:$0xff] }
 0x37f   : > { %3185 = vmatprep.subr.mxu0 %v3807_v40  ;;  %3218 = vmatprep.mubr.msk.f32.mxu1 %vm3808_vm3, %v3807_v40  ;;  %s4045_s25 = scalar_lea.vmem [#allocation2], %s2968_s27  ;;  %v437_v49 = vld [vmem:[%s436_s1] sm:$0xff]  ;;  %v2970_v52 = vld [vmem:[#allocation16] ss:$0 sm:$0xff]  ;;  %v2979_v3 = vld [vmem:[%s5298_s6 + $0x70] sm:$0xff]  ;;  %s3811_s1 = smov 96  }
 0x380   : > { %3186 = vmatpush3.msra.mxu0 %v452_v41  ;;  %v4048_v46 = vld [vmem:[%s4045_s25 + $0x48] sm:$0xff]  ;;  %3203 = vmatpush3.msra.mxu1 %v2980_v2  ;;  %v2977_v5 = vld [vmem:[%s5298_s6 + $0x60] sm:$0xff]  ;;  %v2976_v6 = vld [vmem:[%s5298_s6 + $0x58] sm:$0xff] }
 0x381   : > { %3187 = vmatprep.subr.mxu0 %v3807_v40  ;;  %442 = vrot.lane.b32.xlu0 %v4048_v46, %s3809_s7  ;;  %v2978_v4 = vld [vmem:[%s5298_s6 + $0x68] sm:$0xff]  ;;  %v2975_v7 = vld [vmem:[%s5298_s6 + $0x50] sm:$0xff]  ;;  %v2973_v10 = vld [vmem:[%s5298_s6 + $0x40] sm:$0xff] }
 0x382   : > { %3188 = vmatpush3.msra.mxu0 %v451_v42  ;;  %3204 = vmatprep.subr.mxu1 %v3807_v40  ;;  %v2974_v9 = vld [vmem:[%s5298_s6 + $0x48] sm:$0xff] }
 0x383   : > { %3189 = vmatprep.subr.mxu0 %v3807_v40  ;;  %3205 = vmatpush3.msra.mxu1 %v2979_v3  ;;  %v2981_v16 = vld [vmem:[#allocation16 + $0x1] ss:$0 sm:$0xff] }
 0x384   : > { %3190 = vmatpush3.msra.mxu0 %v450_v43  ;;  %3206 = vmatprep.subr.mxu1 %v3807_v40 }
 0x385   : > { %3191 = vmatprep.subr.mxu0 %v3807_v40  ;;  %3207 = vmatpush3.msra.mxu1 %v2978_v4 }
 0x386   : > { %3192 = vmatpush3.msra.mxu0 %v449_v44  ;;  %3208 = vmatprep.subr.mxu1 %v3807_v40 }
 0x387   : > { %3193 = vmatprep.subr.mxu0 %v3807_v40  ;;  %3209 = vmatpush3.msra.mxu1 %v2977_v5 }
 0x388   : > { %3194 = vmatpush3.msra.mxu0 %v448_v45  ;;  %3210 = vmatprep.subr.mxu1 %v3807_v40 }
 0x389   : > { %3195 = vmatprep.subr.mxu0 %v3807_v40  ;;  %3211 = vmatpush3.msra.mxu1 %v2976_v6 }
 0x38a   : > { %3196 = vmatpush3.msra.mxu0 %v447_v47  ;;  %3212 = vmatprep.subr.mxu1 %v3807_v40 }
 0x38b   : > { %3197 = vmatprep.subr.mxu0 %v3807_v40  ;;  %3213 = vmatpush3.msra.mxu1 %v2975_v7 }
 0x38c   : > { %3198 = vmatpush3.msra.mxu0 %v446_v48  ;;  %3214 = vmatprep.subr.mxu1 %v3807_v40 }
 0x38d   : > { %3215 = vmatpush3.msra.mxu1 %v2974_v9 }
 0x38e   : > { %3216 = vmatprep.subr.mxu1 %v3807_v40 }
 0x38f   : > { %3217 = vmatpush3.msra.mxu1 %v2973_v10 }
 0x3f3   : > { %v443_v50 = vpop.permute.xlu0 %442 }
 0x3f4   : > { %v445_v51 = vsel %vm186_vm0, %v437_v49, %v443_v50 }
 0x3f5   : > { %3200 = vmatmul.mubr.msk.f32.vlgmr.msra.gmra.mxu0 %vm459_vm4, %v445_v51 }
 0x4b5   : > { %v529_v53 = vpop.f32.mrf.mxu0 }
 0x4b6   : > { %v530_v54 = vadd.f32 %v2970_v52, %v529_v53 }
 0x4b7   : > { %v3201_v55 = vpop.f32.mrf.mxu0 }
 0x4b8   : > { %3284 = vtanh.f32 %v530_v54  ;;  %v2972_v57 = vmul.f32 -1.442695, %v530_v54 }
 0x4ba   : > { %3286 = vpow2.f32 %v2972_v57 }
 0x4c5   : > { %v3285_v56 = vpop.eup %3284 }
 0x4c6   : > { %542 = vrot.lane.b32.xlu0 %v3285_v56, %s3810_s23 }
 0x4c7   : > { %v3287_v58 = vpop.eup %3286 }
 0x4c8   : > { %v536_v59 = vadd.f32 1.0, %v3287_v58 }
 0x4ca   : > { %3288 = vrcp.f32 %v536_v59 }
 0x4d7   : > { %v3289_v60 = vpop.eup %3288 }
 0x4d8   : > { %v540_v63 = vmul.f32 %v3289_v60, %v4048_v46 }
 0x538   : > { %v543_v61 = vpop.permute.xlu0 %542 }
 0x539   : > { %v545_v62 = vmul.f32 %v3289_v60, %v543_v61 }
 0x53b   : > { %547 = vrot.lane.b32.xlu1 %v545_v62, %s3809_s7 }
 0x5ad   : > { %v548_v0 = vpop.permute.xlu1 %547 }
 0x5ae   : > { %v4070_v1 = vadd.f32 %v548_v0, %v540_v63 }
 0x5b0   : > { %3290 = vtanh.f32 %v4070_v1 }
 0x5bd   : > { %v3291_v8 = vpop.eup %3290 }
 0x5be   : > { %553 = vrot.lane.b32.xlu1 %v3291_v8, %s3810_s23 }
 0x5c2   : > { %561 = vrot.lane.b32.xlu1 %v4048_v46, %s3811_s1 }
 0x5c6   : > { %659 = vrot.lane.b32.xlu1 %v4048_v46, %s3810_s23 }
 0x630   : > { %v554_v11 = vpop.permute.xlu1 %553 }
 0x631   : > { %v556_v12 = vmul.f32 %v3289_v60, %v554_v11 }
 0x633   : > { %558 = vrot.lane.b32.xlu0 %v556_v12, %s3809_s7 }
 0x634   : > { %v562_v13 = vpop.permute.xlu1 %561 }
 0x638   : > { %v660_v27 = vpop.permute.xlu1 %659 }
 0x6a5   : > { %v559_v14 = vpop.permute.xlu0 %558 }
 0x6a6   : > { %v564_v15 = vsel %vm186_vm0, %v559_v14, %v562_v13  ;;  %v687_v34 = vsel %vm186_vm0, %v559_v14, %v4070_v1 }
 0x6a7   : > { %3219 = vmatmul.mubr.msk.f32.vlgmr.msra.gmra.mxu1 %vm459_vm4, %v564_v15 }
 0x767   : > { %v648_v17 = vpop.f32.mrf.mxu1 }
 0x768   : > { %v649_v18 = vadd.f32 %v2981_v16, %v648_v17 }
 0x769   : > { %v3220_v19 = vpop.f32.mrf.mxu1 }
 0x76a   : > { %3292 = vtanh.f32 %v649_v18  ;;  %v2983_v21 = vmul.f32 -1.442695, %v649_v18 }
 0x76c   : > { %3294 = vpow2.f32 %v2983_v21 }
 0x777   : > { %v3293_v20 = vpop.eup %3292 }
 0x778   : > { %664 = vrot.lane.b32.xlu0 %v3293_v20, %s3810_s23 }
 0x779   : > { %v3295_v22 = vpop.eup %3294 }
 0x77a   : > { %v655_v23 = vadd.f32 1.0, %v3295_v22 }
 0x77c   : > { %3296 = vrcp.f32 %v655_v23 }
 0x789   : > { %v3297_v24 = vpop.eup %3296 }
 0x78a   : > { %v662_v28 = vmul.f32 %v3297_v24, %v660_v27 }
 0x7ea   : > { %v665_v25 = vpop.permute.xlu0 %664 }
 0x7eb   : > { %v667_v26 = vmul.f32 %v3297_v24, %v665_v25 }
 0x7ed   : > { %669 = vrot.lane.b32.xlu0 %v667_v26, %s3809_s7 }
 0x85f   : > { %v670_v29 = vpop.permute.xlu0 %669 }
 0x860   : > { %v672_v30 = vadd.f32 %v670_v29, %v662_v28 }
 0x862   : > { %3298 = vtanh.f32 %v672_v30 }
 0x86f   : > { %v3299_v31 = vpop.eup %3298 }
 0x870   : > { %675 = vrot.lane.b32.xlu1 %v3299_v31, %s3810_s23 }
 0x874   : > { %684 = vrot.lane.b32.xlu1 %v672_v30, %s3810_s23 }
 0x8e2   : > { %v676_v32 = vpop.permute.xlu1 %675 }
 0x8e3   : > { %v678_v33 = vmul.f32 %v3297_v24, %v676_v32 }
 0x8e5   : > { %680 = vrot.lane.b32.xlu0 %v678_v33, %s3811_s1 }
 0x8e6   : > { %v685_v36 = vpop.permute.xlu1 %684 }
 0x8e9   : > { %694 = vrot.lane.b32.xlu0 %v678_v33, %s3810_s23 }
 0x957   : > { %v681_v35 = vpop.permute.xlu0 %680 }
 0x958   : > { %v688_v37 = vsel %vm459_vm4, %v687_v34, %v681_v35 }
 0x959   : > { %v689_v38 = vsel %vm195_vm1, %v688_v37, %v685_v36 }
 0x95a   : > { %2985 = vst [vmem:[%s4045_s25 + $0x50] sm:$0xff] %v689_v38 }
 0x95b   : > { %v695_v39 = vpop.permute.xlu0 %694 }
 0x95c   : > { %698 = vst.msk [vmem:[#allocation4] sm:$0xff] %vm697_vm5, %v695_v39 }
 0x95d PF: > { %p2986_p0 = scmp.ne.s32.totalorder %s3960_s14, 2 }
 0x95e   : > { %s3077_s7 = sadd.s32 (!%p2986_p0), 256, %s3963_s17 }
 0x95f   : > { %702 = sbr.rel (%p2986_p0) target bundleno = 8509 (0x213d), region = 112  ;;  %s4126_s23 = sadd.s32 (!%p2986_p0), %s3077_s7, %s3966_s18 }
 0x960   : > { %s706_s28 = sld [smem:[#allocation7 + %s4126_s23]] (!%p2986_p0) }
 0x966   : > { %p2988_p1 = scmp.ne.s32.totalorder %s706_s28, 1 }
 0x968   : > { %710 = sbr.rel (%p2988_p1) target bundleno = 6947 (0x1b23), region = 116 }
 0x96d   : > { %s3079_s5 = sadd.s32 1024, %s3963_s17  ;;  %v4130_v40 = vld [vmem:[#allocation17 + $0xf8] sm:$0xff]  ;;  %v4132_v41 = vld [vmem:[#allocation17 + $0xf0] sm:$0xff]  ;;  %v4134_v42 = vld [vmem:[#allocation17 + $0xe8] sm:$0xff]  ;;  %v5312_v44 = vmov 0.0   ;;  %s3813_s3 = smov 64   ;;  %v773_v14 = vlaneseq }
 0x96e   : > { %5378 = vst [vmem:[#allocation30_spill] sm:$0xff] %v4130_v40  ;;  %s713_s14 = sadd.s32 %s3079_s5, %s3966_s18  ;;  %783 = vmatprep.subr.mxu0 %v4130_v40  ;;  %v4138_v43 = vld [vmem:[#allocation17 + $0xe0] sm:$0xff]  ;;  %847 = vmatprep.mubr.f32.mxu0 %v5312_v44  ;;  %v4144_v45 = vld [vmem:[#allocation17 + $0xd8] sm:$0xff]  ;;  %v4148_v46 = vld [vmem:[#allocation17 + $0xd0] sm:$0xff]  ;;  %vm736_vm6 = vcmask 523264   ;;  %s3814_s8 = smov 32  }
 0x96f   : > { %s4141_s25 = sld [smem:[#allocation7 + %s713_s14]]  ;;  %784 = vmatpush1.msra.mxu0 %v4132_v41  ;;  %1035 = vmatprep.mubr.f32.mxu1 %v5312_v44  ;;  %v4151_v47 = vld [vmem:[#allocation17 + $0xc8] sm:$0xff]  ;;  %v4154_v48 = vld [vmem:[#allocation17 + $0xc0] sm:$0xff]  ;;  %v4157_v49 = vld [vmem:[#allocation17 + $0xb8] sm:$0xff]  ;;  %v4272_v15 = vshrl.u32 %v773_v14, 7  ;;  %s3081_s20 = sadd.s32 1152, %s3963_s17 }
 0x970   : > { %785 = vmatprep.subr.mxu0 %v4134_v42  ;;  %v4160_v50 = vld [vmem:[#allocation17 + $0xb0] sm:$0xff]  ;;  %v4164_v51 = vld [vmem:[#allocation17 + $0xa8] sm:$0xff]  ;;  %v4167_v52 = vld [vmem:[#allocation17 + $0xa0] sm:$0xff]  ;;  %s717_s21 = sadd.s32 %s3081_s20, %s3966_s18  ;;  %vm3816_vm7 = vmmov 0  }
 0x971   : > { %786 = vmatpush1.msra.mxu0 %v4138_v43  ;;  %v4170_v54 = vld [vmem:[#allocation17 + $0x98] sm:$0xff]  ;;  %v4174_v55 = vld [vmem:[#allocation17 + $0x90] sm:$0xff]  ;;  %v4177_v56 = vld [vmem:[#allocation17 + $0x88] sm:$0xff]  ;;  %5388 = vst [vmem:[#allocation40_spill] sm:$0xff] %v4272_v15  ;;  %v5311_v16 = vsub.s32 0, %v4272_v15  ;;  %v5310_v18 = vsub.s32 1, %v4272_v15 }
 0x972   : > { %787 = vmatprep.subr.mxu0 %v4144_v45  ;;  %v4180_v57 = vld [vmem:[#allocation17 + $0x80] sm:$0xff]  ;;  %v4183_v58 = vld [vmem:[#allocation17 + $0x78] sm:$0xff]  ;;  %v4186_v59 = vld [vmem:[#allocation17 + $0x70] sm:$0xff]  ;;  %s718_s22 = sld [smem:[#allocation7 + %s717_s21]] }
 0x973   : > { %788 = vmatpush1.msra.mxu0 %v4148_v46  ;;  %v4189_v60 = vld [vmem:[#allocation17 + $0x68] sm:$0xff]  ;;  %v4192_v61 = vld [vmem:[#allocation17 + $0x60] sm:$0xff]  ;;  %v4195_v62 = vld [vmem:[#allocation17 + $0x58] sm:$0xff] }
 0x974   : > { %789 = vmatprep.subr.mxu0 %v4151_v47  ;;  %v4198_v63 = vld [vmem:[#allocation17 + $0x50] sm:$0xff]  ;;  %v4201_v0 = vld [vmem:[#allocation17 + $0x48] sm:$0xff]  ;;  %v4204_v1 = vld [vmem:[#allocation17 + $0x40] sm:$0xff] }
 0x975   : > { %s2992_s27 = sshll.u32 %s4141_s25, 3  ;;  %790 = vmatpush1.msra.mxu0 %v4154_v48  ;;  %5379 = vst [vmem:[#allocation31_spill] sm:$0xff] %v4204_v1  ;;  %v4207_v2 = vld [vmem:[#allocation17 + $0x38] sm:$0xff]  ;;  %v4210_v3 = vld [vmem:[#allocation17 + $0x30] sm:$0xff]  ;;  %v4213_v4 = vld [vmem:[#allocation17 + $0x28] sm:$0xff]  ;;  %p719_p2 = scmp.lt.s32.totalorder %s4141_s25, 7 }
 0x976   : > { %791 = vmatprep.subr.mxu0 %v4157_v49  ;;  %s725_s4 = scalar_lea.vmem [#allocation3], %s2992_s27  ;;  %5380 = vst [vmem:[#allocation32_spill] sm:$0xff] %v4207_v2  ;;  %5381 = vst [vmem:[#allocation33_spill] sm:$0xff] %v4210_v3  ;;  %v4216_v5 = vld [vmem:[#allocation17 + $0x20] sm:$0xff]  ;;  %v4219_v6 = vld [vmem:[#allocation17 + $0x18] sm:$0xff]  ;;  %s4384_s1 = sadd.s32 1, %s4141_s25 }
 0x977   : > { %v726_v53 = vld [vmem:[%s725_s4] sm:$0xff]  ;;  %792 = vmatpush1.msra.mxu0 %v4160_v50  ;;  %5382 = vst [vmem:[#allocation34_spill] sm:$0xff] %v4213_v4  ;;  %5383 = vst [vmem:[#allocation35_spill] sm:$0xff] %v4216_v5  ;;  %v4225_v8 = vld [vmem:[#allocation17 + $0x8] sm:$0xff]  ;;  %s720_s30 = scalar_select %p719_p2, %s4141_s25, 7 }
 0x978   : > { %732 = vrot.lane.b32.xlu0 %v726_v53, %s3813_s3  ;;  %793 = vmatprep.subr.mxu0 %v4164_v51  ;;  %5384 = vst [vmem:[#allocation36_spill] sm:$0xff] %v4219_v6  ;;  %v4222_v7 = vld [vmem:[#allocation17 + $0x10] sm:$0xff]  ;;  %5386 = vst [vmem:[#allocation38_spill] sm:$0xff] %v4225_v8  ;;  %v4228_v9 = vld [vmem:[#allocation17] sm:$0xff]  ;;  %s4387_s24 = sadd.s32 %s4384_s1, %s718_s22  ;;  %s4389_s26 = sadd.s32 1, %s718_s22 }
 0x979   : > { %794 = vmatpush1.msra.mxu0 %v4167_v52  ;;  %5385 = vst [vmem:[#allocation37_spill] sm:$0xff] %v4222_v7  ;;  %5387 = vst [vmem:[#allocation39_spill] sm:$0xff] %v4228_v9  ;;  %s2991_s0 = sshll.u32 %s720_s30, 3  ;;  %v771_v17 = vld [vmem:[#allocation19] ss:$2 sm:$0x3] }
 0x97a   : > { %795 = vmatprep.subr.mxu0 %v4170_v54  ;;  %s722_s19 = scalar_lea.vmem [#allocation3], %s2991_s0  ;;  %v4278_v19 = vrot.slane %v771_v17, %v5311_v16  ;;  %v4282_v20 = vrot.slane %v771_v17, %v5310_v18  ;;  %v4304_v17 = vld [vmem:[#allocation17 + $0x1f8] sm:$0xff]  ;;  %v4370_v18 = vld [vmem:[#allocation17 + $0x148] sm:$0xff]  ;;  %v4373_v16 = vld [vmem:[#allocation17 + $0x140] sm:$0xff]  ;;  %s2999_s7 = sadd.s32 4294967295, %s4387_s24 }
 0x97b   : > { %796 = vmatpush1.msra.mxu0 %v4174_v55  ;;  %v723_v10 = vld [vmem:[%s722_s19] sm:$0xff]  ;;  %5393 = vst [vmem:[#allocation45_spill] sm:$0xff] %v4304_v17  ;;  %971 = vmatprep.subr.mxu1 %v4304_v17  ;;  %5394 = vst [vmem:[#allocation46_spill] sm:$0xff] %v4370_v18  ;;  %p728_p3 = scmp.gt.s32.totalorder %s4389_s26, 0  ;;  %p1103_p4 = scmp.gt.s32.totalorder %s2999_s7, 0 }
 0x97c   : > { %797 = vmatprep.subr.mxu0 %v4177_v56  ;;  %v735_v11 = vsel %vm186_vm0, %v723_v10, 0.0  ;;  %5389 = vst [vmem:[#allocation41_spill] sm:$0xff] %v4278_v19  ;;  %5390 = vst [vmem:[#allocation42_spill] sm:$0xff] %v4282_v20  ;;  %p3000_p5 = scmp.lt.s32.totalorder %s2999_s7, 7  ;;  %v4405_v15 = vld [vmem:[#allocation17 + $0x110] sm:$0xff]  ;;  %s3815_s0 = smov 96  }
 0x97d   : > { %798 = vmatpush1.msra.mxu0 %v4180_v57  ;;  %5395 = vst [vmem:[#allocation47_spill] sm:$0xff] %v4373_v16  ;;  %s729_s28 = scalar_select %p728_p3, 1, 0  ;;  %5401 = vst [vmem:[#allocation53_spill] sm:$0xff] %v4405_v15 }
 0x97e   : > { %799 = vmatprep.subr.mxu0 %v4183_v58  ;;  %s1104_s5 = scalar_select %p1103_p4, %s2999_s7, 0 }
 0x97f   : > { %800 = vmatpush1.msra.mxu0 %v4186_v59  ;;  %s730_s14 = scvt.s32.f32 %s729_s28  ;;  %p1099_p6 = scmp.lt.s32.totalorder %s4384_s1, 7 }
 0x980   : > { %801 = vmatprep.subr.mxu0 %v4189_v60  ;;  %s5477_s5 = smov (!%p3000_p5, %s1104_s5), 7  ;;  %p1113_p7 = scmp.gt.s32.totalorder %s4389_s26, 1 }
 0x981   : > { %802 = vmatpush1.msra.mxu0 %v4192_v61  ;;  %s904_s27 = ssub.f32 1.0, %s730_s14  ;;  %s3006_s4 = sshll.u32 %s5477_s5, 3 }
 0x982   : > { %803 = vmatprep.subr.mxu0 %v4195_v62  ;;  %s1111_s30 = scalar_lea.vmem [#allocation3], %s3006_s4  ;;  %s5479_s1 = smov (!%p1099_p6, %s4384_s1), 7 }
 0x983   : > { %804 = vmatpush1.msra.mxu0 %v4198_v63  ;;  %s3005_s19 = sshll.u32 %s5479_s1, 3  ;;  %s3011_s21 = sadd.s32 4294967294, %s4387_s24 }
 0x984   : > { %805 = vmatprep.subr.mxu0 %v4201_v0  ;;  %s1108_s20 = scalar_lea.vmem [#allocation3], %s3005_s19  ;;  %p1410_p8 = scmp.gt.s32.totalorder %s3011_s21, 0 }
 0x985   : > { %806 = vmatpush1.msra.mxu0 %v4204_v1  ;;  %s1114_s22 = scalar_select %p1113_p7, 1, 0 }
 0x986   : > { %807 = vmatprep.subr.mxu0 %v4207_v2  ;;  %s1411_s7 = scalar_select %p1410_p8, %s3011_s21, 0 }
 0x987   : > { %808 = vmatpush1.msra.mxu0 %v4210_v3  ;;  %s1115_s1 = scvt.s32.f32 %s1114_s22  ;;  %p3012_p9 = scmp.lt.s32.totalorder %s3011_s21, 7 }
 0x988   : > { %809 = vmatprep.subr.mxu0 %v4213_v4  ;;  %p1420_p11 = scmp.gt.s32.totalorder %s4389_s26, 2  ;;  %s3023_s19 = sadd.s32 4294967293, %s4387_s24 }
 0x989   : > { %810 = vmatpush1.msra.mxu0 %v4216_v5  ;;  %s1247_s28 = ssub.f32 1.0, %s1115_s1  ;;  %s5481_s7 = smov (!%p3012_p9, %s1411_s7), 7 }
 0x98a   : > { %811 = vmatprep.subr.mxu0 %v4219_v6  ;;  %s3018_s5 = sshll.u32 %s5481_s7, 3  ;;  %p1717_p12 = scmp.gt.s32.totalorder %s3023_s19, 0 }
 0x98b   : > { %812 = vmatpush1.msra.mxu0 %v4222_v7  ;;  %p3024_p13 = scmp.lt.s32.totalorder %s3023_s19, 7  ;;  %p1727_p1 = scmp.gt.s32.totalorder %s4389_s26, 3 }
 0x98c   : > { %813 = vmatprep.subr.mxu0 %v4225_v8  ;;  %s1718_s22 = scalar_select %p1717_p12, %s3023_s19, 0 }
 0x98d   : > { %814 = vmatpush1.msra.mxu0 %v4228_v9  ;;  %p2034_p5 = scmp.gt.s32.totalorder %s4389_s26, 4 }
 0x98e   : > { %1126 = vmatprep.subr.mxu0 %v4130_v40  ;;  %s5485_s22 = smov (!%p3024_p13, %s1718_s22), 7 }
 0x98f   : > { %s3030_s7 = sshll.u32 %s5485_s22, 3 }
 0x9ea   : > { %v733_v12 = vpop.permute.xlu0 %732 }
 0x9eb   : > { %v737_v13 = vsel %vm736_vm6, %v735_v11, %v733_v12 }
 0x9ec   : > { %2993 = vmatmul.mubr.msk.f32.vlgmr.msra.gmra.mxu0 %vm195_vm1, %v737_v13 }
 0x9ed   : > { %1127 = vmatpush1.msra.mxu0 %v4132_v41  ;;  %1190 = vmatprep.mubr.f32.mxu0 %v5312_v44  ;;  %v4376_v44 = vld [vmem:[#allocation17 + $0x138] sm:$0xff] }
 0x9ee   : > { %1128 = vmatprep.subr.mxu0 %v4134_v42  ;;  %5396 = vst [vmem:[#allocation48_spill] sm:$0xff] %v4376_v44 }
 0x9ef   : > { %1129 = vmatpush1.msra.mxu0 %v4138_v43 }
 0x9f0   : > { %1130 = vmatprep.subr.mxu0 %v4144_v45 }
 0x9f1   : > { %1131 = vmatpush1.msra.mxu0 %v4148_v46 }
 0x9f2   : > { %1132 = vmatprep.subr.mxu0 %v4151_v47 }
 0x9f3   : > { %1133 = vmatpush1.msra.mxu0 %v4154_v48 }
 0x9f4   : > { %1134 = vmatprep.subr.mxu0 %v4157_v49 }
 0x9f5   : > { %1135 = vmatpush1.msra.mxu0 %v4160_v50 }
 0x9f6   : > { %1136 = vmatprep.subr.mxu0 %v4164_v51 }
 0x9f7   : > { %1137 = vmatpush1.msra.mxu0 %v4167_v52 }
 0x9f8   : > { %1138 = vmatprep.subr.mxu0 %v4170_v54 }
 0x9f9   : > { %1139 = vmatpush1.msra.mxu0 %v4174_v55 }
 0x9fa   : > { %1140 = vmatprep.subr.mxu0 %v4177_v56 }
 0x9fb   : > { %1141 = vmatpush1.msra.mxu0 %v4180_v57 }
 0x9fc   : > { %1142 = vmatprep.subr.mxu0 %v4183_v58 }
 0x9fd   : > { %1143 = vmatpush1.msra.mxu0 %v4186_v59 }
 0x9fe   : > { %1144 = vmatprep.subr.mxu0 %v4189_v60 }
 0x9ff   : > { %1145 = vmatpush1.msra.mxu0 %v4192_v61 }
 0xa00   : > { %1146 = vmatprep.subr.mxu0 %v4195_v62 }
 0xa01   : > { %1147 = vmatpush1.msra.mxu0 %v4198_v63 }
 0xa02   : > { %1148 = vmatprep.subr.mxu0 %v4201_v0 }
 0xa03   : > { %1149 = vmatpush1.msra.mxu0 %v4204_v1 }
 0xa04   : > { %1150 = vmatprep.subr.mxu0 %v4207_v2 }
 0xa05   : > { %1151 = vmatpush1.msra.mxu0 %v4210_v3 }
 0xa06   : > { %1152 = vmatprep.subr.mxu0 %v4213_v4  ;;  %v1112_v4 = vld [vmem:[%s1111_s30] sm:$0xff] }
 0xa07   : > { %1153 = vmatpush1.msra.mxu0 %v4216_v5 }
 0xa08   : > { %1154 = vmatprep.subr.mxu0 %v4219_v6 }
 0xa09   : > { %1155 = vmatpush1.msra.mxu0 %v4222_v7 }
 0xa0a   : > { %1156 = vmatprep.subr.mxu0 %v4225_v8  ;;  %v905_v8 = vstv %s904_s27  ;;  %s1406_s27 = sadd.s32 2, %s4141_s25 }
 0xa0b   : > { %1157 = vmatpush1.msra.mxu0 %v4228_v9  ;;  %v4410_v9 = vld [vmem:[#allocation17 + $0x100] sm:$0xff]  ;;  %p1407_p10 = scmp.lt.s32.totalorder %s1406_s27, 7 }
 0xa0c   : > { %1433 = vmatprep.subr.mxu0 %v4130_v40  ;;  %v4407_v40 = vld [vmem:[#allocation17 + $0x108] sm:$0xff]  ;;  %5403 = vst [vmem:[#allocation55_spill] sm:$0xff] %v4410_v9 }
 0xa0d   : > { %5402 = vst [vmem:[#allocation54_spill] sm:$0xff] %v4407_v40  ;;  %s5483_s27 = smov (!%p1407_p10, %s1406_s27), 7 }
 0xa0e   : > { %s3017_s4 = sshll.u32 %s5483_s27, 3 }
 0xa0f   : > { %s1415_s30 = scalar_lea.vmem [#allocation3], %s3017_s4  ;;  %s3035_s4 = sadd.s32 4294967292, %s4387_s24 }
 0xa10   : > { %p2024_p2 = scmp.gt.s32.totalorder %s3035_s4, 0  ;;  %p3036_p3 = scmp.lt.s32.totalorder %s3035_s4, 7 }
 0xaac   : > { %v849_v21 = vpop.f32.mrf.mxu0 }
 0xaad   : > { %v850_v22 = vadd.f32 %v849_v21, %v4278_v19  ;;  %v4306_v21 = vld [vmem:[#allocation17 + $0x1f0] sm:$0xff]  ;;  %v4402_v19 = vld [vmem:[#allocation17 + $0x118] sm:$0xff] }
 0xaae   : > { %v851_v23 = vpop.f32.mrf.mxu0  ;;  %972 = vmatpush1.msra.mxu1 %v4306_v21  ;;  %5400 = vst [vmem:[#allocation52_spill] sm:$0xff] %v4402_v19 }
 0xaaf   : > { %3320 = vtanh.f32 %v850_v22  ;;  %v852_v24 = vadd.f32 %v851_v23, %v4282_v20  ;;  %v2994_v27 = vmul.f32 -1.442695, %v850_v22  ;;  %v4308_v22 = vld [vmem:[#allocation17 + $0x1e8] sm:$0xff]  ;;  %v4312_v23 = vld [vmem:[#allocation17 + $0x1e0] sm:$0xff] }
 0xab0   : > { %973 = vmatprep.subr.mxu1 %v4308_v22  ;;  %v4399_v20 = vld [vmem:[#allocation17 + $0x120] sm:$0xff] }
 0xab1   : > { %3322 = vtanh.f32 %v852_v24  ;;  %v2995_v28 = vmul.f32 -1.442695, %v852_v24  ;;  %v4315_v24 = vld [vmem:[#allocation17 + $0x1d8] sm:$0xff]  ;;  %974 = vmatpush1.msra.mxu1 %v4312_v23  ;;  %5399 = vst [vmem:[#allocation51_spill] sm:$0xff] %v4399_v20 }
 0xab2   : > { %3324 = vpow2.f32 %v2994_v27  ;;  %v4322_v27 = vld [vmem:[#allocation17 + $0x1c8] sm:$0xff]  ;;  %975 = vmatprep.subr.mxu1 %v4315_v24 }
 0xab3   : > { %3326 = vpow2.f32 %v2995_v28  ;;  %v4325_v28 = vld [vmem:[#allocation17 + $0x1c0] sm:$0xff] }
 0xabc   : > { %v3321_v25 = vpop.eup %3320 }
 0xabd   : > { %863 = vrot.lane.b32.xlu0 %v3321_v25, %s3813_s3 }
 0xabe   : > { %v3323_v26 = vpop.eup %3322 }
 0xabf   : > { %887 = vrot.lane.b32.xlu1 %v3323_v26, %s3813_s3  ;;  %v3325_v29 = vpop.eup %3324  ;;  %v4318_v26 = vld [vmem:[#allocation17 + $0x1d0] sm:$0xff] }
 0xac0   : > { %v3327_v30 = vpop.eup %3326  ;;  %v857_v31 = vadd.f32 1.0, %v3325_v29  ;;  %976 = vmatpush1.msra.mxu1 %v4318_v26  ;;  %v4328_v29 = vld [vmem:[#allocation17 + $0x1b8] sm:$0xff] }
 0xac1   : > { %v881_v32 = vadd.f32 1.0, %v3327_v30  ;;  %977 = vmatprep.subr.mxu1 %v4322_v27  ;;  %v4331_v30 = vld [vmem:[#allocation17 + $0x1b0] sm:$0xff] }
 0xac2   : > { %3328 = vrcp.f32 %v857_v31  ;;  %978 = vmatpush1.msra.mxu1 %v4325_v28  ;;  %v4334_v31 = vld [vmem:[#allocation17 + $0x1a8] sm:$0xff] }
 0xac3   : > { %3330 = vrcp.f32 %v881_v32  ;;  %979 = vmatprep.subr.mxu1 %v4328_v29  ;;  %v4337_v32 = vld [vmem:[#allocation17 + $0x1a0] sm:$0xff] }
 0xac4   : > { %980 = vmatpush1.msra.mxu1 %v4331_v30 }
 0xac5   : > { %981 = vmatprep.subr.mxu1 %v4334_v31 }
 0xac6   : > { %982 = vmatpush1.msra.mxu1 %v4337_v32 }
 0xacf   : > { %v4288_v33 = vpop.eup %3328 }
 0xad0   : > { %v4291_v36 = vpop.eup %3330  ;;  %v861_v39 = vmul.f32 0.0, %v4288_v33 }
 0xad1   : > { %v885_v11 = vmul.f32 0.0, %v4291_v36 }
 0xb2f   : > { %v864_v34 = vpop.permute.xlu0 %863 }
 0xb30   : > { %v866_v35 = vmul.f32 %v4288_v33, %v864_v34  ;;  %v4340_v34 = vld [vmem:[#allocation17 + $0x198] sm:$0xff] }
 0xb31   : > { %v888_v37 = vpop.permute.xlu1 %887  ;;  %983 = vmatprep.subr.mxu1 %v4340_v34 }
 0xb32   : > { %868 = vrot.lane.b32.xlu1 %v866_v35, %s3814_s8  ;;  %v890_v38 = vmul.f32 %v4291_v36, %v888_v37  ;;  %v4343_v35 = vld [vmem:[#allocation17 + $0x190] sm:$0xff]  ;;  %v4346_v37 = vld [vmem:[#allocation17 + $0x188] sm:$0xff] }
 0xb33   : > { %984 = vmatpush1.msra.mxu1 %v4343_v35 }
 0xb34   : > { %892 = vrot.lane.b32.xlu0 %v890_v38, %s3814_s8  ;;  %v4349_v38 = vld [vmem:[#allocation17 + $0x180] sm:$0xff]  ;;  %985 = vmatprep.subr.mxu1 %v4346_v37 }
 0xb35   : > { %986 = vmatpush1.msra.mxu1 %v4349_v38 }
 0xba4   : > { %v869_v53 = vpop.permute.xlu1 %868 }
 0xba5   : > { %v4297_v10 = vadd.f32 %v869_v53, %v861_v39  ;;  %v4352_v39 = vld [vmem:[#allocation17 + $0x178] sm:$0xff]  ;;  %v4355_v53 = vld [vmem:[#allocation17 + $0x170] sm:$0xff] }
 0xba6   : > { %v893_v12 = vpop.permute.xlu0 %892  ;;  %987 = vmatprep.subr.mxu1 %v4352_v39 }
 0xba7   : > { %5391 = vst [vmem:[#allocation43_spill] sm:$0xff] %v4297_v10  ;;  %3332 = vtanh.f32 %v4297_v10  ;;  %v4301_v13 = vadd.f32 %v893_v12, %v885_v11  ;;  %v4358_v11 = vld [vmem:[#allocation17 + $0x168] sm:$0xff]  ;;  %v4361_v12 = vld [vmem:[#allocation17 + $0x160] sm:$0xff]  ;;  %988 = vmatpush1.msra.mxu1 %v4355_v53 }
 0xba8   : > { %989 = vmatprep.subr.mxu1 %v4358_v11  ;;  %v4395_v10 = vld [vmem:[#allocation17 + $0x128] sm:$0xff] }
 0xba9   : > { %5392 = vst [vmem:[#allocation44_spill] sm:$0xff] %v4301_v13  ;;  %3334 = vtanh.f32 %v4301_v13  ;;  %990 = vmatpush1.msra.mxu1 %v4361_v12  ;;  %v4393_v13 = vld [vmem:[#allocation17 + $0x130] sm:$0xff]  ;;  %5398 = vst [vmem:[#allocation50_spill] sm:$0xff] %v4395_v10 }
 0xbaa   : > { %5397 = vst [vmem:[#allocation49_spill] sm:$0xff] %v4393_v13 }
 0xbb4   : > { %v3333_v14 = vpop.eup %3332 }
 0xbb5   : > { %874 = vrot.lane.b32.xlu1 %v3333_v14, %s3813_s3  ;;  %v4364_v14 = vld [vmem:[#allocation17 + $0x158] sm:$0xff] }
 0xbb6   : > { %v3335_v25 = vpop.eup %3334  ;;  %991 = vmatprep.subr.mxu1 %v4364_v14 }
 0xbb7   : > { %898 = vrot.lane.b32.xlu0 %v3335_v25, %s3813_s3  ;;  %v4367_v25 = vld [vmem:[#allocation17 + $0x150] sm:$0xff] }
 0xbb8   : > { %992 = vmatpush1.msra.mxu1 %v4367_v25 }
 0xbb9   : > { %993 = vmatprep.subr.mxu1 %v4370_v18 }
 0xbba   : > { %994 = vmatpush1.msra.mxu1 %v4373_v16 }
 0xbbb   : > { %995 = vmatprep.subr.mxu1 %v4376_v44 }
 0xbbc   : > { %996 = vmatpush1.msra.mxu1 %v4393_v13 }
 0xbbd   : > { %997 = vmatprep.subr.mxu1 %v4395_v10 }
 0xbbe   : > { %998 = vmatpush1.msra.mxu1 %v4399_v20  ;;  %v4415_v20 = vstv %s730_s14  ;;  %s1418_s14 = scalar_lea.vmem [#allocation3], %s3018_s5  ;;  %s1713_s5 = sadd.s32 3, %s4141_s25 }
 0xbbf   : > { %999 = vmatprep.subr.mxu1 %v4402_v19  ;;  %5404 = vst [vmem:[#allocation56_spill] sm:$0xff] %v4415_v20  ;;  %v4418_v19 = vmul.f32 0.0, %v905_v8  ;;  %p1714_p0 = scmp.lt.s32.totalorder %s1713_s5, 7 }
 0xbc0   : > { %1000 = vmatpush1.msra.mxu1 %v4405_v15 }
 0xbc1   : > { %1001 = vmatprep.subr.mxu1 %v4407_v40  ;;  %5405 = vst [vmem:[#allocation57_spill] sm:$0xff] %v4418_v19  ;;  %s5487_s5 = smov (!%p1714_p0, %s1713_s5), 7 }
 0xbc2   : > { %1002 = vmatpush1.msra.mxu1 %v4410_v9 }
 0xbc3   : > { %1275 = vmatprep.subr.mxu1 %v4304_v17 }
 0xc27   : > { %v875_v7 = vpop.permute.xlu1 %874 }
 0xc28   : > { %v877_v6 = vmul.f32 %v4288_v33, %v875_v7 }
 0xc29   : > { %v899_v5 = vpop.permute.xlu0 %898 }
 0xc2a   : > { %v903_v15 = vmul.f32 %v4415_v20, %v877_v6  ;;  %v901_v10 = vmul.f32 %v4291_v36, %v899_v5  ;;  %v1109_v5 = vld [vmem:[%s1108_s20] sm:$0xff]  ;;  %s1421_s20 = scalar_select %p1420_p11, 1, 0 }
 0xc2c   : > { %v4423_v40 = vadd.f32 %v4418_v19, %v903_v15  ;;  %v910_v7 = vmul.f32 %v4415_v20, %v901_v10  ;;  %s1422_s21 = scvt.s32.f32 %s1421_s20 }
 0xc2d   : > { %s2025_s20 = scalar_select %p2024_p2, %s3035_s4, 0 }
 0xc2e   : > { %5406 = vst [vmem:[#allocation58_spill] sm:$0xff] %v4423_v40  ;;  %915 = vrot.lane.b32.xlu0 %v4423_v40, %s3814_s8  ;;  %v3300_v33 = vpack.i.bf16 %v1112_v4, %v4423_v40  ;;  %v4431_v8 = vadd.f32 %v910_v7, %v4418_v19 }
 0xc2f   : > { %s5489_s20 = smov (!%p3036_p3, %s2025_s20), 7 }
 0xc30   : > { %3301 = vrot.lane.b32.xlu1 %v3300_v33, %s3813_s3  ;;  %s3042_s24 = sshll.u32 %s5489_s20, 3 }
 0xc31   : > { %s2032_s22 = scalar_lea.vmem [#allocation3], %s3042_s24 }
 0xc34   : > { %919 = vrot.lane.b32.xlu1 %v4431_v8, %s3815_s0 }
 0xca0   : > { %v916_v15 = vpop.permute.xlu0 %915 }
 0xca1   : > { %v922_v33 = vsel %vm186_vm0, %v916_v15, 0.0  ;;  %v5412_v15 = vld [vmem:[#allocation52_spill] sm:$0xff] }
 0xca2   : > { %v3302_v6 = vpop.permute.xlu1 %3301 }
 0xca3   : > { %v3304_v36 = vunpack.i.h.bf16 %v3302_v6  ;;  %v3303_v10 = vunpack.i.l.bf16 %v3302_v6  ;;  %v5411_v6 = vld [vmem:[#allocation36_spill] sm:$0xff] }
 0xca5   : > { %v1123_v4 = vsel %vm186_vm0, %v1109_v5, %v3303_v10  ;;  %v5410_v5 = vld [vmem:[#allocation51_spill] sm:$0xff]  ;;  %v5414_v10 = vld [vmem:[#allocation53_spill] sm:$0xff] }
 0xca6   : > { %v920_v40 = vpop.permute.xlu1 %919  ;;  %v1124_v7 = vsel %vm736_vm6, %v1123_v4, %v3304_v36  ;;  %v5413_v36 = vld [vmem:[#allocation37_spill] sm:$0xff]  ;;  %v5415_v4 = vld [vmem:[#allocation38_spill] sm:$0xff] }
 0xca7   : > { %v923_v19 = vsel %vm736_vm6, %v922_v33, %v920_v40  ;;  %v1125_v20 = vsel %vm195_vm1, %v1124_v7, %v4431_v8  ;;  %v5407_v40 = vld [vmem:[#allocation34_spill] sm:$0xff]  ;;  %v5416_v33 = vmov 0.0   ;;  %v5417_v7 = vld [vmem:[#allocation39_spill] sm:$0xff] }
 0xca8   : > { %2996 = vmatmul.mubr.msk.f32.vlgmr.msra.gmra.mxu1 %vm195_vm1, %v923_v19  ;;  %1191 = vmatmul.mubr.f32.vlgmr.msra.gmra.mxu0 %v1125_v20  ;;  %v5408_v19 = vld [vmem:[#allocation50_spill] sm:$0xff]  ;;  %v5409_v20 = vld [vmem:[#allocation35_spill] sm:$0xff] }
 0xca9   : > { %1434 = vmatpush1.msra.mxu0 %v4132_v41  ;;  %1276 = vmatpush1.msra.mxu1 %v4306_v21 }
 0xcaa   : > { %1435 = vmatprep.subr.mxu0 %v4134_v42  ;;  %1277 = vmatprep.subr.mxu1 %v4308_v22 }
 0xcab   : > { %1436 = vmatpush1.msra.mxu0 %v4138_v43  ;;  %1278 = vmatpush1.msra.mxu1 %v4312_v23 }
 0xcac   : > { %1437 = vmatprep.subr.mxu0 %v4144_v45  ;;  %1279 = vmatprep.subr.mxu1 %v4315_v24 }
 0xcad   : > { %1438 = vmatpush1.msra.mxu0 %v4148_v46  ;;  %1280 = vmatpush1.msra.mxu1 %v4318_v26 }
 0xcae   : > { %1439 = vmatprep.subr.mxu0 %v4151_v47  ;;  %1281 = vmatprep.subr.mxu1 %v4322_v27 }
 0xcaf   : > { %1440 = vmatpush1.msra.mxu0 %v4154_v48  ;;  %1282 = vmatpush1.msra.mxu1 %v4325_v28 }
 0xcb0   : > { %1441 = vmatprep.subr.mxu0 %v4157_v49  ;;  %1283 = vmatprep.subr.mxu1 %v4328_v29 }
 0xcb1   : > { %1442 = vmatpush1.msra.mxu0 %v4160_v50  ;;  %1284 = vmatpush1.msra.mxu1 %v4331_v30 }
 0xcb2   : > { %1443 = vmatprep.subr.mxu0 %v4164_v51  ;;  %1285 = vmatprep.subr.mxu1 %v4334_v31 }
 0xcb3   : > { %1444 = vmatpush1.msra.mxu0 %v4167_v52  ;;  %1286 = vmatpush1.msra.mxu1 %v4337_v32 }
 0xcb4   : > { %1445 = vmatprep.subr.mxu0 %v4170_v54  ;;  %1287 = vmatprep.subr.mxu1 %v4340_v34 }
 0xcb5   : > { %1446 = vmatpush1.msra.mxu0 %v4174_v55  ;;  %1288 = vmatpush1.msra.mxu1 %v4343_v35 }
 0xcb6   : > { %1447 = vmatprep.subr.mxu0 %v4177_v56  ;;  %1289 = vmatprep.subr.mxu1 %v4346_v37 }
 0xcb7   : > { %1448 = vmatpush1.msra.mxu0 %v4180_v57  ;;  %1290 = vmatpush1.msra.mxu1 %v4349_v38 }
 0xcb8   : > { %1449 = vmatprep.subr.mxu0 %v4183_v58  ;;  %1291 = vmatprep.subr.mxu1 %v4352_v39 }
 0xcb9   : > { %1450 = vmatpush1.msra.mxu0 %v4186_v59  ;;  %1292 = vmatpush1.msra.mxu1 %v4355_v53 }
 0xcba   : > { %1451 = vmatprep.subr.mxu0 %v4189_v60  ;;  %1293 = vmatprep.subr.mxu1 %v4358_v11 }
 0xcbb   : > { %1452 = vmatpush1.msra.mxu0 %v4192_v61  ;;  %1294 = vmatpush1.msra.mxu1 %v4361_v12 }
 0xcbc   : > { %1453 = vmatprep.subr.mxu0 %v4195_v62  ;;  %1295 = vmatprep.subr.mxu1 %v4364_v14 }
 0xcbd   : > { %1454 = vmatpush1.msra.mxu0 %v4198_v63  ;;  %1296 = vmatpush1.msra.mxu1 %v4367_v25 }
 0xcbe   : > { %1455 = vmatprep.subr.mxu0 %v4201_v0  ;;  %1297 = vmatprep.subr.mxu1 %v4370_v18 }
 0xcbf   : > { %1456 = vmatpush1.msra.mxu0 %v4204_v1  ;;  %1298 = vmatpush1.msra.mxu1 %v4373_v16 }
 0xcc0   : > { %1457 = vmatprep.subr.mxu0 %v4207_v2  ;;  %1299 = vmatprep.subr.mxu1 %v4376_v44 }
 0xcc1   : > { %1458 = vmatpush1.msra.mxu0 %v4210_v3  ;;  %1300 = vmatpush1.msra.mxu1 %v4393_v13  ;;  %v5418_v13 = vld [vmem:[#allocation54_spill] sm:$0xff] }
 0xcc2   : > { %1459 = vmatprep.subr.mxu0 %v5407_v40  ;;  %1301 = vmatprep.subr.mxu1 %v5408_v19 }
 0xcc3   : > { %1460 = vmatpush1.msra.mxu0 %v5409_v20  ;;  %1302 = vmatpush1.msra.mxu1 %v5410_v5  ;;  %v5419_v5 = vld [vmem:[#allocation30_spill] sm:$0xff] }
 0xcc4   : > { %1461 = vmatprep.subr.mxu0 %v5411_v6  ;;  %1303 = vmatprep.subr.mxu1 %v5412_v15  ;;  %v959_v15 = vld [vmem:[#allocation19 + $0x1] ss:$2 sm:$0x3] }
 0xcc5   : > { %1462 = vmatpush1.msra.mxu0 %v5413_v36  ;;  %1304 = vmatpush1.msra.mxu1 %v5414_v10  ;;  %v5420_v36 = vld [vmem:[#allocation40_spill] sm:$0xff] }
 0xcc6   : > { %1463 = vmatprep.subr.mxu0 %v5415_v4  ;;  %1497 = vmatprep.mubr.f32.mxu0 %v5416_v33  ;;  %v5421_v6 = vsub.s32 0, %v5420_v36 }
 0xcc7   : > { %1464 = vmatpush1.msra.mxu0 %v5417_v7  ;;  %1305 = vmatprep.subr.mxu1 %v5418_v13  ;;  %v5423_v7 = vld [vmem:[#allocation41_spill] sm:$0xff] }
 0xcc8   : > { %1306 = vmatpush1.msra.mxu1 %v4410_v9  ;;  %1339 = vmatprep.mubr.f32.mxu1 %v5416_v33  ;;  %v4512_v10 = vrot.slane %v959_v15, %v5421_v6  ;;  %v5424_v9 = vld [vmem:[#allocation42_spill] sm:$0xff] }
 0xcc9   : > { %1582 = vmatprep.subr.mxu1 %v4304_v17  ;;  %1740 = vmatprep.subr.mxu0 %v5419_v5 }
 0xcca   : > { %5422 = vst [vmem:[#allocation30_spill] sm:$0xff] %v4512_v10 }
 0xd68   : > { %v1037_v4 = vpop.f32.mrf.mxu1  ;;  %v1192_v19 = vpop.f32.mrf.mxu0 }
 0xd69   : > { %v1038_v20 = vadd.f32 %v1037_v4, %v4512_v10  ;;  %v1193_v40 = vadd.f32 %v1192_v19, %v5423_v7 }
 0xd6a   : > { %v1194_v13 = vpop.f32.mrf.mxu0 }
 0xd6b   : > { %3336 = vtanh.f32 %v1038_v20  ;;  %v1195_v44 = vadd.f32 %v1194_v13, %v5424_v9  ;;  %v2997_v6 = vmul.f32 -1.442695, %v1038_v20  ;;  %v3007_v16 = vmul.f32 -1.442695, %v1193_v40 }
 0xd6c   : > { %3338 = vtanh.f32 %v1193_v40  ;;  %v5425_v9 = vsub.s32 1, %v5420_v36 }
 0xd6d   : > { %3340 = vtanh.f32 %v1195_v44  ;;  %v3008_v19 = vmul.f32 -1.442695, %v1195_v44 }
 0xd6e   : > { %3342 = vpow2.f32 %v2997_v6  ;;  %v4522_v2 = vrot.slane %v959_v15, %v5425_v9 }
 0xd6f   : > { %3344 = vpow2.f32 %v3007_v16 }
 0xd70   : > { %3346 = vpow2.f32 %v3008_v19  ;;  %5426 = vst [vmem:[#allocation40_spill] sm:$0xff] %v4522_v2 }
 0xd78   : > { %v3337_v17 = vpop.eup %3336 }
 0xd79   : > { %v3339_v3 = vpop.eup %3338  ;;  %1051 = vrot.lane.b32.xlu1 %v3337_v17, %s3813_s3  ;;  %v1039_v17 = vpop.f32.mrf.mxu1 }
 0xd7a   : > { %1206 = vrot.lane.b32.xlu0 %v3339_v3, %s3813_s3  ;;  %v3341_v5 = vpop.eup %3340  ;;  %v1040_v3 = vadd.f32 %v1039_v17, %v4522_v2  ;;  %v5428_v17 = vld [vmem:[#allocation56_spill] sm:$0xff] }
 0xd7b   : > { %v3343_v4 = vpop.eup %3342 }
 0xd7c   : > { %v3345_v10 = vpop.eup %3344  ;;  %v1045_v7 = vadd.f32 1.0, %v3343_v4 }
 0xd7d   : > { %v1200_v13 = vadd.f32 1.0, %v3345_v10  ;;  %v3347_v18 = vpop.eup %3346 }
 0xd7e   : > { %1230 = vrot.lane.b32.xlu0 %v3341_v5, %s3813_s3  ;;  %3348 = vrcp.f32 %v1045_v7  ;;  %v1224_v20 = vadd.f32 1.0, %v3347_v18  ;;  %v2998_v18 = vmul.f32 -1.442695, %v1040_v3 }
 0xd7f   : > { %3350 = vrcp.f32 %v1200_v13  ;;  %v5427_v13 = vld [vmem:[#allocation43_spill] sm:$0xff] }
 0xd80   : > { %3352 = vtanh.f32 %v1040_v3 }
 0xd81   : > { %3354 = vrcp.f32 %v1224_v20  ;;  %v908_v20 = vmul.f32 %v5428_v17, %v5427_v13 }
 0xd82   : > { %3356 = vpow2.f32 %v2998_v18 }
 0xd8b   : > { %v3349_v16 = vpop.eup %3348 }
 0xd8c   : > { %v3351_v40 = vpop.eup %3350 }
 0xd8d   : > { %v3353_v9 = vpop.eup %3352 }
 0xd8e   : > { %v4527_v15 = vpop.eup %3354 }
 0xd8f   : > { %v3357_v7 = vpop.eup %3356 }
 0xd90   : > { %v1069_v4 = vadd.f32 1.0, %v3357_v7 }
 0xd92   : > { %3358 = vrcp.f32 %v1069_v4 }
 0xd9f   : > { %v3359_v7 = vpop.eup %3358 }
 0xdeb   : > { %v1052_v44 = vpop.permute.xlu1 %1051 }
 0xdec   : > { %v1054_v5 = vmul.f32 %v3349_v16, %v1052_v44  ;;  %v1207_v6 = vpop.permute.xlu0 %1206  ;;  %v5429_v44 = vld [vmem:[#allocation57_spill] sm:$0xff] }
 0xded   : > { %v1209_v19 = vmul.f32 %v3351_v40, %v1207_v6  ;;  %v1049_v6 = vmul.f32 0.0, %v3349_v16 }
 0xdee   : > { %1056 = vrot.lane.b32.xlu0 %v1054_v5, %s3814_s8  ;;  %v4535_v5 = vadd.f32 %v908_v20, %v5429_v44 }
 0xdef   : > { %1211 = vrot.lane.b32.xlu1 %v1209_v19, %s3814_s8  ;;  %v5431_v19 = vld [vmem:[#allocation44_spill] sm:$0xff] }
 0xdf0   : > { %v1231_v36 = vpop.permute.xlu0 %1230  ;;  %5430 = vst [vmem:[#allocation43_spill] sm:$0xff] %v4535_v5  ;;  %v912_v2 = vmul.f32 %v5428_v17, %v5431_v19 }
 0xdf1   : > { %v1233_v10 = vmul.f32 %v4527_v15, %v1231_v36 }
 0xdf2   : > { %v4547_v18 = vadd.f32 %v912_v2, %v5429_v44 }
 0xdf3   : > { %1075 = vrot.lane.b32.xlu1 %v3353_v9, %s3813_s3  ;;  %1235 = vrot.lane.b32.xlu0 %v1233_v10, %s3814_s8  ;;  %v1204_v9 = vmul.f32 %v3351_v40, %v4535_v5 }
 0xdf4   : > { %5433 = vst [vmem:[#allocation57_spill] sm:$0xff] %v4547_v18  ;;  %v1228_v13 = vmul.f32 %v4527_v15, %v4547_v18 }
 0xe60   : > { %v1057_v36 = vpop.permute.xlu0 %1056 }
 0xe61   : > { %v4540_v1 = vadd.f32 %v1057_v36, %v1049_v6  ;;  %v1212_v3 = vpop.permute.xlu1 %1211 }
 0xe62   : > { %v4542_v10 = vadd.f32 %v1212_v3, %v1204_v9  ;;  %v1073_v3 = vmul.f32 0.0, %v3359_v7 }
 0xe63   : > { %5432 = vst [vmem:[#allocation56_spill] sm:$0xff] %v4540_v1  ;;  %3360 = vtanh.f32 %v4540_v1 }
 0xe64   : > { %3362 = vtanh.f32 %v4542_v10 }
 0xe65   : > { %v1076_v4 = vpop.permute.xlu1 %1075  ;;  %v1236_v6 = vpop.permute.xlu0 %1235 }
 0xe66   : > { %v1078_v20 = vmul.f32 %v3359_v7, %v1076_v4  ;;  %v4551_v19 = vadd.f32 %v1236_v6, %v1228_v13 }
 0xe68   : > { %5434 = vst [vmem:[#allocation44_spill] sm:$0xff] %v4551_v19  ;;  %1080 = vrot.lane.b32.xlu1 %v1078_v20, %s3814_s8  ;;  %3364 = vtanh.f32 %v4551_v19  ;;  %v4566_v19 = vstv %s1247_s28  ;;  %s1725_s28 = scalar_lea.vmem [#allocation3], %s3030_s7 }
 0xe69   : > { %5436 = vst [vmem:[#allocation60_spill] sm:$0xff] %v4566_v19 }
 0xe70   : > { %v3361_v36 = vpop.eup %3360 }
 0xe71   : > { %v3363_v9 = vpop.eup %3362  ;;  %1062 = vrot.lane.b32.xlu1 %v3361_v36, %s3813_s3 }
 0xe72   : > { %1217 = vrot.lane.b32.xlu0 %v3363_v9, %s3813_s3 }
 0xe75   : > { %v3365_v2 = vpop.eup %3364 }
 0xe76   : > { %1241 = vrot.lane.b32.xlu0 %v3365_v2, %s3813_s3  ;;  %v4563_v2 = vstv %s1115_s1  ;;  %s1554_s1 = ssub.f32 1.0, %s1422_s21 }
 0xeda   : > { %v1081_v4 = vpop.permute.xlu1 %1080 }
 0xedb   : > { %v4560_v13 = vadd.f32 %v1081_v4, %v1073_v3  ;;  %v5437_v4 = vld [vmem:[#allocation58_spill] sm:$0xff] }
 0xedd   : > { %5435 = vst [vmem:[#allocation59_spill] sm:$0xff] %v4560_v13  ;;  %3366 = vtanh.f32 %v4560_v13  ;;  %v1249_v13 = vmul.f32 %v4566_v19, %v5437_v4 }
 0xee3   : > { %v1063_v20 = vpop.permute.xlu1 %1062 }
 0xee4   : > { %v1065_v6 = vmul.f32 %v3349_v16, %v1063_v20  ;;  %v1218_v36 = vpop.permute.xlu0 %1217 }
 0xee5   : > { %v1220_v9 = vmul.f32 %v3351_v40, %v1218_v36 }
 0xee6   : > { %v1090_v18 = vmul.f32 %v1065_v6, %v5428_v17 }
 0xee7   : > { %v1246_v3 = vmul.f32 %v4563_v2, %v1220_v9 }
 0xee8   : > { %v4572_v1 = vadd.f32 %v1090_v18, %v5429_v44  ;;  %v1242_v40 = vpop.permute.xlu0 %1241  ;;  %v1419_v18 = vld [vmem:[%s1418_s14] sm:$0xff]  ;;  %s3029_s14 = sshll.u32 %s5487_s5, 3 }
 0xee9   : > { %v4574_v16 = vadd.f32 %v1249_v13, %v1246_v3  ;;  %v1244_v36 = vmul.f32 %v4527_v15, %v1242_v40  ;;  %v1255_v13 = vmul.f32 %v4566_v19, %v4431_v8  ;;  %s1722_s27 = scalar_lea.vmem [#allocation3], %s3029_s14 }
 0xeea   : > { %5438 = vst [vmem:[#allocation58_spill] sm:$0xff] %v4572_v1  ;;  %v3367_v20 = vpop.eup %3366 }
 0xeeb   : > { %5439 = vst [vmem:[#allocation61_spill] sm:$0xff] %v4574_v16  ;;  %1086 = vrot.lane.b32.xlu1 %v3367_v20, %s3813_s3  ;;  %v3305_v6 = vpack.i.bf16 %v4572_v1, %v4574_v16  ;;  %v1254_v9 = vmul.f32 %v4563_v2, %v1244_v36  ;;  %v1416_v20 = vld [vmem:[%s1415_s30] sm:$0xff]  ;;  %s1728_s30 = scalar_select %p1727_p1, 1, 0 }
 0xeed   : > { %3306 = vrot.lane.b32.xlu0 %v3305_v6, %s3813_s3  ;;  %v4587_v15 = vadd.f32 %v1255_v13, %v1254_v9  ;;  %s1729_s19 = scvt.s32.f32 %s1728_s30 }
 0xeef   : > { %1261 = vrot.lane.b32.xlu1 %v4574_v16, %s3814_s8 }
 0xef1   : > { %1427 = vrot.lane.b32.xlu0 %v1419_v18, %s3813_s3 }
 0xef3   : > { %1269 = vrot.lane.b32.xlu1 %v4587_v15, %s3815_s0 }
 0xf5d   : > { %v1087_v3 = vpop.permute.xlu1 %1086 }
 0xf5e   : > { %v1089_v4 = vmul.f32 %v3359_v7, %v1087_v3 }
 0xf5f   : > { %v3307_v40 = vpop.permute.xlu0 %3306 }
 0xf60   : > { %v3308_v36 = vunpack.i.l.bf16 %v3307_v40  ;;  %v1094_v6 = vmul.f32 %v1089_v4, %v5428_v17  ;;  %v3309_v8 = vunpack.i.h.bf16 %v3307_v40 }
 0xf61   : > { %v1262_v1 = vpop.permute.xlu1 %1261 }
 0xf62   : > { %v1430_v9 = vsel %vm186_vm0, %v1416_v20, %v3308_v36  ;;  %v4596_v16 = vadd.f32 %v1094_v6, %v5429_v44  ;;  %v1272_v19 = vsel %vm186_vm0, %v1262_v1, %v3309_v8  ;;  %v5460_v1 = vld [vmem:[#allocation41_spill] sm:$0xff] }
 0xf63   : > { %v1428_v18 = vpop.permute.xlu0 %1427 }
 0xf64   : > { %v1431_v13 = vsel %vm736_vm6, %v1430_v9, %v1428_v18 }
 0xf65   : > { %v1432_v7 = vsel %vm195_vm1, %v1431_v13, %v4587_v15  ;;  %v1270_v3 = vpop.permute.xlu1 %1269 }
 0xf66   : > { %v1273_v5 = vsel %vm736_vm6, %v1272_v19, %v1270_v3  ;;  %1498 = vmatmul.mubr.f32.vlgmr.msra.gmra.mxu0 %v1432_v7 }
 0xf67   : > { %v1274_v4 = vsel %vm195_vm1, %v1273_v5, %v4596_v16  ;;  %1741 = vmatpush1.msra.mxu0 %v4132_v41  ;;  %1804 = vmatprep.mubr.f32.mxu0 %v5416_v33  ;;  %v5440_v41 = vld [vmem:[#allocation31_spill] sm:$0xff] }
 0xf68   : > { %1340 = vmatmul.mubr.f32.vlgmr.msra.gmra.mxu1 %v1274_v4  ;;  %1742 = vmatprep.subr.mxu0 %v4134_v42  ;;  %v5441_v42 = vld [vmem:[#allocation46_spill] sm:$0xff] }
 0xf69   : > { %1583 = vmatpush1.msra.mxu1 %v4306_v21  ;;  %1743 = vmatpush1.msra.mxu0 %v4138_v43  ;;  %v5442_v43 = vld [vmem:[#allocation32_spill] sm:$0xff] }
 0xf6a   : > { %1584 = vmatprep.subr.mxu1 %v4308_v22  ;;  %1744 = vmatprep.subr.mxu0 %v4144_v45  ;;  %v5443_v45 = vld [vmem:[#allocation47_spill] sm:$0xff] }
 0xf6b   : > { %1585 = vmatpush1.msra.mxu1 %v4312_v23  ;;  %1745 = vmatpush1.msra.mxu0 %v4148_v46  ;;  %v5444_v46 = vld [vmem:[#allocation33_spill] sm:$0xff] }
 0xf6c   : > { %1586 = vmatprep.subr.mxu1 %v4315_v24  ;;  %1746 = vmatprep.subr.mxu0 %v4151_v47  ;;  %v5445_v47 = vld [vmem:[#allocation48_spill] sm:$0xff]  ;;  %v5461_v24 = vld [vmem:[#allocation30_spill] sm:$0xff] }
 0xf6d   : > { %1587 = vmatpush1.msra.mxu1 %v4318_v26  ;;  %1747 = vmatpush1.msra.mxu0 %v4154_v48  ;;  %v5446_v48 = vld [vmem:[#allocation34_spill] sm:$0xff] }
 0xf6e   : > { %1588 = vmatprep.subr.mxu1 %v4322_v27  ;;  %1748 = vmatprep.subr.mxu0 %v4157_v49  ;;  %v5447_v49 = vld [vmem:[#allocation49_spill] sm:$0xff]  ;;  %v5462_v27 = vld [vmem:[#allocation42_spill] sm:$0xff] }
 0xf6f   : > { %1589 = vmatpush1.msra.mxu1 %v4325_v28  ;;  %1749 = vmatpush1.msra.mxu0 %v4160_v50  ;;  %v5448_v50 = vld [vmem:[#allocation35_spill] sm:$0xff] }
 0xf70   : > { %1590 = vmatprep.subr.mxu1 %v4328_v29  ;;  %1750 = vmatprep.subr.mxu0 %v4164_v51  ;;  %v5449_v51 = vld [vmem:[#allocation50_spill] sm:$0xff] }
 0xf71   : > { %1591 = vmatpush1.msra.mxu1 %v4331_v30  ;;  %1751 = vmatpush1.msra.mxu0 %v4167_v52  ;;  %v5450_v52 = vld [vmem:[#allocation36_spill] sm:$0xff] }
 0xf72   : > { %1592 = vmatprep.subr.mxu1 %v4334_v31  ;;  %1752 = vmatprep.subr.mxu0 %v4170_v54  ;;  %v5451_v54 = vld [vmem:[#allocation51_spill] sm:$0xff] }
 0xf73   : > { %1593 = vmatpush1.msra.mxu1 %v4337_v32  ;;  %1753 = vmatpush1.msra.mxu0 %v4174_v55  ;;  %v5452_v55 = vld [vmem:[#allocation37_spill] sm:$0xff] }
 0xf74   : > { %1594 = vmatprep.subr.mxu1 %v4340_v34  ;;  %1754 = vmatprep.subr.mxu0 %v4177_v56  ;;  %v5453_v56 = vld [vmem:[#allocation52_spill] sm:$0xff] }
 0xf75   : > { %1595 = vmatpush1.msra.mxu1 %v4343_v35  ;;  %1755 = vmatpush1.msra.mxu0 %v4180_v57  ;;  %v5454_v57 = vld [vmem:[#allocation38_spill] sm:$0xff] }
 0xf76   : > { %1596 = vmatprep.subr.mxu1 %v4346_v37  ;;  %1756 = vmatprep.subr.mxu0 %v4183_v58  ;;  %v5455_v58 = vld [vmem:[#allocation53_spill] sm:$0xff] }
 0xf77   : > { %1597 = vmatpush1.msra.mxu1 %v4349_v38  ;;  %1757 = vmatpush1.msra.mxu0 %v4186_v59  ;;  %v5456_v59 = vld [vmem:[#allocation54_spill] sm:$0xff] }
 0xf78   : > { %1598 = vmatprep.subr.mxu1 %v4352_v39  ;;  %1758 = vmatprep.subr.mxu0 %v4189_v60  ;;  %v5457_v60 = vld [vmem:[#allocation39_spill] sm:$0xff] }
 0xf79   : > { %1599 = vmatpush1.msra.mxu1 %v4355_v53  ;;  %1759 = vmatpush1.msra.mxu0 %v4192_v61  ;;  %v5458_v61 = vld [vmem:[#allocation55_spill] sm:$0xff] }
 0xf7a   : > { %1600 = vmatprep.subr.mxu1 %v4358_v11  ;;  %1760 = vmatprep.subr.mxu0 %v4195_v62  ;;  %v3480_v62 = vld [vmem:[#allocation17 + $0xf8] sm:$0xff] }
 0xf7b   : > { %1601 = vmatpush1.msra.mxu1 %v4361_v12  ;;  %1761 = vmatpush1.msra.mxu0 %v4198_v63  ;;  %v5459_v63 = vld [vmem:[#allocation45_spill] sm:$0xff] }
 0xf7c   : > { %1602 = vmatprep.subr.mxu1 %v4364_v14  ;;  %1762 = vmatprep.subr.mxu0 %v4201_v0  ;;  %v5463_v14 = vld [vmem:[#allocation40_spill] sm:$0xff] }
 0xf7d   : > { %1603 = vmatpush1.msra.mxu1 %v4367_v25  ;;  %1763 = vmatpush1.msra.mxu0 %v5440_v41 }
 0xf7e   : > { %1604 = vmatprep.subr.mxu1 %v5441_v42  ;;  %1764 = vmatprep.subr.mxu0 %v5442_v43  ;;  %v1251_v42 = vmul.f32 %v4563_v2, %v4542_v10  ;;  %v5464_v43 = vld [vmem:[#allocation43_spill] sm:$0xff] }
 0xf7f   : > { %1605 = vmatpush1.msra.mxu1 %v5443_v45  ;;  %1765 = vmatpush1.msra.mxu0 %v5444_v46  ;;  %v5465_v45 = vld [vmem:[#allocation60_spill] sm:$0xff] }
 0xf80   : > { %1606 = vmatprep.subr.mxu1 %v5445_v47  ;;  %1766 = vmatprep.subr.mxu0 %v5446_v48  ;;  %v1252_v46 = vmul.f32 %v5465_v45, %v5464_v43  ;;  %v5466_v47 = vld [vmem:[#allocation56_spill] sm:$0xff] }
 0xf81   : > { %1607 = vmatpush1.msra.mxu1 %v5447_v49  ;;  %1767 = vmatpush1.msra.mxu0 %v5448_v50  ;;  %v1092_v48 = vmul.f32 %v5466_v47, %v5428_v17  ;;  %v1723_v47 = vld [vmem:[%s1722_s27] sm:$0xff]  ;;  %s5475_s27 = sld [smem:[#allocation63_spill]] }
 0xf82   : > { %1608 = vmatprep.subr.mxu1 %v5449_v51  ;;  %1768 = vmatprep.subr.mxu0 %v5450_v52  ;;  %v4695_v49 = vadd.f32 %v1252_v46, %v1251_v42  ;;  %v5467_v51 = vld [vmem:[#allocation44_spill] sm:$0xff] }
 0xf83   : > { %1609 = vmatpush1.msra.mxu1 %v5451_v54  ;;  %1769 = vmatpush1.msra.mxu0 %v5452_v55  ;;  %v1257_v52 = vmul.f32 %v4563_v2, %v5467_v51  ;;  %v4702_v55 = vadd.f32 %v1092_v48, %v5429_v44 }
 0xf84   : > { %1610 = vmatprep.subr.mxu1 %v5453_v56  ;;  %1770 = vmatprep.subr.mxu0 %v5454_v57  ;;  %v5468_v57 = vld [vmem:[#allocation57_spill] sm:$0xff] }
 0xf85   : > { %1611 = vmatpush1.msra.mxu1 %v5455_v58  ;;  %1646 = vmatprep.mubr.f32.mxu1 %v5416_v33  ;;  %v1258_v58 = vmul.f32 %v5465_v45, %v5468_v57 }
 0xf86   : > { %1612 = vmatprep.subr.mxu1 %v5456_v59  ;;  %1771 = vmatpush1.msra.mxu0 %v5457_v60 }
 0xf87   : > { %1613 = vmatpush1.msra.mxu1 %v5458_v61  ;;  %2047 = vmatprep.subr.mxu0 %v3480_v62 }
 0xf88   : > { %1889 = vmatprep.subr.mxu1 %v5459_v63  ;;  %v4715_v63 = vadd.f32 %v1258_v58, %v1257_v52 }
0x1026   : > { %v1499_v0 = vpop.f32.mrf.mxu0 }
0x1027   : > { %v1500_v21 = vadd.f32 %v1499_v0, %v5460_v1 }
0x1028   : > { %v1341_v22 = vpop.f32.mrf.mxu1  ;;  %v1501_v23 = vpop.f32.mrf.mxu0 }
0x1029   : > { %3368 = vtanh.f32 %v1500_v21  ;;  %v1342_v26 = vadd.f32 %v1341_v22, %v5461_v24  ;;  %v1502_v28 = vadd.f32 %v1501_v23, %v5462_v27  ;;  %v3019_v32 = vmul.f32 -1.442695, %v1500_v21 }
0x102a   : > { %v1343_v11 = vpop.f32.mrf.mxu1 }
0x102b   : > { %3370 = vtanh.f32 %v1342_v26  ;;  %v3009_v34 = vmul.f32 -1.442695, %v1342_v26  ;;  %v3020_v35 = vmul.f32 -1.442695, %v1502_v28  ;;  %v1344_v25 = vadd.f32 %v1343_v11, %v5463_v14 }
0x102c   : > { %3372 = vtanh.f32 %v1502_v28 }
0x102d   : > { %3374 = vpow2.f32 %v3019_v32  ;;  %v3010_v3 = vmul.f32 -1.442695, %v1344_v25 }
0x102e   : > { %3376 = vpow2.f32 %v3009_v34 }
0x102f   : > { %3378 = vpow2.f32 %v3020_v35 }
0x1036   : > { %v3369_v29 = vpop.eup %3368 }
0x1037   : > { %1513 = vrot.lane.b32.xlu0 %v3369_v29, %s3813_s3 }
0x1038   : > { %v3371_v30 = vpop.eup %3370 }
0x1039   : > { %1355 = vrot.lane.b32.xlu1 %v3371_v30, %s3813_s3  ;;  %v3373_v31 = vpop.eup %3372  ;;  %v5469_v30 = vld [vmem:[#allocation59_spill] sm:$0xff] }
0x103a   : > { %v3375_v37 = vpop.eup %3374 }
0x103b   : > { %1537 = vrot.lane.b32.xlu0 %v3373_v31, %s3813_s3  ;;  %v3377_v38 = vpop.eup %3376  ;;  %v1507_v39 = vadd.f32 1.0, %v3375_v37  ;;  %v1096_v31 = vmul.f32 %v5469_v30, %v5428_v17  ;;  %v3486_v30 = vld [vmem:[#allocation17 + $0xe0] sm:$0xff] }
0x103c   : > { %v1349_v53 = vadd.f32 1.0, %v3377_v38  ;;  %v3379_v12 = vpop.eup %3378 }
0x103d   : > { %3380 = vrcp.f32 %v1507_v39  ;;  %v1531_v5 = vadd.f32 1.0, %v3379_v12  ;;  %v4731_v32 = vadd.f32 %v1096_v31, %v5429_v44  ;;  %v4741_v44 = vstv %s1422_s21  ;;  %v4795_v31 = vld [vmem:[#allocation17 + $0x1d8] sm:$0xff]  ;;  %s1861_s21 = ssub.f32 1.0, %s1729_s19 }
0x103e   : > { %3382 = vrcp.f32 %v1349_v53  ;;  %v4745_v12 = vstv %s1554_s1  ;;  %s2020_s1 = sadd.s32 4, %s4141_s25 }
0x103f   : > { %3384 = vtanh.f32 %v1344_v25  ;;  %p2021_p4 = scmp.lt.s32.totalorder %s2020_s1, 7 }
0x1040   : > { %3386 = vrcp.f32 %v1531_v5  ;;  %v5470_v5 = vld [vmem:[#allocation61_spill] sm:$0xff]  ;;  %s2035_s25 = scalar_select %p2034_p5, 1, 0 }
0x1041   : > { %3388 = vpow2.f32 %v3010_v3  ;;  %s5491_s1 = smov (!%p2021_p4, %s2020_s1), 7 }
0x1042   : > { %s3041_s7 = sshll.u32 %s5491_s1, 3  ;;  %s2036_s5 = scvt.s32.f32 %s2035_s25 }
0x1044   : > { %s2168_s14 = ssub.f32 1.0, %s2036_s5 }
0x104a   : > { %v4676_v19 = vpop.eup %3380 }
0x104b   : > { %v4679_v36 = vpop.eup %3382  ;;  %v1511_v50 = vmul.f32 %v4676_v19, %v4695_v49 }
0x104c   : > { %v3385_v9 = vpop.eup %3384  ;;  %v1353_v10 = vmul.f32 %v4679_v36, %v4702_v55 }
0x104d   : > { %v4684_v13 = vpop.eup %3386 }
0x104e   : > { %v3389_v4 = vpop.eup %3388  ;;  %v1535_v21 = vmul.f32 %v4684_v13, %v4715_v63 }
0x104f   : > { %v1373_v41 = vadd.f32 1.0, %v3389_v4  ;;  %v1562_v4 = vmul.f32 %v4745_v12, %v4587_v15 }
0x1051   : > { %3390 = vrcp.f32 %v1373_v41  ;;  %v1726_v41 = vld [vmem:[%s1725_s28] sm:$0xff]  ;;  %s2029_s28 = scalar_lea.vmem [#allocation3], %s3041_s7 }
0x105e   : > { %v4711_v60 = vpop.eup %3390 }
0x105f   : > { %v1377_v34 = vmul.f32 %v4711_v60, %v4731_v32 }
0x10a9   : > { %v1514_v20 = vpop.permute.xlu0 %1513 }
0x10aa   : > { %v1516_v40 = vmul.f32 %v4676_v19, %v1514_v20  ;;  %v1556_v20 = vmul.f32 %v4745_v12, %v5470_v5  ;;  %v3496_v5 = vld [vmem:[#allocation17 + $0xb8] sm:$0xff] }
0x10ab   : > { %v1356_v6 = vpop.permute.xlu1 %1355 }
0x10ac   : > { %1518 = vrot.lane.b32.xlu1 %v1516_v40, %s3814_s8  ;;  %v1358_v8 = vmul.f32 %v4679_v36, %v1356_v6  ;;  %v5471_v40 = vld [vmem:[#allocation58_spill] sm:$0xff] }
0x10ad   : > { %v1538_v18 = vpop.permute.xlu0 %1537  ;;  %v1395_v6 = vmul.f32 %v5465_v45, %v5471_v40  ;;  %v3498_v40 = vld [vmem:[#allocation17 + $0xb0] sm:$0xff] }
0x10ae   : > { %1360 = vrot.lane.b32.xlu0 %v1358_v8, %s3814_s8  ;;  %v1540_v7 = vmul.f32 %v4684_v13, %v1538_v18 }
0x10b0   : > { %1379 = vrot.lane.b32.xlu1 %v3385_v9, %s3813_s3 }
0x10b2   : > { %1542 = vrot.lane.b32.xlu0 %v1540_v7, %s3814_s8 }
0x111e   : > { %v1519_v54 = vpop.permute.xlu1 %1518 }
0x111f   : > { %v4704_v56 = vadd.f32 %v1519_v54, %v1511_v50  ;;  %v1401_v50 = vmul.f32 %v5465_v45, %v4596_v16 }
0x1120   : > { %v1361_v59 = vpop.permute.xlu0 %1360 }
0x1121   : > { %3392 = vtanh.f32 %v4704_v56  ;;  %v4713_v61 = vadd.f32 %v1361_v59, %v1353_v10 }
0x1122   : > { %v1380_v62 = vpop.permute.xlu1 %1379 }
0x1123   : > { %v1382_v0 = vmul.f32 %v4711_v60, %v1380_v62  ;;  %3394 = vtanh.f32 %v4713_v61 }
0x1124   : > { %v1543_v22 = vpop.permute.xlu0 %1542 }
0x1125   : > { %1384 = vrot.lane.b32.xlu1 %v1382_v0, %s3814_s8  ;;  %v4722_v23 = vadd.f32 %v1543_v22, %v1535_v21  ;;  %v4786_v21 = vld [vmem:[#allocation17 + $0x1f0] sm:$0xff] }
0x1126   : > { %v3482_v22 = vld [vmem:[#allocation17 + $0xf0] sm:$0xff] }
0x1127   : > { %3396 = vtanh.f32 %v4722_v23 }
0x112e   : > { %v3393_v26 = vpop.eup %3392 }
0x112f   : > { %1524 = vrot.lane.b32.xlu0 %v3393_v26, %s3813_s3  ;;  %v4789_v26 = vld [vmem:[#allocation17 + $0x1e8] sm:$0xff] }
0x1130   : > { %v3395_v28 = vpop.eup %3394 }
0x1131   : > { %1366 = vrot.lane.b32.xlu1 %v3395_v28, %s3813_s3  ;;  %v3484_v28 = vld [vmem:[#allocation17 + $0xe8] sm:$0xff] }
0x1134   : > { %v3397_v29 = vpop.eup %3396 }
0x1135   : > { %1548 = vrot.lane.b32.xlu0 %v3397_v29, %s3813_s3  ;;  %v4792_v29 = vld [vmem:[#allocation17 + $0x1e0] sm:$0xff] }
0x1197   : > { %v1385_v35 = vpop.permute.xlu1 %1384 }
0x1198   : > { %v4736_v37 = vadd.f32 %v1385_v35, %v1377_v34  ;;  %v3488_v34 = vld [vmem:[#allocation17 + $0xd8] sm:$0xff]  ;;  %v4798_v35 = vld [vmem:[#allocation17 + $0x1d0] sm:$0xff] }
0x119a   : > { %3398 = vtanh.f32 %v4736_v37 }
0x11a1   : > { %v1525_v38 = vpop.permute.xlu0 %1524 }
0x11a2   : > { %v1527_v17 = vmul.f32 %v4676_v19, %v1525_v38  ;;  %v3490_v38 = vld [vmem:[#allocation17 + $0xd0] sm:$0xff] }
0x11a3   : > { %v1367_v39 = vpop.permute.xlu1 %1366 }
0x11a4   : > { %v1553_v53 = vmul.f32 %v4741_v44, %v1527_v17  ;;  %v1369_v11 = vmul.f32 %v4679_v36, %v1367_v39  ;;  %v4801_v17 = vld [vmem:[#allocation17 + $0x1c8] sm:$0xff] }
0x11a5   : > { %v3492_v39 = vld [vmem:[#allocation17 + $0xc8] sm:$0xff] }
0x11a6   : > { %v1394_v8 = vmul.f32 %v1369_v11, %v4563_v2  ;;  %v4753_v9 = vadd.f32 %v1556_v20, %v1553_v53  ;;  %v4804_v53 = vld [vmem:[#allocation17 + $0x1c0] sm:$0xff]  ;;  %v4810_v20 = vld [vmem:[#allocation17 + $0x1b0] sm:$0xff] }
0x11a7   : > { %v3399_v25 = vpop.eup %3398  ;;  %v1549_v19 = vpop.permute.xlu0 %1548  ;;  %v3494_v11 = vld [vmem:[#allocation17 + $0xc0] sm:$0xff] }
0x11a8   : > { %1390 = vrot.lane.b32.xlu1 %v3399_v25, %s3813_s3  ;;  %v4755_v18 = vadd.f32 %v1395_v6, %v1394_v8  ;;  %v1551_v36 = vmul.f32 %v4684_v13, %v1549_v19  ;;  %v4807_v25 = vld [vmem:[#allocation17 + $0x1b8] sm:$0xff]  ;;  %v4813_v6 = vld [vmem:[#allocation17 + $0x1a8] sm:$0xff]  ;;  %v4816_v19 = vld [vmem:[#allocation17 + $0x1a0] sm:$0xff] }
0x11a9   : > { %v3500_v8 = vld [vmem:[#allocation17 + $0xa8] sm:$0xff] }
0x11aa   : > { %v1561_v7 = vmul.f32 %v4741_v44, %v1551_v36  ;;  %v3310_v3 = vpack.i.bf16 %v4755_v18, %v4753_v9  ;;  %v3502_v36 = vld [vmem:[#allocation17 + $0xa0] sm:$0xff] }
0x11ac   : > { %1568 = vrot.lane.b32.xlu1 %v4753_v9, %s3814_s8  ;;  %3311 = vrot.lane.b32.xlu0 %v3310_v3, %s3813_s3  ;;  %v4766_v42 = vadd.f32 %v1562_v4, %v1561_v7  ;;  %v4819_v7 = vld [vmem:[#allocation17 + $0x198] sm:$0xff]  ;;  %v4822_v4 = vld [vmem:[#allocation17 + $0x190] sm:$0xff] }
0x11ad   : > { %v3504_v3 = vld [vmem:[#allocation17 + $0x98] sm:$0xff] }
0x11b0   : > { %1576 = vrot.lane.b32.xlu1 %v4766_v42, %s3815_s0  ;;  %1734 = vrot.lane.b32.xlu0 %v1726_v41, %s3813_s3  ;;  %v3506_v41 = vld [vmem:[#allocation17 + $0x90] sm:$0xff] }
0x121a   : > { %v1391_v13 = vpop.permute.xlu1 %1390 }
0x121b   : > { %v1393_v43 = vmul.f32 %v4711_v60, %v1391_v13  ;;  %v4825_v13 = vld [vmem:[#allocation17 + $0x188] sm:$0xff] }
0x121d   : > { %v1400_v15 = vmul.f32 %v1393_v43, %v4563_v2  ;;  %v3508_v43 = vld [vmem:[#allocation17 + $0x88] sm:$0xff] }
0x121e   : > { %v1569_v46 = vpop.permute.xlu1 %1568  ;;  %v3312_v48 = vpop.permute.xlu0 %3311 }
0x121f   : > { %v3314_v51 = vunpack.i.h.bf16 %v3312_v48  ;;  %v3313_v52 = vunpack.i.l.bf16 %v3312_v48  ;;  %v4776_v54 = vadd.f32 %v1401_v50, %v1400_v15  ;;  %v4828_v15 = vld [vmem:[#allocation17 + $0x180] sm:$0xff]  ;;  %v3512_v48 = vld [vmem:[#allocation17 + $0x78] sm:$0xff]  ;;  %v4834_v50 = vld [vmem:[#allocation17 + $0x170] sm:$0xff] }
0x1221   : > { %v1737_v10 = vsel %vm186_vm0, %v1723_v47, %v3313_v52  ;;  %v1579_v57 = vsel %vm186_vm0, %v1569_v46, %v3314_v51  ;;  %v3510_v46 = vld [vmem:[#allocation17 + $0x80] sm:$0xff]  ;;  %v4831_v47 = vld [vmem:[#allocation17 + $0x178] sm:$0xff]  ;;  %v3514_v51 = vld [vmem:[#allocation17 + $0x70] sm:$0xff] }
0x1222   : > { %v1577_v58 = vpop.permute.xlu1 %1576  ;;  %v1735_v59 = vpop.permute.xlu0 %1734  ;;  %v4837_v52 = vld [vmem:[#allocation17 + $0x168] sm:$0xff] }
0x1223   : > { %v1580_v60 = vsel %vm736_vm6, %v1579_v57, %v1577_v58  ;;  %v1738_v62 = vsel %vm736_vm6, %v1737_v10, %v1735_v59  ;;  %v3516_v10 = vld [vmem:[#allocation17 + $0x68] sm:$0xff]  ;;  %v4840_v57 = vld [vmem:[#allocation17 + $0x160] sm:$0xff]  ;;  %v4843_v59 = vld [vmem:[#allocation17 + $0x158] sm:$0xff] }
0x1224   : > { %v1581_v0 = vsel %vm195_vm1, %v1580_v60, %v4776_v54  ;;  %v1739_v16 = vsel %vm195_vm1, %v1738_v62, %v4766_v42  ;;  %v3518_v58 = vld [vmem:[#allocation17 + $0x60] sm:$0xff]  ;;  %v3520_v60 = vld [vmem:[#allocation17 + $0x58] sm:$0xff]  ;;  %v4846_v62 = vld [vmem:[#allocation17 + $0x150] sm:$0xff] }
0x1225   : > { %1647 = vmatmul.mubr.f32.vlgmr.msra.gmra.mxu1 %v1581_v0  ;;  %1805 = vmatmul.mubr.f32.vlgmr.msra.gmra.mxu0 %v1739_v16  ;;  %v3522_v0 = vld [vmem:[#allocation17 + $0x50] sm:$0xff]  ;;  %v4849_v16 = vld [vmem:[#allocation17 + $0x148] sm:$0xff] }
0x1226   : > { %1890 = vmatpush1.msra.mxu1 %v4786_v21  ;;  %2048 = vmatpush1.msra.mxu0 %v3482_v22  ;;  %v3524_v22 = vld [vmem:[#allocation17 + $0x48] sm:$0xff] }
0x1227   : > { %1891 = vmatprep.subr.mxu1 %v4789_v26  ;;  %2049 = vmatprep.subr.mxu0 %v3484_v28  ;;  %v4852_v28 = vld [vmem:[#allocation17 + $0x140] sm:$0xff] }
0x1228   : > { %1892 = vmatpush1.msra.mxu1 %v4792_v29  ;;  %2050 = vmatpush1.msra.mxu0 %v3486_v30  ;;  %v3526_v30 = vld [vmem:[#allocation17 + $0x40] sm:$0xff] }
0x1229   : > { %1893 = vmatprep.subr.mxu1 %v4795_v31  ;;  %2051 = vmatprep.subr.mxu0 %v3488_v34  ;;  %v4855_v34 = vld [vmem:[#allocation17 + $0x138] sm:$0xff] }
0x122a   : > { %1894 = vmatpush1.msra.mxu1 %v4798_v35  ;;  %2052 = vmatpush1.msra.mxu0 %v3490_v38  ;;  %v3528_v38 = vld [vmem:[#allocation17 + $0x38] sm:$0xff] }
0x122b   : > { %1895 = vmatprep.subr.mxu1 %v4801_v17  ;;  %2053 = vmatprep.subr.mxu0 %v3492_v39  ;;  %v4858_v39 = vld [vmem:[#allocation17 + $0x130] sm:$0xff] }
0x122c   : > { %1896 = vmatpush1.msra.mxu1 %v4804_v53  ;;  %2054 = vmatpush1.msra.mxu0 %v3494_v11  ;;  %v3530_v11 = vld [vmem:[#allocation17 + $0x30] sm:$0xff] }
0x122d   : > { %1897 = vmatprep.subr.mxu1 %v4807_v25  ;;  %2055 = vmatprep.subr.mxu0 %v3496_v5  ;;  %v4861_v5 = vld [vmem:[#allocation17 + $0x128] sm:$0xff] }
0x122e   : > { %1898 = vmatpush1.msra.mxu1 %v4810_v20  ;;  %2056 = vmatpush1.msra.mxu0 %v3498_v40  ;;  %v3532_v40 = vld [vmem:[#allocation17 + $0x28] sm:$0xff] }
0x122f   : > { %1899 = vmatprep.subr.mxu1 %v4813_v6  ;;  %2057 = vmatprep.subr.mxu0 %v3500_v8  ;;  %v4864_v8 = vld [vmem:[#allocation17 + $0x120] sm:$0xff] }
0x1230   : > { %1900 = vmatpush1.msra.mxu1 %v4816_v19  ;;  %2058 = vmatpush1.msra.mxu0 %v3502_v36  ;;  %v3534_v36 = vld [vmem:[#allocation17 + $0x20] sm:$0xff] }
0x1231   : > { %1901 = vmatprep.subr.mxu1 %v4819_v7  ;;  %2059 = vmatprep.subr.mxu0 %v3504_v3  ;;  %v4867_v3 = vld [vmem:[#allocation17 + $0x118] sm:$0xff] }
0x1232   : > { %1902 = vmatpush1.msra.mxu1 %v4822_v4  ;;  %2060 = vmatpush1.msra.mxu0 %v3506_v41  ;;  %v3536_v41 = vld [vmem:[#allocation17 + $0x18] sm:$0xff] }
0x1233   : > { %1903 = vmatprep.subr.mxu1 %v4825_v13  ;;  %2061 = vmatprep.subr.mxu0 %v3508_v43  ;;  %v4870_v43 = vld [vmem:[#allocation17 + $0x110] sm:$0xff] }
0x1234   : > { %1904 = vmatpush1.msra.mxu1 %v4828_v15  ;;  %2062 = vmatpush1.msra.mxu0 %v3510_v46  ;;  %v3538_v46 = vld [vmem:[#allocation17 + $0x10] sm:$0xff] }
0x1235   : > { %1905 = vmatprep.subr.mxu1 %v4831_v47  ;;  %2063 = vmatprep.subr.mxu0 %v3512_v48  ;;  %v3539_v48 = vld [vmem:[#allocation17 + $0x8] sm:$0xff] }
0x1236   : > { %1906 = vmatpush1.msra.mxu1 %v4834_v50  ;;  %2064 = vmatpush1.msra.mxu0 %v3514_v51  ;;  %v4874_v51 = vld [vmem:[#allocation17 + $0x108] sm:$0xff] }
0x1237   : > { %1907 = vmatprep.subr.mxu1 %v4837_v52  ;;  %2065 = vmatprep.subr.mxu0 %v3516_v10  ;;  %v3541_v10 = vld [vmem:[#allocation17] sm:$0xff] }
0x1238   : > { %1908 = vmatpush1.msra.mxu1 %v4840_v57  ;;  %2066 = vmatpush1.msra.mxu0 %v3518_v58  ;;  %v4877_v58 = vld [vmem:[#allocation17 + $0x100] sm:$0xff] }
0x1239   : > { %1909 = vmatprep.subr.mxu1 %v4843_v59  ;;  %2067 = vmatprep.subr.mxu0 %v3520_v60  ;;  %v3543_v60 = vld [vmem:[#allocation17 + $0x1f8] sm:$0xff] }
0x123a   : > { %1910 = vmatpush1.msra.mxu1 %v4846_v62  ;;  %2068 = vmatpush1.msra.mxu0 %v3522_v0 }
0x123b   : > { %1911 = vmatprep.subr.mxu1 %v4849_v16  ;;  %2069 = vmatprep.subr.mxu0 %v3524_v22 }
0x123c   : > { %1912 = vmatpush1.msra.mxu1 %v4852_v28  ;;  %2070 = vmatpush1.msra.mxu0 %v3526_v30 }
0x123d   : > { %1913 = vmatprep.subr.mxu1 %v4855_v34  ;;  %2071 = vmatprep.subr.mxu0 %v3528_v38 }
0x123e   : > { %1914 = vmatpush1.msra.mxu1 %v4858_v39  ;;  %2072 = vmatpush1.msra.mxu0 %v3530_v11 }
0x123f   : > { %1915 = vmatprep.subr.mxu1 %v4861_v5  ;;  %2073 = vmatprep.subr.mxu0 %v3532_v40 }
0x1240   : > { %1916 = vmatpush1.msra.mxu1 %v4864_v8  ;;  %2074 = vmatpush1.msra.mxu0 %v3534_v36 }
0x1241   : > { %1917 = vmatprep.subr.mxu1 %v4867_v3  ;;  %2075 = vmatprep.subr.mxu0 %v3536_v41 }
0x1242   : > { %1918 = vmatpush1.msra.mxu1 %v4870_v43  ;;  %2076 = vmatpush1.msra.mxu0 %v3538_v46 }
0x1243   : > { %2111 = vmatprep.mubr.f32.mxu0 %v5416_v33  ;;  %2077 = vmatprep.subr.mxu0 %v3539_v48 }
0x1244   : > { %1919 = vmatprep.subr.mxu1 %v4874_v51  ;;  %2078 = vmatpush1.msra.mxu0 %v3541_v10 }
0x1245   : > { %1920 = vmatpush1.msra.mxu1 %v4877_v58  ;;  %1953 = vmatprep.mubr.f32.mxu1 %v5416_v33 }
0x1246   : > { %2190 = vmatprep.subr.mxu1 %v3543_v60  ;;  %3221 = vmatprep.subr.mxu0 %v5416_v33 }
0x12e5   : > { %v1648_v0 = vpop.f32.mrf.mxu1  ;;  %v1806_v30 = vpop.f32.mrf.mxu0 }
0x12e6   : > { %v1649_v22 = vadd.f32 %v1648_v0, %v5461_v24  ;;  %v1807_v38 = vadd.f32 %v1806_v30, %v5460_v1 }
0x12e7   : > { %v1808_v11 = vpop.f32.mrf.mxu0 }
0x12e8   : > { %3400 = vtanh.f32 %v1649_v22  ;;  %v1809_v40 = vadd.f32 %v1808_v11, %v5462_v27  ;;  %v3021_v48 = vmul.f32 -1.442695, %v1649_v22  ;;  %v3031_v10 = vmul.f32 -1.442695, %v1807_v38  ;;  %v1650_v27 = vpop.f32.mrf.mxu1 }
0x12e9   : > { %3402 = vtanh.f32 %v1807_v38 }
0x12ea   : > { %3404 = vtanh.f32 %v1809_v40  ;;  %v3032_v60 = vmul.f32 -1.442695, %v1809_v40 }
0x12eb   : > { %3406 = vpow2.f32 %v3021_v48 }
0x12ec   : > { %3408 = vpow2.f32 %v3031_v10 }
0x12ed   : > { %3410 = vpow2.f32 %v3032_v60 }
0x12f5   : > { %v3401_v36 = vpop.eup %3400 }
0x12f6   : > { %v3403_v41 = vpop.eup %3402  ;;  %1662 = vrot.lane.b32.xlu1 %v3401_v36, %s3813_s3  ;;  %v1651_v36 = vadd.f32 %v1650_v27, %v5463_v14 }
0x12f7   : > { %1820 = vrot.lane.b32.xlu0 %v3403_v41, %s3813_s3  ;;  %v3405_v46 = vpop.eup %3404 }
0x12f8   : > { %v3407_v0 = vpop.eup %3406 }
0x12f9   : > { %v3409_v30 = vpop.eup %3408  ;;  %v1656_v24 = vadd.f32 1.0, %v3407_v0  ;;  %v3022_v0 = vmul.f32 -1.442695, %v1651_v36 }
0x12fa   : > { %v1814_v11 = vadd.f32 1.0, %v3409_v30  ;;  %v3411_v1 = vpop.eup %3410 }
0x12fb   : > { %1844 = vrot.lane.b32.xlu0 %v3405_v46, %s3813_s3  ;;  %3412 = vrcp.f32 %v1656_v24  ;;  %v1838_v41 = vadd.f32 1.0, %v3411_v1 }
0x12fc   : > { %3414 = vrcp.f32 %v1814_v11 }
0x12fd   : > { %3416 = vtanh.f32 %v1651_v36 }
0x12fe   : > { %3418 = vrcp.f32 %v1838_v41  ;;  %v1397_v41 = vmul.f32 %v4713_v61, %v4563_v2 }
0x12ff   : > { %3420 = vpow2.f32 %v3022_v0 }
0x1308   : > { %v4889_v46 = vpop.eup %3412 }
0x1309   : > { %v4891_v38 = vpop.eup %3414 }
0x130a   : > { %v3417_v24 = vpop.eup %3416 }
0x130b   : > { %v4897_v60 = vpop.eup %3418 }
0x130c   : > { %v3421_v30 = vpop.eup %3420 }
0x130d   : > { %v1680_v11 = vadd.f32 1.0, %v3421_v30 }
0x130f   : > { %3422 = vrcp.f32 %v1680_v11 }
0x131c   : > { %v3423_v11 = vpop.eup %3422 }
0x1368   : > { %v1663_v22 = vpop.permute.xlu1 %1662 }
0x1369   : > { %v1821_v40 = vpop.permute.xlu0 %1820  ;;  %v1665_v48 = vmul.f32 %v4889_v46, %v1663_v22  ;;  %v1558_v22 = vmul.f32 %v4741_v44, %v4704_v56 }
0x136a   : > { %v1823_v10 = vmul.f32 %v4891_v38, %v1821_v40  ;;  %v1398_v40 = vmul.f32 %v5465_v45, %v4702_v55 }
0x136b   : > { %1667 = vrot.lane.b32.xlu0 %v1665_v48, %s3814_s8  ;;  %v1559_v48 = vmul.f32 %v4745_v12, %v4695_v49  ;;  %v1565_v49 = vmul.f32 %v4745_v12, %v4715_v63 }
0x136c   : > { %1825 = vrot.lane.b32.xlu1 %v1823_v10, %s3814_s8  ;;  %v4910_v10 = vadd.f32 %v1398_v40, %v1397_v41 }
0x136d   : > { %v1845_v1 = vpop.permute.xlu0 %1844 }
0x136e   : > { %v1847_v27 = vmul.f32 %v4897_v60, %v1845_v1  ;;  %v1660_v36 = vmul.f32 %v4889_v46, %v4910_v10  ;;  %v1564_v1 = vmul.f32 %v4741_v44, %v4722_v23 }
0x1370   : > { %1686 = vrot.lane.b32.xlu1 %v3417_v24, %s3813_s3  ;;  %1849 = vrot.lane.b32.xlu0 %v1847_v27, %s3814_s8  ;;  %v4912_v24 = vadd.f32 %v1559_v48, %v1558_v22  ;;  %v4928_v30 = vadd.f32 %v1565_v49, %v1564_v1 }
0x1372   : > { %v1818_v61 = vmul.f32 %v4891_v38, %v4912_v24  ;;  %v1842_v22 = vmul.f32 %v4897_v60, %v4928_v30 }
0x13dd   : > { %v1668_v56 = vpop.permute.xlu0 %1667 }
0x13de   : > { %v1826_v27 = vpop.permute.xlu1 %1825  ;;  %v4920_v0 = vadd.f32 %v1668_v56, %v1660_v36  ;;  %v1404_v56 = vmul.f32 %v5465_v45, %v4731_v32 }
0x13df   : > { %v4922_v55 = vadd.f32 %v1826_v27, %v1818_v61  ;;  %v1403_v61 = vmul.f32 %v4736_v37, %v4563_v2 }
0x13e0   : > { %3424 = vtanh.f32 %v4920_v0 }
0x13e1   : > { %3426 = vtanh.f32 %v4922_v55  ;;  %v4944_v27 = vadd.f32 %v1404_v56, %v1403_v61 }
0x13e2   : > { %v1687_v23 = vpop.permute.xlu1 %1686  ;;  %v1850_v40 = vpop.permute.xlu0 %1849 }
0x13e3   : > { %v1689_v41 = vmul.f32 %v3423_v11, %v1687_v23  ;;  %v4932_v48 = vadd.f32 %v1850_v40, %v1842_v22  ;;  %v1684_v49 = vmul.f32 %v3423_v11, %v4944_v27  ;;  %v4953_v22 = vstv %s1729_s19 }
0x13e4   : > { %v4955_v40 = vstv %s1861_s21 }
0x13e5   : > { %1691 = vrot.lane.b32.xlu1 %v1689_v41, %s3814_s8  ;;  %3428 = vtanh.f32 %v4932_v48  ;;  %v1863_v61 = vmul.f32 %v4955_v40, %v4753_v9  ;;  %v2033_v9 = vld [vmem:[%s2032_s22] sm:$0xff] }
0x13ed   : > { %v3425_v63 = vpop.eup %3424 }
0x13ee   : > { %v3427_v36 = vpop.eup %3426  ;;  %1673 = vrot.lane.b32.xlu1 %v3425_v63, %s3813_s3  ;;  %v1702_v63 = vmul.f32 %v4745_v12, %v4755_v18 }
0x13ef   : > { %1831 = vrot.lane.b32.xlu0 %v3427_v36, %s3813_s3 }
0x13f2   : > { %v3429_v1 = vpop.eup %3428 }
0x13f3   : > { %1855 = vrot.lane.b32.xlu0 %v3429_v1, %s3813_s3 }
0x1457   : > { %v1692_v23 = vpop.permute.xlu1 %1691 }
0x1458   : > { %v4948_v41 = vadd.f32 %v1692_v23, %v1684_v49 }
0x145a   : > { %3430 = vtanh.f32 %v4948_v41 }
0x1460   : > { %v1674_v2 = vpop.permute.xlu1 %1673 }
0x1461   : > { %v1832_v37 = vpop.permute.xlu0 %1831  ;;  %v1676_v45 = vmul.f32 %v4889_v46, %v1674_v2 }
0x1462   : > { %v1834_v32 = vmul.f32 %v4891_v38, %v1832_v37  ;;  %v1869_v37 = vmul.f32 %v4955_v40, %v4766_v42 }
0x1463   : > { %v1701_v36 = vmul.f32 %v1676_v45, %v4741_v44 }
0x1464   : > { %v1860_v1 = vmul.f32 %v4953_v22, %v1834_v32 }
0x1465   : > { %v4963_v56 = vadd.f32 %v1702_v63, %v1701_v36  ;;  %v1856_v49 = vpop.permute.xlu0 %1855  ;;  %v2030_v63 = vld [vmem:[%s2029_s28] sm:$0xff] }
0x1466   : > { %v4965_v46 = vadd.f32 %v1863_v61, %v1860_v1  ;;  %v1858_v23 = vmul.f32 %v4897_v60, %v1856_v49 }
0x1467   : > { %v3431_v38 = vpop.eup %3430 }
0x1468   : > { %1697 = vrot.lane.b32.xlu1 %v3431_v38, %s3813_s3  ;;  %v3315_v18 = vpack.i.bf16 %v4963_v56, %v4965_v46  ;;  %v1868_v2 = vmul.f32 %v4953_v22, %v1858_v23  ;;  %v1708_v23 = vmul.f32 %v4745_v12, %v4776_v54 }
0x146a   : > { %3316 = vrot.lane.b32.xlu0 %v3315_v18, %s3813_s3  ;;  %v4978_v60 = vadd.f32 %v1869_v37, %v1868_v2 }
0x146c   : > { %1875 = vrot.lane.b32.xlu1 %v4965_v46, %s3814_s8 }
0x146e   : > { %2041 = vrot.lane.b32.xlu0 %v2033_v9, %s3813_s3 }
0x1470   : > { %1883 = vrot.lane.b32.xlu1 %v4978_v60, %s3815_s0 }
0x14da   : > { %v1698_v45 = vpop.permute.xlu1 %1697 }
0x14db   : > { %v1700_v32 = vmul.f32 %v3423_v11, %v1698_v45 }
0x14dc   : > { %v3317_v36 = vpop.permute.xlu0 %3316 }
0x14dd   : > { %v3318_v1 = vunpack.i.l.bf16 %v3317_v36  ;;  %v1707_v61 = vmul.f32 %v1700_v32, %v4741_v44  ;;  %v3319_v42 = vunpack.i.h.bf16 %v3317_v36 }
0x14de   : > { %v1876_v38 = vpop.permute.xlu1 %1875 }
0x14df   : > { %v2044_v49 = vsel %vm186_vm0, %v2030_v63, %v3318_v1  ;;  %v4988_v9 = vadd.f32 %v1708_v23, %v1707_v61  ;;  %v1886_v11 = vsel %vm186_vm0, %v1876_v38, %v3319_v42 }
0x14e0   : > { %v2042_v18 = vpop.permute.xlu0 %2041 }
0x14e1   : > { %v2045_v2 = vsel %vm736_vm6, %v2044_v49, %v2042_v18  ;;  %v1704_v18 = vmul.f32 %v4920_v0, %v4741_v44 }
0x14e2   : > { %v2046_v37 = vsel %vm195_vm1, %v2045_v2, %v4978_v60  ;;  %v1884_v45 = vpop.permute.xlu1 %1883  ;;  %v1705_v2 = vmul.f32 %v4745_v12, %v4910_v10  ;;  %v1710_v10 = vmul.f32 %v4948_v41, %v4741_v44 }
0x14e3   : > { %v1887_v32 = vsel %vm736_vm6, %v1886_v11, %v1884_v45  ;;  %2112 = vmatmul.mubr.f32.vlgmr.msra.gmra.mxu0 %v2046_v37  ;;  %v1865_v11 = vmul.f32 %v4953_v22, %v4922_v55  ;;  %v1871_v37 = vmul.f32 %v4953_v22, %v4932_v48 }
0x14e4   : > { %v1888_v63 = vsel %vm195_vm1, %v1887_v32, %v4988_v9  ;;  %v5051_v45 = vadd.f32 %v1705_v2, %v1704_v18  ;;  %3237 = vmatprep.mubr.msk.f32.mxu0 %vm3816_vm7, %v5416_v33 }
0x14e5   : > { %1954 = vmatmul.mubr.f32.vlgmr.msra.gmra.mxu1 %v1888_v63  ;;  %v1872_v63 = vmul.f32 %v4955_v40, %v4928_v30 }
0x14e6   : > { %2191 = vmatpush1.msra.mxu1 %v4786_v21  ;;  %2254 = vmatprep.mubr.f32.mxu1 %v5416_v33  ;;  %v5472_v21 = vld [vmem:[#allocation41_spill] sm:$0xff] }
0x14e7   : > { %2192 = vmatprep.subr.mxu1 %v4789_v26  ;;  %v1873_v55 = vadd.f32 %v1872_v63, %v1871_v37 }
0x14e8   : > { %2193 = vmatpush1.msra.mxu1 %v4792_v29 }
0x14e9   : > { %2194 = vmatprep.subr.mxu1 %v4795_v31  ;;  %v5473_v31 = vld [vmem:[#allocation30_spill] sm:$0xff] }
0x14ea   : > { %2195 = vmatpush1.msra.mxu1 %v4798_v35 }
0x14eb   : > { %2196 = vmatprep.subr.mxu1 %v4801_v17 }
0x14ec   : > { %2197 = vmatpush1.msra.mxu1 %v4804_v53  ;;  %v5474_v53 = vld [vmem:[#allocation42_spill] sm:$0xff] }
0x14ed   : > { %2198 = vmatprep.subr.mxu1 %v4807_v25 }
0x14ee   : > { %2199 = vmatpush1.msra.mxu1 %v4810_v20 }
0x14ef   : > { %2200 = vmatprep.subr.mxu1 %v4813_v6 }
0x14f0   : > { %2201 = vmatpush1.msra.mxu1 %v4816_v19 }
0x14f1   : > { %2202 = vmatprep.subr.mxu1 %v4819_v7 }
0x14f2   : > { %2203 = vmatpush1.msra.mxu1 %v4822_v4 }
0x14f3   : > { %2204 = vmatprep.subr.mxu1 %v4825_v13 }
0x14f4   : > { %2205 = vmatpush1.msra.mxu1 %v4828_v15 }
0x14f5   : > { %2206 = vmatprep.subr.mxu1 %v4831_v47 }
0x14f6   : > { %2207 = vmatpush1.msra.mxu1 %v4834_v50 }
0x14f7   : > { %2208 = vmatprep.subr.mxu1 %v4837_v52 }
0x14f8   : > { %2209 = vmatpush1.msra.mxu1 %v4840_v57 }
0x14f9   : > { %2210 = vmatprep.subr.mxu1 %v4843_v59 }
0x14fa   : > { %2211 = vmatpush1.msra.mxu1 %v4846_v62 }
0x14fb   : > { %2212 = vmatprep.subr.mxu1 %v4849_v16 }
0x14fc   : > { %2213 = vmatpush1.msra.mxu1 %v4852_v28 }
0x14fd   : > { %2214 = vmatprep.subr.mxu1 %v4855_v34 }
0x14fe   : > { %2215 = vmatpush1.msra.mxu1 %v4858_v39 }
0x14ff   : > { %2216 = vmatprep.subr.mxu1 %v4861_v5 }
0x1500   : > { %2217 = vmatpush1.msra.mxu1 %v4864_v8 }
0x1501   : > { %2218 = vmatprep.subr.mxu1 %v4867_v3 }
0x1502   : > { %2219 = vmatpush1.msra.mxu1 %v4870_v43 }
0x1503   : > { %2220 = vmatprep.subr.mxu1 %v4874_v51 }
0x1504   : > { %2221 = vmatpush1.msra.mxu1 %v4877_v58 }
0x15a3   : > { %v2113_v54 = vpop.f32.mrf.mxu0 }
0x15a4   : > { %v2114_v26 = vadd.f32 %v2113_v54, %v5472_v21  ;;  %v1866_v54 = vmul.f32 %v4955_v40, %v4912_v24 }
0x15a5   : > { %v1955_v29 = vpop.f32.mrf.mxu1  ;;  %v2115_v17 = vpop.f32.mrf.mxu0 }
0x15a6   : > { %3432 = vtanh.f32 %v2114_v26  ;;  %v1956_v35 = vadd.f32 %v1955_v29, %v5473_v31  ;;  %v2116_v25 = vadd.f32 %v2115_v17, %v5474_v53  ;;  %v3043_v47 = vmul.f32 -1.442695, %v2114_v26 }
0x15a7   : > { %v1957_v20 = vpop.f32.mrf.mxu1  ;;  %v1867_v26 = vadd.f32 %v1866_v54, %v1865_v11 }
0x15a8   : > { %3434 = vtanh.f32 %v1956_v35  ;;  %v1958_v6 = vadd.f32 %v1957_v20, %v5463_v14  ;;  %v3033_v15 = vmul.f32 -1.442695, %v1956_v35  ;;  %v3044_v50 = vmul.f32 -1.442695, %v2116_v25 }
0x15a9   : > { %3436 = vtanh.f32 %v2116_v25  ;;  %v1711_v35 = vmul.f32 %v4745_v12, %v4944_v27 }
0x15aa   : > { %3438 = vtanh.f32 %v1958_v6  ;;  %v3034_v52 = vmul.f32 -1.442695, %v1958_v6 }
0x15ab   : > { %3440 = vpow2.f32 %v3033_v15  ;;  %v5065_v24 = vadd.f32 %v1711_v35, %v1710_v10  ;;  %v2009_v15 = vmul.f32 %v4955_v40, %v4963_v56 }
0x15ac   : > { %3442 = vpow2.f32 %v3043_v47 }
0x15ad   : > { %3444 = vpow2.f32 %v3044_v50  ;;  %v5080_v50 = vstv %s2036_s5 }
0x15ae   : > { %3446 = vpow2.f32 %v3034_v52 }
0x15b3   : > { %v3433_v19 = vpop.eup %3432 }
0x15b4   : > { %2127 = vrot.lane.b32.xlu1 %v3433_v19, %s3813_s3 }
0x15b5   : > { %v3435_v7 = vpop.eup %3434 }
0x15b6   : > { %1969 = vrot.lane.b32.xlu0 %v3435_v7, %s3813_s3  ;;  %v3437_v4 = vpop.eup %3436 }
0x15b7   : > { %v3439_v13 = vpop.eup %3438 }
0x15b8   : > { %v3441_v57 = vpop.eup %3440 }
0x15b9   : > { %v3443_v59 = vpop.eup %3442  ;;  %v1963_v62 = vadd.f32 1.0, %v3441_v57 }
0x15ba   : > { %2151 = vrot.lane.b32.xlu0 %v3437_v4, %s3813_s3  ;;  %v3445_v16 = vpop.eup %3444  ;;  %v2121_v28 = vadd.f32 1.0, %v3443_v59  ;;  %v5084_v59 = vstv %s2168_s14 }
0x15bb   : > { %3448 = vrcp.f32 %v1963_v62  ;;  %v2145_v34 = vadd.f32 1.0, %v3445_v16  ;;  %v3447_v39 = vpop.eup %3446 }
0x15bc   : > { %3450 = vrcp.f32 %v2121_v28  ;;  %v1987_v5 = vadd.f32 1.0, %v3447_v39 }
0x15bd   : > { %3452 = vrcp.f32 %v2145_v34  ;;  %v2170_v34 = vmul.f32 %v5084_v59, %v4965_v46  ;;  %v2015_v46 = vmul.f32 %v4955_v40, %v4988_v9 }
0x15be   : > { %1993 = vrot.lane.b32.xlu0 %v3439_v13, %s3813_s3  ;;  %3454 = vrcp.f32 %v1987_v5  ;;  %v2173_v5 = vmul.f32 %v5084_v59, %v4978_v60 }
0x15c8   : > { %v3449_v8 = vpop.eup %3448 }
0x15c9   : > { %v3451_v58 = vpop.eup %3450  ;;  %v1967_v32 = vmul.f32 %v3449_v8, %v5051_v45 }
0x15ca   : > { %v3453_v36 = vpop.eup %3452  ;;  %v2125_v29 = vmul.f32 %v3451_v58, %v1867_v26 }
0x15cb   : > { %v5039_v38 = vpop.eup %3454  ;;  %v2149_v48 = vmul.f32 %v3453_v36, %v1873_v55 }
0x15cc   : > { %v1991_v44 = vmul.f32 %v5039_v38, %v5065_v24 }
0x1626   : > { %v2128_v51 = vpop.permute.xlu1 %2127 }
0x1627   : > { %v2130_v61 = vmul.f32 %v3451_v58, %v2128_v51 }
0x1628   : > { %v1970_v3 = vpop.permute.xlu0 %1969 }
0x1629   : > { %v1972_v43 = vmul.f32 %v3449_v8, %v1970_v3 }
0x162b   : > { %1974 = vrot.lane.b32.xlu1 %v1972_v43, %s3814_s8 }
0x162c   : > { %v2152_v1 = vpop.permute.xlu0 %2151 }
0x162d   : > { %v2154_v42 = vmul.f32 %v3453_v36, %v2152_v1 }
0x162f   : > { %2156 = vrot.lane.b32.xlu0 %v2154_v42, %s3814_s8  ;;  %2132 = vrot.lane.b32.xlu1 %v2130_v61, %s3814_s8 }
0x1630   : > { %v1994_v49 = vpop.permute.xlu0 %1993 }
0x1631   : > { %v1996_v23 = vmul.f32 %v5039_v38, %v1994_v49 }
0x1633   : > { %1998 = vrot.lane.b32.xlu1 %v1996_v23, %s3814_s8 }
0x169d   : > { %v1975_v0 = vpop.permute.xlu1 %1974 }
0x169e   : > { %v5060_v21 = vadd.f32 %v1975_v0, %v1967_v32 }
0x16a0   : > { %3456 = vtanh.f32 %v5060_v21  ;;  %v2011_v35 = vmul.f32 %v5060_v21, %v4953_v22 }
0x16a1   : > { %v2157_v17 = vpop.permute.xlu0 %2156  ;;  %v2133_v30 = vpop.permute.xlu1 %2132 }
0x16a2   : > { %v2159_v53 = vadd.f32 %v2157_v17, %v2149_v48  ;;  %v2135_v25 = vadd.f32 %v2133_v30, %v2125_v29  ;;  %v2012_v17 = vmul.f32 %v4955_v40, %v5051_v45  ;;  %v2331_v45 = vld [vmem:[%s5475_s27 + $0x38] sm:$0xff] }
0x16a3   : > { %3222 = vmatpush3.msra.mxu0 %v2331_v45 }
0x16a4   : > { %3458 = vtanh.f32 %v2159_v53  ;;  %v2013_v53 = vadd.f32 %v2012_v17, %v2011_v35  ;;  %3223 = vmatprep.subr.mxu0 %v5416_v33 }
0x16a5   : > { %3460 = vtanh.f32 %v2135_v25  ;;  %v1999_v41 = vpop.permute.xlu1 %1998  ;;  %v2018_v25 = vmul.f32 %v4955_v40, %v5065_v24  ;;  %v2329_v40 = vld [vmem:[%s5475_s27 + $0x28] sm:$0xff]  ;;  %v2328_v24 = vld [vmem:[%s5475_s27 + $0x20] sm:$0xff] }
0x16a6   : > { %v5069_v20 = vadd.f32 %v1999_v41, %v1991_v44 }
0x16a8   : > { %3462 = vtanh.f32 %v5069_v20  ;;  %v2017_v30 = vmul.f32 %v5069_v20, %v4953_v22 }
0x16ad   : > { %v3457_v6 = vpop.eup %3456 }
0x16ae   : > { %1980 = vrot.lane.b32.xlu0 %v3457_v6, %s3813_s3  ;;  %v2019_v6 = vadd.f32 %v2018_v25, %v2017_v30 }
0x16b1   : > { %v3459_v12 = vpop.eup %3458 }
0x16b2   : > { %v3461_v27 = vpop.eup %3460  ;;  %2162 = vrot.lane.b32.xlu0 %v3459_v12, %s3813_s3 }
0x16b3   : > { %2138 = vrot.lane.b32.xlu1 %v3461_v27, %s3813_s3 }
0x16b5   : > { %v3463_v19 = vpop.eup %3462 }
0x16b7   : > { %2004 = vrot.lane.b32.xlu1 %v3463_v19, %s3813_s3 }
0x1720   : > { %v1981_v7 = vpop.permute.xlu0 %1980 }
0x1721   : > { %v1983_v4 = vmul.f32 %v3449_v8, %v1981_v7 }
0x1723   : > { %v2008_v13 = vmul.f32 %v1983_v4, %v4953_v22  ;;  %v2327_v4 = vld [vmem:[%s5475_s27 + $0x18] sm:$0xff] }
0x1724   : > { %v2163_v47 = vpop.permute.xlu0 %2162 }
0x1725   : > { %v2139_v52 = vpop.permute.xlu1 %2138  ;;  %v5082_v57 = vadd.f32 %v2009_v15, %v2008_v13  ;;  %v2165_v62 = vmul.f32 %v3453_v36, %v2163_v47  ;;  %v2326_v13 = vld [vmem:[%s5475_s27 + $0x10] sm:$0xff]  ;;  %v2325_v15 = vld [vmem:[%s5475_s27 + $0x8] sm:$0xff]  ;;  %v2324_v47 = vld [vmem:[%s5475_s27] sm:$0xff] }
0x1726   : > { %v2141_v16 = vmul.f32 %v3451_v58, %v2139_v52 }
0x1727   : > { %2180 = vrot.lane.b32.xlu1 %v5082_v57, %s3813_s3  ;;  %v2172_v56 = vmul.f32 %v5080_v50, %v2165_v62 }
0x1728   : > { %v2167_v28 = vmul.f32 %v5080_v50, %v2141_v16 }
0x1729   : > { %v2174_v8 = vadd.f32 %v2173_v5, %v2172_v56  ;;  %v2005_v3 = vpop.permute.xlu1 %2004 }
0x172a   : > { %v2171_v39 = vadd.f32 %v2170_v34, %v2167_v28  ;;  %v2007_v43 = vmul.f32 %v5039_v38, %v2005_v3  ;;  %v2310_v34 = vmul.f32 %v5084_v59, %v5082_v57  ;;  %v3047_v57 = vld [vmem:[%s5303_s11] ss:$0 sm:$0xff] }
0x172c   : > { %2176 = vrot.lane.b32.xlu0 %v2171_v39, %s3814_s8  ;;  %v2014_v51 = vmul.f32 %v2007_v43, %v4953_v22  ;;  %v2330_v22 = vld [vmem:[%s5475_s27 + $0x30] sm:$0xff] }
0x172d   : > { %3224 = vmatpush3.msra.mxu0 %v2330_v22 }
0x172e   : > { %v5100_v1 = vadd.f32 %v2015_v46, %v2014_v51  ;;  %3225 = vmatprep.subr.mxu0 %v5416_v33 }
0x172f   : > { %3226 = vmatpush3.msra.mxu0 %v2329_v40 }
0x1730   : > { %2184 = vrot.lane.b32.xlu0 %v2174_v8, %s3815_s0  ;;  %3227 = vmatprep.subr.mxu0 %v5416_v33  ;;  %v2313_v8 = vmul.f32 %v5084_v59, %v5100_v1 }
0x1731   : > { %3228 = vmatpush3.msra.mxu0 %v2328_v24 }
0x1732   : > { %3229 = vmatprep.subr.mxu0 %v5416_v33 }
0x1733   : > { %3230 = vmatpush3.msra.mxu0 %v2327_v4 }
0x1734   : > { %3231 = vmatprep.subr.mxu0 %v5416_v33 }
0x1735   : > { %3232 = vmatpush3.msra.mxu0 %v2326_v13 }
0x1736   : > { %3233 = vmatprep.subr.mxu0 %v5416_v33 }
0x1737   : > { %3234 = vmatpush3.msra.mxu0 %v2325_v15 }
0x1738   : > { %3235 = vmatprep.subr.mxu0 %v5416_v33 }
0x1739   : > { %3236 = vmatpush3.msra.mxu0 %v2324_v47 }
0x1799   : > { %v2181_v36 = vpop.permute.xlu1 %2180 }
0x179e   : > { %v2177_v58 = vpop.permute.xlu0 %2176 }
0x179f   : > { %v2187_v61 = vsel %vm186_vm0, %v2177_v58, %v2181_v36 }
0x17a2   : > { %v2185_v42 = vpop.permute.xlu0 %2184 }
0x17a3   : > { %v2188_v60 = vsel %vm736_vm6, %v2187_v61, %v2185_v42 }
0x17a4   : > { %v2189_v49 = vsel %vm195_vm1, %v2188_v60, %v5100_v1 }
0x17a5   : > { %2255 = vmatmul.mubr.f32.vlgmr.msra.gmra.mxu1 %v2189_v49 }
0x1865   : > { %v2256_v23 = vpop.f32.mrf.mxu1 }
0x1866   : > { %v2257_v38 = vadd.f32 %v2256_v23, %v5473_v31 }
0x1867   : > { %v2258_v18 = vpop.f32.mrf.mxu1 }
0x1868   : > { %3464 = vtanh.f32 %v2257_v38  ;;  %v2259_v2 = vadd.f32 %v2258_v18, %v5463_v14  ;;  %v3045_v37 = vmul.f32 -1.442695, %v2257_v38 }
0x186a   : > { %3466 = vtanh.f32 %v2259_v2  ;;  %v3046_v32 = vmul.f32 -1.442695, %v2259_v2 }
0x186b   : > { %3468 = vpow2.f32 %v3045_v37 }
0x186c   : > { %3470 = vpow2.f32 %v3046_v32 }
0x1875   : > { %v3465_v9 = vpop.eup %3464 }
0x1876   : > { %2270 = vrot.lane.b32.xlu1 %v3465_v9, %s3813_s3 }
0x1877   : > { %v3467_v11 = vpop.eup %3466 }
0x1878   : > { %2294 = vrot.lane.b32.xlu0 %v3467_v11, %s3813_s3  ;;  %v3469_v63 = vpop.eup %3468 }
0x1879   : > { %v3471_v54 = vpop.eup %3470  ;;  %v2264_v0 = vadd.f32 1.0, %v3469_v63 }
0x187a   : > { %v2288_v10 = vadd.f32 1.0, %v3471_v54 }
0x187b   : > { %3472 = vrcp.f32 %v2264_v0 }
0x187c   : > { %3474 = vrcp.f32 %v2288_v10 }
0x1888   : > { %v3473_v31 = vpop.eup %3472 }
0x1889   : > { %v3475_v26 = vpop.eup %3474  ;;  %v2268_v44 = vmul.f32 %v3473_v31, %v2013_v53 }
0x188a   : > { %v2292_v27 = vmul.f32 %v3475_v26, %v2019_v6 }
0x18e8   : > { %v2271_v55 = vpop.permute.xlu1 %2270 }
0x18e9   : > { %v2273_v14 = vmul.f32 %v3473_v31, %v2271_v55 }
0x18ea   : > { %v2295_v48 = vpop.permute.xlu0 %2294 }
0x18eb   : > { %2275 = vrot.lane.b32.xlu1 %v2273_v14, %s3814_s8  ;;  %v2297_v29 = vmul.f32 %v3475_v26, %v2295_v48 }
0x18ed   : > { %2299 = vrot.lane.b32.xlu0 %v2297_v29, %s3814_s8 }
0x195d   : > { %v2276_v41 = vpop.permute.xlu1 %2275 }
0x195e   : > { %v2278_v12 = vadd.f32 %v2276_v41, %v2268_v44 }
0x195f   : > { %v2300_v19 = vpop.permute.xlu0 %2299 }
0x1960   : > { %3476 = vtanh.f32 %v2278_v12  ;;  %v2302_v7 = vadd.f32 %v2300_v19, %v2292_v27 }
0x1962   : > { %3478 = vtanh.f32 %v2302_v7 }
0x196d   : > { %v3477_v21 = vpop.eup %3476 }
0x196e   : > { %2281 = vrot.lane.b32.xlu1 %v3477_v21, %s3813_s3 }
0x196f   : > { %v3479_v20 = vpop.eup %3478 }
0x1970   : > { %2305 = vrot.lane.b32.xlu0 %v3479_v20, %s3813_s3 }
0x19e0   : > { %v2282_v52 = vpop.permute.xlu1 %2281 }
0x19e1   : > { %v2284_v62 = vmul.f32 %v3473_v31, %v2282_v52 }
0x19e2   : > { %v2306_v28 = vpop.permute.xlu0 %2305 }
0x19e3   : > { %v2309_v16 = vmul.f32 %v2284_v62, %v5080_v50  ;;  %v2308_v56 = vmul.f32 %v3475_v26, %v2306_v28 }
0x19e5   : > { %v2311_v39 = vadd.f32 %v2310_v34, %v2309_v16  ;;  %v2312_v5 = vmul.f32 %v2308_v56, %v5080_v50 }
0x19e7   : > { %2316 = vrot.lane.b32.xlu1 %v2311_v39, %s3814_s8  ;;  %v2314_v3 = vadd.f32 %v2313_v8, %v2312_v5 }
0x19e9   : > { %2320 = vrot.lane.b32.xlu0 %v2314_v3, %s3813_s3 }
0x1a59   : > { %v2317_v33 = vpop.permute.xlu1 %2316 }
0x1a5b   : > { %v2321_v43 = vpop.permute.xlu0 %2320 }
0x1a5c   : > { %v2323_v51 = vsel %vm186_vm0, %v2317_v33, %v2321_v43 }
0x1a5d   : > { %3238 = vmatmul.mubr.msk.f32.vlgmr.msra.gmra.mxu0 %vm736_vm6, %v2323_v51 }
0x1b1d   : > { %v2408_v58 = vpop.f32.mrf.mxu0 }
0x1b1e   : > { %v2409_v50 = vadd.f32 %v3047_v57, %v2408_v58 }
0x1b1f   : > { %v3239_v46 = vpop.f32.mrf.mxu0 }
0x1b20   : > { %v2412_v36 = vmax.f32 %v2409_v50, 0.0 }
0x1b22   : > { %2413 = vst.msk [vmem:[#allocation5] sm:$0xff] %vm186_vm0, %v2412_v36 }
0x1b23 PF: > { %s2414_s8 = sld [smem:[#allocation7 + %s4126_s23]] }
0x1b29   : > { %p3049_p6 = scmp.ne.s32.totalorder %s2414_s8, 0 }
0x1b2a   : > { %s3050_s3 = sshll.u32 (!%p3049_p6), %s3789_s9, 3 }
0x1b2b   : > { %2418 = sbr.rel (%p3049_p6) target bundleno = 6962 (0x1b32), region = 120  ;;  %s2420_s20 = scalar_lea.vmem (!%p3049_p6), %s5294_s2, %s3050_s3 }
0x1b30   : > { %v2421_v59 = vld [vmem:[%s2420_s20] sm:$0xff] }
0x1b31   : > { %2422 = vst.msk [vmem:[#allocation5] sm:$0xff] %vm186_vm0, %v2421_v59 }
0x1b32 PF: > { %s3091_s21 = sadd.s32 384, %s3963_s17 }
0x1b33   : > { %s2426_s24 = sadd.s32 %s3091_s21, %s3966_s18 }
0x1b34   : > { %s2427_s22 = sld [smem:[#allocation7 + %s2426_s24]] }
0x1b38   : > { %v5174_v1 = vld [vmem:[#allocation5] sm:$0xff] }
0x1b3a   : > { %p3052_p7 = scmp.ne.s32.totalorder %s2427_s22, 1 }
0x1b3b   : > { %s3093_s23 = sadd.s32 (!%p3052_p7), 512, %s3963_s17 }
0x1b3c   : > { %2431 = sbr.rel (%p3052_p7) target bundleno = 6982 (0x1b46), region = 124  ;;  %s2434_s1 = sadd.s32 (!%p3052_p7), %s3093_s23, %s3966_s18 }
0x1b3d   : > { %s2435_s7 = sld [smem:[#allocation7 + %s2434_s1]] (!%p3052_p7) }
0x1b43   : > { %s3054_s28 = sshll.u32 %s2435_s7, 3 }
0x1b44   : > { %s2437_s25 = scalar_lea.vmem [#allocation3], %s3054_s28 }
0x1b45   : > { %2438 = vst.msk [vmem:[%s2437_s25] sm:$0xff] %vm186_vm0, %v5174_v1 }
0x1b46 PF: > { %s3095_s5 = sadd.s32 640, %s3963_s17  ;;  %v2504_v61 = vld [vmem:[#allocation13 + $0xf8] sm:$0xff]  ;;  %v2503_v42 = vld [vmem:[#allocation13 + $0xf0] sm:$0xff]  ;;  %v2502_v60 = vld [vmem:[#allocation13 + $0xe8] sm:$0xff]  ;;  %s3097_s0 = sadd.s32 768, %s3963_s17  ;;  %v3817_v18 = vmov 0.0   ;;  %v2507_v15 = vlaneseq }
0x1b47   : > { %s2441_s14 = sadd.s32 %s3095_s5, %s3966_s18  ;;  %2517 = vmatprep.subr.mxu0 %v2504_v61  ;;  %v2501_v49 = vld [vmem:[#allocation13 + $0xe0] sm:$0xff]  ;;  %v2500_v23 = vld [vmem:[#allocation13 + $0xd8] sm:$0xff]  ;;  %v2499_v38 = vld [vmem:[#allocation13 + $0xd0] sm:$0xff]  ;;  %2581 = vmatprep.mubr.f32.mxu0 %v3817_v18  ;;  %s2445_s4 = sadd.s32 %s3097_s0, %s3966_s18  ;;  %vm2470_vm8 = vcmask 523264   ;;  %vm2861_vm9 = vcmask 785920  }
0x1b48   : > { %s2442_s26 = sld [smem:[#allocation7 + %s2441_s14]]  ;;  %2518 = vmatpush1.msra.mxu0 %v2503_v42  ;;  %v2498_v2 = vld [vmem:[#allocation13 + $0xc8] sm:$0xff]  ;;  %2763 = vmatprep.mubr.f32.mxu1 %v3817_v18  ;;  %v2497_v9 = vld [vmem:[#allocation13 + $0xc0] sm:$0xff]  ;;  %s3057_s3 = sshll.u32 %s3789_s9, 3  ;;  %v2496_v11 = vld [vmem:[#allocation13 + $0xb8] sm:$0xff]  ;;  %v5206_v47 = vshrl.u32 %v2507_v15, 7 }
0x1b49   : > { %2519 = vmatprep.subr.mxu0 %v2502_v60  ;;  %s2446_s8 = sld [smem:[#allocation7 + %s2445_s4]]  ;;  %v2495_v37 = vld [vmem:[#allocation13 + $0xb0] sm:$0xff]  ;;  %v2494_v32 = vld [vmem:[#allocation13 + $0xa8] sm:$0xff]  ;;  %v2493_v63 = vld [vmem:[#allocation13 + $0xa0] sm:$0xff]  ;;  %s3818_s20 = smov 32  }
0x1b4a   : > { %2520 = vmatpush1.msra.mxu0 %v2501_v49  ;;  %v2492_v0 = vld [vmem:[#allocation13 + $0x98] sm:$0xff]  ;;  %v2491_v10 = vld [vmem:[#allocation13 + $0x90] sm:$0xff]  ;;  %s2449_s24 = scalar_lea.vmem [#allocation11], %s3057_s3  ;;  %v2490_v55 = vld [vmem:[#allocation13 + $0x88] sm:$0xff]  ;;  %s3819_s23 = smov 96   ;;  %v2509_v52 = vsub.s32 0, %v5206_v47 }
0x1b4b   : > { %2521 = vmatprep.subr.mxu0 %v2500_v23  ;;  %v2450_v31 = vld [vmem:[%s2449_s24] sm:$0xff]  ;;  %v2489_v26 = vld [vmem:[#allocation13 + $0x80] sm:$0xff]  ;;  %s3820_s1 = smov 64   ;;  %v2487_v29 = vld [vmem:[#allocation13 + $0x70] sm:$0xff]  ;;  %v2513_v16 = vsub.s32 1, %v5206_v47 }
0x1b4c   : > { %2522 = vmatpush1.msra.mxu0 %v2499_v38  ;;  %v2488_v48 = vld [vmem:[#allocation13 + $0x78] sm:$0xff]  ;;  %v2486_v35 = vld [vmem:[#allocation13 + $0x68] sm:$0xff]  ;;  %v2485_v17 = vld [vmem:[#allocation13 + $0x60] sm:$0xff] }
0x1b4d   : > { %2523 = vmatprep.subr.mxu0 %v2498_v2  ;;  %v2484_v30 = vld [vmem:[#allocation13 + $0x58] sm:$0xff]  ;;  %v2483_v53 = vld [vmem:[#allocation13 + $0x50] sm:$0xff]  ;;  %v2482_v25 = vld [vmem:[#allocation13 + $0x48] sm:$0xff] }
0x1b4e   : > { %s3058_s30 = sshll.u32 %s2442_s26, 3  ;;  %2524 = vmatpush1.msra.mxu0 %v2497_v9  ;;  %v2481_v44 = vld [vmem:[#allocation13 + $0x40] sm:$0xff]  ;;  %v2480_v41 = vld [vmem:[#allocation13 + $0x38] sm:$0xff]  ;;  %v2479_v6 = vld [vmem:[#allocation13 + $0x30] sm:$0xff] }
0x1b4f   : > { %2525 = vmatprep.subr.mxu0 %v2496_v11  ;;  %s5187_s19 = scalar_lea.vmem [#allocation2], %s3058_s30  ;;  %s3059_s21 = sshll.u32 %s2446_s8, 3  ;;  %v2478_v12 = vld [vmem:[#allocation13 + $0x28] sm:$0xff]  ;;  %v2477_v27 = vld [vmem:[#allocation13 + $0x20] sm:$0xff]  ;;  %v2476_v19 = vld [vmem:[#allocation13 + $0x18] sm:$0xff] }
0x1b50   : > { %v5190_v54 = vld [vmem:[%s5187_s19] sm:$0xff]  ;;  %2526 = vmatpush1.msra.mxu0 %v2495_v37  ;;  %s5194_s22 = scalar_lea.vmem [#allocation2], %s3059_s21  ;;  %v2475_v7 = vld [vmem:[#allocation13 + $0x10] sm:$0xff]  ;;  %v2474_v45 = vld [vmem:[#allocation13 + $0x8] sm:$0xff] }
0x1b51   : > { %2458 = vrot.lane.b32.xlu0 %v5190_v54, %s3818_s20  ;;  %2527 = vmatprep.subr.mxu0 %v2494_v32  ;;  %v5197_v14 = vld [vmem:[%s5194_s22 + $0x90] sm:$0xff]  ;;  %v2473_v22 = vld [vmem:[#allocation13] sm:$0xff]  ;;  %v2685_v11 = vld [vmem:[#allocation13 + $0x1f8] sm:$0xff] }
0x1b52   : > { %2528 = vmatpush1.msra.mxu0 %v2493_v63  ;;  %2466 = vrot.lane.b32.xlu1 %v5197_v14, %s3819_s23  ;;  %v2505_v62 = vld [vmem:[#allocation14] ss:$2 sm:$0x3]  ;;  %v2684_v37 = vld [vmem:[#allocation13 + $0x1f0] sm:$0xff]  ;;  %v2683_v32 = vld [vmem:[#allocation13 + $0x1e8] sm:$0xff] }
0x1b53   : > { %2529 = vmatprep.subr.mxu0 %v2492_v0  ;;  %v2510_v28 = vrot.slane %v2505_v62, %v2509_v52  ;;  %v2514_v34 = vrot.slane %v2505_v62, %v2513_v16  ;;  %2699 = vmatprep.subr.mxu1 %v2685_v11  ;;  %v2682_v63 = vld [vmem:[#allocation13 + $0x1e0] sm:$0xff]  ;;  %v2681_v0 = vld [vmem:[#allocation13 + $0x1d8] sm:$0xff]  ;;  %v2656_v15 = vld [vmem:[#allocation13 + $0x110] sm:$0xff] }
0x1b54   : > { %2530 = vmatpush1.msra.mxu0 %v2491_v10  ;;  %2700 = vmatpush1.msra.mxu1 %v2684_v37  ;;  %v2680_v10 = vld [vmem:[#allocation13 + $0x1d0] sm:$0xff]  ;;  %v2655_v62 = vld [vmem:[#allocation13 + $0x108] sm:$0xff] }
0x1b55   : > { %2462 = vrot.lane.b32.xlu0 %v2450_v31, %s3820_s1  ;;  %2531 = vmatprep.subr.mxu0 %v2490_v55  ;;  %v2679_v31 = vld [vmem:[#allocation13 + $0x1c8] sm:$0xff] }
0x1b56   : > { %2532 = vmatpush1.msra.mxu0 %v2489_v26  ;;  %2701 = vmatprep.subr.mxu1 %v2683_v32  ;;  %v2678_v26 = vld [vmem:[#allocation13 + $0x1c0] sm:$0xff] }
0x1b57   : > { %2533 = vmatprep.subr.mxu0 %v2488_v48  ;;  %2702 = vmatpush1.msra.mxu1 %v2682_v63  ;;  %v2677_v48 = vld [vmem:[#allocation13 + $0x1b8] sm:$0xff] }
0x1b58   : > { %2534 = vmatpush1.msra.mxu0 %v2487_v29  ;;  %2703 = vmatprep.subr.mxu1 %v2681_v0  ;;  %v2676_v29 = vld [vmem:[#allocation13 + $0x1b0] sm:$0xff] }
0x1b59   : > { %2535 = vmatprep.subr.mxu0 %v2486_v35  ;;  %2704 = vmatpush1.msra.mxu1 %v2680_v10 }
0x1b5a   : > { %2536 = vmatpush1.msra.mxu0 %v2485_v17  ;;  %2705 = vmatprep.subr.mxu1 %v2679_v31  ;;  %v2675_v17 = vld [vmem:[#allocation13 + $0x1a8] sm:$0xff] }
0x1b5b   : > { %2537 = vmatprep.subr.mxu0 %v2484_v30  ;;  %2706 = vmatpush1.msra.mxu1 %v2678_v26  ;;  %v2674_v30 = vld [vmem:[#allocation13 + $0x1a0] sm:$0xff] }
0x1b5c   : > { %2538 = vmatpush1.msra.mxu0 %v2483_v53  ;;  %2707 = vmatprep.subr.mxu1 %v2677_v48  ;;  %v2673_v53 = vld [vmem:[#allocation13 + $0x198] sm:$0xff] }
0x1b5d   : > { %2539 = vmatprep.subr.mxu0 %v2482_v25  ;;  %2708 = vmatpush1.msra.mxu1 %v2676_v29  ;;  %v2672_v25 = vld [vmem:[#allocation13 + $0x190] sm:$0xff] }
0x1b5e   : > { %2540 = vmatpush1.msra.mxu0 %v2481_v44  ;;  %2709 = vmatprep.subr.mxu1 %v2675_v17  ;;  %v2671_v44 = vld [vmem:[#allocation13 + $0x188] sm:$0xff] }
0x1b5f   : > { %2541 = vmatprep.subr.mxu0 %v2480_v41  ;;  %2710 = vmatpush1.msra.mxu1 %v2674_v30  ;;  %v2670_v41 = vld [vmem:[#allocation13 + $0x180] sm:$0xff] }
0x1b60   : > { %2542 = vmatpush1.msra.mxu0 %v2479_v6  ;;  %2711 = vmatprep.subr.mxu1 %v2673_v53  ;;  %v2669_v6 = vld [vmem:[#allocation13 + $0x178] sm:$0xff] }
0x1b61   : > { %2543 = vmatprep.subr.mxu0 %v2478_v12  ;;  %2712 = vmatpush1.msra.mxu1 %v2672_v25  ;;  %v2668_v12 = vld [vmem:[#allocation13 + $0x170] sm:$0xff] }
0x1b62   : > { %2544 = vmatpush1.msra.mxu0 %v2477_v27  ;;  %2713 = vmatprep.subr.mxu1 %v2671_v44  ;;  %v2667_v27 = vld [vmem:[#allocation13 + $0x168] sm:$0xff] }
0x1b63   : > { %2545 = vmatprep.subr.mxu0 %v2476_v19  ;;  %2714 = vmatpush1.msra.mxu1 %v2670_v41  ;;  %v2666_v19 = vld [vmem:[#allocation13 + $0x160] sm:$0xff] }
0x1b64   : > { %2546 = vmatpush1.msra.mxu0 %v2475_v7  ;;  %2715 = vmatprep.subr.mxu1 %v2669_v6  ;;  %v2665_v7 = vld [vmem:[#allocation13 + $0x158] sm:$0xff] }
0x1b65   : > { %2547 = vmatprep.subr.mxu0 %v2474_v45  ;;  %2716 = vmatpush1.msra.mxu1 %v2668_v12  ;;  %v2664_v45 = vld [vmem:[#allocation13 + $0x150] sm:$0xff] }
0x1b66   : > { %2548 = vmatpush1.msra.mxu0 %v2473_v22  ;;  %2717 = vmatprep.subr.mxu1 %v2667_v27  ;;  %v2663_v22 = vld [vmem:[#allocation13 + $0x148] sm:$0xff] }
0x1b67   : > { %2718 = vmatpush1.msra.mxu1 %v2666_v19 }
0x1b68   : > { %2719 = vmatprep.subr.mxu1 %v2665_v7 }
0x1b69   : > { %2720 = vmatpush1.msra.mxu1 %v2664_v45 }
0x1b6a   : > { %2721 = vmatprep.subr.mxu1 %v2663_v22 }
0x1bc3   : > { %v2459_v40 = vpop.permute.xlu0 %2458 }
0x1bc4   : > { %v2467_v21 = vpop.permute.xlu1 %2466  ;;  %v2469_v24 = vsel %vm186_vm0, %v5174_v1, %v2459_v40  ;;  %v2662_v40 = vld [vmem:[#allocation13 + $0x140] sm:$0xff] }
0x1bc5   : > { %2722 = vmatpush1.msra.mxu1 %v2662_v40 }
0x1bc7   : > { %v2463_v20 = vpop.permute.xlu0 %2462 }
0x1bc8   : > { %v2471_v4 = vsel %vm2470_vm8, %v2469_v24, %v2463_v20  ;;  %v2660_v24 = vld [vmem:[#allocation13 + $0x130] sm:$0xff]  ;;  %v2659_v20 = vld [vmem:[#allocation13 + $0x128] sm:$0xff] }
0x1bc9   : > { %v2472_v13 = vsel %vm195_vm1, %v2471_v4, %v2467_v21  ;;  %v2661_v21 = vld [vmem:[#allocation13 + $0x138] sm:$0xff]  ;;  %v2658_v4 = vld [vmem:[#allocation13 + $0x120] sm:$0xff] }
0x1bca   : > { %2582 = vmatmul.mubr.f32.vlgmr.msra.gmra.mxu0 %v2472_v13  ;;  %2723 = vmatprep.subr.mxu1 %v2661_v21  ;;  %v2657_v13 = vld [vmem:[#allocation13 + $0x118] sm:$0xff] }
0x1bcb   : > { %2724 = vmatpush1.msra.mxu1 %v2660_v24 }
0x1bcc   : > { %2725 = vmatprep.subr.mxu1 %v2659_v20 }
0x1bcd   : > { %2726 = vmatpush1.msra.mxu1 %v2658_v4 }
0x1bce   : > { %2727 = vmatprep.subr.mxu1 %v2657_v13 }
0x1bcf   : > { %2728 = vmatpush1.msra.mxu1 %v2656_v15 }
0x1bd0   : > { %2729 = vmatprep.subr.mxu1 %v2655_v62 }
0x1c8a   : > { %v2583_v56 = vpop.f32.mrf.mxu0 }
0x1c8b   : > { %v2584_v39 = vadd.f32 %v2583_v56, %v2510_v28  ;;  %v2654_v28 = vld [vmem:[#allocation13 + $0x100] sm:$0xff] }
0x1c8c   : > { %v2585_v5 = vpop.f32.mrf.mxu0  ;;  %2730 = vmatpush1.msra.mxu1 %v2654_v28 }
0x1c8d   : > { %3549 = vtanh.f32 %v2584_v39  ;;  %v2586_v8 = vadd.f32 %v2585_v5, %v2514_v34  ;;  %v3061_v43 = vmul.f32 -1.442695, %v2584_v39 }
0x1c8f   : > { %3551 = vtanh.f32 %v2586_v8  ;;  %v3062_v51 = vmul.f32 -1.442695, %v2586_v8 }
0x1c90   : > { %3553 = vpow2.f32 %v3061_v43 }
0x1c91   : > { %3555 = vpow2.f32 %v3062_v51 }
0x1c9a   : > { %v3550_v3 = vpop.eup %3549 }
0x1c9b   : > { %2597 = vrot.lane.b32.xlu1 %v3550_v3, %s3820_s1 }
0x1c9c   : > { %v3552_v33 = vpop.eup %3551 }
0x1c9d   : > { %2621 = vrot.lane.b32.xlu0 %v3552_v33, %s3820_s1  ;;  %v3554_v57 = vpop.eup %3553 }
0x1c9e   : > { %v3556_v58 = vpop.eup %3555  ;;  %v2591_v50 = vadd.f32 1.0, %v3554_v57 }
0x1c9f   : > { %v2615_v46 = vadd.f32 1.0, %v3556_v58 }
0x1ca0   : > { %3557 = vrcp.f32 %v2591_v50 }
0x1ca1   : > { %3559 = vrcp.f32 %v2615_v46 }
0x1cad   : > { %v5216_v36 = vpop.eup %3557 }
0x1cae   : > { %v5219_v61 = vpop.eup %3559  ;;  %v2595_v49 = vmul.f32 %v5216_v36, %v5190_v54 }
0x1caf   : > { %v2619_v18 = vmul.f32 %v5219_v61, %v5197_v14 }
0x1d0d   : > { %v2598_v59 = vpop.permute.xlu1 %2597 }
0x1d0e   : > { %v2600_v1 = vmul.f32 %v5216_v36, %v2598_v59 }
0x1d0f   : > { %v2622_v42 = vpop.permute.xlu0 %2621 }
0x1d10   : > { %2602 = vrot.lane.b32.xlu1 %v2600_v1, %s3818_s20  ;;  %v2624_v60 = vmul.f32 %v5219_v61, %v2622_v42 }
0x1d12   : > { %2626 = vrot.lane.b32.xlu0 %v2624_v60, %s3818_s20 }
0x1d82   : > { %v2603_v23 = vpop.permute.xlu1 %2602 }
0x1d83   : > { %v5226_v38 = vadd.f32 %v2603_v23, %v2595_v49 }
0x1d84   : > { %v2627_v2 = vpop.permute.xlu0 %2626 }
0x1d85   : > { %3561 = vtanh.f32 %v5226_v38  ;;  %v5231_v9 = vadd.f32 %v2627_v2, %v2619_v18 }
0x1d87   : > { %3563 = vtanh.f32 %v5231_v9 }
0x1d92   : > { %v3562_v55 = vpop.eup %3561 }
0x1d93   : > { %2608 = vrot.lane.b32.xlu1 %v3562_v55, %s3820_s1 }
0x1d94   : > { %v3564_v35 = vpop.eup %3563 }
0x1d95   : > { %2632 = vrot.lane.b32.xlu0 %v3564_v35, %s3820_s1 }
0x1e05   : > { %v2609_v34 = vpop.permute.xlu1 %2608 }
0x1e06   : > { %v2611_v56 = vmul.f32 %v5216_v36, %v2609_v34  ;;  %v2687_v36 = vld [vmem:[#allocation14 + $0x1] ss:$2 sm:$0x3] }
0x1e07   : > { %v2633_v39 = vpop.permute.xlu0 %2632  ;;  %v2692_v59 = vrot.slane %v2687_v36, %v2509_v52  ;;  %v2696_v1 = vrot.slane %v2687_v36, %v2513_v16 }
0x1e08   : > { %2637 = vrot.lane.b32.xlu1 %v2611_v56, %s3818_s20  ;;  %v2635_v5 = vmul.f32 %v5219_v61, %v2633_v39 }
0x1e0a   : > { %v3544_v8 = vpack.i.bf16 %v2635_v5, %v5190_v54 }
0x1e0c   : > { %2647 = vrot.lane.b32.xlu1 %v5197_v14, %s3818_s20  ;;  %3545 = vrot.lane.b32.xlu0 %v3544_v8, %s3819_s23 }
0x1e7a   : > { %v5243_v3 = vpop.permute.xlu1 %2637 }
0x1e7b   : > { %v2832_v7 = vsel %vm186_vm0, %v5243_v3, %v5226_v38 }
0x1e7e   : > { %v3546_v33 = vpop.permute.xlu0 %3545  ;;  %v2648_v57 = vpop.permute.xlu1 %2647 }
0x1e7f   : > { %v3548_v43 = vunpack.i.h.bf16 %v3546_v33  ;;  %v3547_v51 = vunpack.i.l.bf16 %v3546_v33 }
0x1e81   : > { %v2650_v58 = vsel %vm186_vm0, %v5243_v3, %v3547_v51 }
0x1e82   : > { %v2651_v50 = vsel %vm2470_vm8, %v2650_v58, %v3548_v43 }
0x1e83   : > { %v2652_v46 = vsel %vm195_vm1, %v2651_v50, %v2648_v57 }
0x1e84   : > { %2764 = vmatmul.mubr.f32.vlgmr.msra.gmra.mxu1 %v2652_v46 }
0x1f44   : > { %v2765_v61 = vpop.f32.mrf.mxu1 }
0x1f45   : > { %v2766_v42 = vadd.f32 %v2765_v61, %v2692_v59 }
0x1f46   : > { %v2767_v60 = vpop.f32.mrf.mxu1 }
0x1f47   : > { %3565 = vtanh.f32 %v2766_v42  ;;  %v2768_v49 = vadd.f32 %v2767_v60, %v2696_v1  ;;  %v3063_v47 = vmul.f32 -1.442695, %v2766_v42 }
0x1f49   : > { %3567 = vtanh.f32 %v2768_v49  ;;  %v3064_v52 = vmul.f32 -1.442695, %v2768_v49 }
0x1f4a   : > { %3569 = vpow2.f32 %v3063_v47 }
0x1f4b   : > { %3571 = vpow2.f32 %v3064_v52 }
0x1f54   : > { %v3566_v23 = vpop.eup %3565 }
0x1f55   : > { %2782 = vrot.lane.b32.xlu0 %v3566_v23, %s3820_s1 }
0x1f56   : > { %v3568_v18 = vpop.eup %3567 }
0x1f57   : > { %2809 = vrot.lane.b32.xlu1 %v3568_v18, %s3820_s1  ;;  %v3570_v16 = vpop.eup %3569 }
0x1f58   : > { %v3572_v2 = vpop.eup %3571  ;;  %v2773_v11 = vadd.f32 1.0, %v3570_v16 }
0x1f59   : > { %2777 = vrot.lane.b32.xlu0 %v5190_v54, %s3820_s1  ;;  %v2800_v37 = vadd.f32 1.0, %v3572_v2 }
0x1f5a   : > { %3573 = vrcp.f32 %v2773_v11 }
0x1f5b   : > { %2804 = vrot.lane.b32.xlu1 %v5197_v14, %s3820_s1  ;;  %3575 = vrcp.f32 %v2800_v37 }
0x1f67   : > { %v3574_v32 = vpop.eup %3573 }
0x1f68   : > { %v3576_v10 = vpop.eup %3575 }
0x1fc7   : > { %v2783_v63 = vpop.permute.xlu0 %2782 }
0x1fc8   : > { %v2785_v0 = vmul.f32 %v3574_v32, %v2783_v63 }
0x1fc9   : > { %v2810_v31 = vpop.permute.xlu1 %2809 }
0x1fca   : > { %2787 = vrot.lane.b32.xlu0 %v2785_v0, %s3818_s20  ;;  %v2812_v54 = vmul.f32 %v3576_v10, %v2810_v31 }
0x1fcb   : > { %v2778_v14 = vpop.permute.xlu0 %2777 }
0x1fcc   : > { %2814 = vrot.lane.b32.xlu1 %v2812_v54, %s3818_s20  ;;  %v2780_v55 = vmul.f32 %v3574_v32, %v2778_v14 }
0x1fcd   : > { %v2805_v26 = vpop.permute.xlu1 %2804 }
0x1fce   : > { %v2807_v35 = vmul.f32 %v3576_v10, %v2805_v26 }
0x203c   : > { %v2788_v48 = vpop.permute.xlu0 %2787 }
0x203d   : > { %v2790_v29 = vadd.f32 %v2788_v48, %v2780_v55 }
0x203e   : > { %v2815_v17 = vpop.permute.xlu1 %2814 }
0x203f   : > { %3577 = vtanh.f32 %v2790_v29  ;;  %v2817_v30 = vadd.f32 %v2815_v17, %v2807_v35 }
0x2041   : > { %3579 = vtanh.f32 %v2817_v30 }
0x204c   : > { %v3578_v53 = vpop.eup %3577 }
0x204d   : > { %2793 = vrot.lane.b32.xlu0 %v3578_v53, %s3820_s1 }
0x204e   : > { %v3580_v25 = vpop.eup %3579 }
0x204f   : > { %2820 = vrot.lane.b32.xlu1 %v3580_v25, %s3820_s1 }
0x2051   : > { %2829 = vrot.lane.b32.xlu0 %v2790_v29, %s3820_s1 }
0x2053   : > { %2835 = vrot.lane.b32.xlu1 %v2635_v5, %s3818_s20 }
0x20bf   : > { %v2794_v44 = vpop.permute.xlu0 %2793 }
0x20c0   : > { %v2796_v41 = vmul.f32 %v3574_v32, %v2794_v44 }
0x20c1   : > { %v2821_v6 = vpop.permute.xlu1 %2820 }
0x20c2   : > { %2825 = vrot.lane.b32.xlu0 %v2796_v41, %s3819_s23  ;;  %v2823_v12 = vmul.f32 %v3576_v10, %v2821_v6 }
0x20c3   : > { %v2830_v27 = vpop.permute.xlu0 %2829 }
0x20c4   : > { %2839 = vrot.lane.b32.xlu1 %v2823_v12, %s3819_s23 }
0x20c5   : > { %v2836_v19 = vpop.permute.xlu1 %2835 }
0x20c6   : > { %2843 = vrot.lane.b32.xlu0 %v2817_v30, %s3820_s1  ;;  %v2846_v21 = vsel %vm186_vm0, %v2836_v19, %v5231_v9 }
0x20c8   : > { %2857 = vrot.lane.b32.xlu1 %v2796_v41, %s3818_s20 }
0x2134   : > { %v2826_v45 = vpop.permute.xlu0 %2825 }
0x2135   : > { %v2833_v22 = vsel %vm2470_vm8, %v2832_v7, %v2826_v45 }
0x2136   : > { %v2834_v40 = vsel %vm195_vm1, %v2833_v22, %v2830_v27  ;;  %v2840_v24 = vpop.permute.xlu1 %2839 }
0x2137   : > { %3066 = vst [vmem:[%s5187_s19 + $0x8] sm:$0xff] %v2834_v40  ;;  %v2847_v20 = vsel %vm2470_vm8, %v2846_v21, %v2840_v24 }
0x2138   : > { %v2844_v4 = vpop.permute.xlu0 %2843 }
0x2139   : > { %v2848_v13 = vsel %vm195_vm1, %v2847_v20, %v2844_v4 }
0x213a   : > { %3068 = vst [vmem:[%s5194_s22 + $0x98] sm:$0xff] %v2848_v13  ;;  %v2858_v15 = vpop.permute.xlu1 %2857 }
0x213b   : > { %2860 = vst.msk [vmem:[#allocation4] sm:$0xff] %vm186_vm0, %v2858_v15 }
0x213c   : > { %2862 = vst.msk [vmem:[#allocation4] sm:$0xff] %vm2861_vm9, %v2840_v24 }
0x213d PF: > { %s3099_s7 = sadd.s32 1280, %s3963_s17 }
0x213e   : > { %s2865_s28 = sadd.s32 %s3099_s7, %s3966_s18 }
0x213f   : > { %s2866_s25 = sld [smem:[#allocation7 + %s2865_s28]] }
0x2145   : > { %p3070_p8 = scmp.lt.s32.totalorder %s2866_s25, 0 }
0x2146   : > { %s2871_s5 = sld [smem:[#allocation7 + %s2865_s28]] (!%p3070_p8)  ;;  %s3821_s0 = smov (!%p3070_p8), 96  }
0x2147   : > { %2870 = sbr.rel (%p3070_p8) target bundleno = 8643 (0x21c3), region = 128 }
0x214c   : > { %s3071_s14 = sshll.u32 %s2871_s5, 3  ;;  %vm2879_vm10 = vcmask 523520  }
0x214d   : > { %s2873_s26 = scalar_lea.vmem [#allocation2], %s3071_s14 }
0x214e   : > { %v2874_v38 = vld [vmem:[%s2873_s26] sm:$0xff] }
0x214f   : > { %2876 = vrot.lane.b32.xlu0 %v2874_v38, %s3821_s0 }
0x21c1   : > { %v2877_v9 = vpop.permute.xlu0 %2876 }
0x21c2   : > { %2880 = vst.msk [vmem:[#allocation4] sm:$0xff] %vm2879_vm10, %v2877_v9 }
0x21c3 PF: > { %s213_s9 = sadd.s32 1, %s3789_s9  }
0x21c4   : > { %p210_p9 = scmp.ge.s32.totalorder %s213_s9, 10  }
0x21c5   :  { %s3822_s17 = smov (%p210_p9), [#allocation22]  }
0x21c6   :  { %212 = sbr.rel (!%p210_p9) target bundleno = 134 (0x86), region = 175  ;;  %s2886_s18 = sshll.u32 (%p210_p9), %s3822_s17, 4  ;;  %s2887_s18 = int_to_ptr.vmem [resolvable:$true] %s2886_s18 }
0x21c7   :  { %s3749_s4 = scalar_lea.vmem (%p210_p9), %s2887_s18, 1280  ;;  %p3754_p11 = scmp.lt.s32.totalorder (%p210_p9), %s2887_s18, %s2887_s18 }
0x21c8   :  { %p3750_p10 = scmp.ne.s32.totalorder (%p210_p9), %s2887_s18, %s3749_s4  ;;  %p3755_p12 = scmp.lt.s32.totalorder (%p210_p9), %s3749_s4, %s3749_s4 }
0x21ca   :  { %p3756_p13 = por (%p210_p9), %p3755_p12, %p3754_p11 }
0x21cc   :  { %p3757_p0 = pnand %p3756_p13, %p3750_p10 }
0x21ce   :  { %3760 = shalt.err (!%p3757_p0)
}
0x21cf   :  { %2892 = dma.vmem_to_hbm [thread:$0]  %s2887_s18, 1280, %s5308_s16, [#allocation10], %s3794_s10, %s3794_s10, %s3795_s29  }
0x21d0   :  { %3785 = dma.done.wait [#allocation10], 1280  }
0x21d1   :  { %3786 = vsyncadd [#allocation10], 4294966016 }
0x21d2   :  { %2896 = vsyncpa [#allocation9], 1 }
0x21d3   :  { %2897 = vsyncpa [#allocation12], 1 }
0x21d4   :  { %2898 = vsyncpa [#allocation15], 1 }
0x21d5   :  { %2899 = vsyncpa [#allocation18], 1 }
0x21d6   :  { %2900 = vsyncpa [#allocation21], 1 }
0x21d7   :  { %2901 = vsyncpa [#allocation10], 1 }

</bundles_post_ra>
